<compile_context>
chip_gen: v7x
topology: tpu7x:2x2x1
jax: 0.10.0
libtpu: 0.0.40
codegen_flags: <defaults>
</compile_context>

<pallas_src>
import numpy as np

import jax
import jax.numpy as jnp
from jax.experimental import pallas as pl
from jax.experimental.pallas import tpu as pltpu

NEG_SLOPE = 0.2
BN_EPS = 1e-5
LANE = 128

# (kernel, stride, padding, BatchNorm?, LeakyReLU?) of each Conv2d in self.main
LAYER_CFGS = [
    dict(k=(4, 3), s=(2, 1), p=(1, 1), bn=False, act=True),
    dict(k=(4, 4), s=(2, 2), p=(1, 1), bn=True, act=True),
    dict(k=(4, 4), s=(2, 2), p=(1, 1), bn=True, act=True),
    dict(k=(4, 1), s=(2, 1), p=(1, 0), bn=True, act=True),
    dict(k=(3, 1), s=(1, 1), p=(0, 0), bn=False, act=False),
]


def _round_up(x, m):
    return (x + m - 1) // m * m


# ---------------------------------------------------------------------------
# Static geometry + wrapper-side weight preparation
# ---------------------------------------------------------------------------
def compute_geometry(x_shape, weight_shapes):
    _, _, h, w = x_shape
    geo = []
    for cfg, wshape in zip(LAYER_CFGS, weight_shapes):
        cout, cin, kh, kw = wshape
        sh, sw = cfg["s"]
        ph, pw = cfg["p"]
        hp = h + 2 * ph                       # stored plane height (H pad only)
        ho = (hp - kh) // sh + 1
        wo = (w + 2 * pw - kw) // sw + 1
        geo.append(dict(cin=cin, cout=cout, kh=kh, kw=kw, sh=sh, sw=sw,
                        ph=ph, pw=pw, h_in=h, w_in=w, hp=hp, ho=ho, wo=wo,
                        k_lanes=w * cin, n_lanes=wo * cout,
                        bn=cfg["bn"], act=cfg["act"]))
        h, w = ho, wo
    return geo


def expand_weight(w, g, k_store):
    """(Cout, Cin, kh, kw) torch-layout weight -> (kh, k_store, Wo*Cout) bf16
    Toeplitz matrices implementing the W-direction taps, stride AND zero padding
    of the conv (so activation planes are stored without W padding)."""
    kh, kw = g["kh"], g["kw"]
    w_in, wo, sw, pw = g["w_in"], g["wo"], g["sw"], g["pw"]
    cin, cout = g["cin"], g["cout"]
    tap = np.zeros((kw, w_in, wo), np.float32)
    for j in range(kw):
        for o in range(wo):
            p = o * sw + j - pw               # unpadded input column of this tap
            if 0 <= p < w_in:
                tap[j, p, o] = 1.0
    # Wexp[i, (p, ci), (o, co)] = W[co, ci, i, p + pw - o*sw]   (0 outside taps)
    wexp = jnp.einsum("ocij,jpw->ipcwo", w, jnp.asarray(tap))
    wexp = wexp.reshape(kh, w_in * cin, wo * cout)
    if k_store > w_in * cin:                  # lane-pad K with zero rows
        wexp = jnp.pad(wexp, ((0, 0), (0, k_store - w_in * cin), (0, 0)))
    return wexp.astype(jnp.bfloat16)


def _full_block_spec(shape):
    nd = len(shape)
    return pl.BlockSpec(shape, lambda i, _nd=nd: (0,) * _nd)


# ---------------------------------------------------------------------------
# The single fused kernel
# ---------------------------------------------------------------------------
def _make_kernel(batch, geo):
    n_layers = len(geo)
    n_bn = sum(1 for g in geo if g["bn"])

    def kernel(*refs):
        n_in = 1 + n_layers + 2 * n_bn
        x_ref = refs[0]
        w_refs = refs[1:1 + n_layers]
        gb_flat = refs[1 + n_layers:n_in]
        out_ref = refs[n_in]
        act_refs = refs[n_in + 1:]            # VMEM scratch, one per hidden layer

        gb_by_layer = {}
        k = 0
        for li, g in enumerate(geo):
            if g["bn"]:
                gb_by_layer[li] = (gb_flat[k], gb_flat[k + 1])
                k += 2

        src = x_ref
        for li, g in enumerate(geo):
            kh, sh = g["kh"], g["sh"]
            hp, ho = g["hp"], g["ho"]
            wo, cout = g["wo"], g["cout"]
            n_lanes = g["n_lanes"]
            w_ref = w_refs[li]

            # ---- H-direction taps via (strided) sublane reads ---------------
            # Rows i, i+sh, ..., i+(ho-1)*sh are obtained from ONE strided read
            # per stride-parity p = i % sh per image; each tap's rows are a
            # unit-stride slice of that parity block.  bf16 cast happens once
            # per block (MXU operands are bf16, f32 accumulation).
            n_par = min(sh, kh)
            taps_per_par = [len(range(p, kh, sh)) for p in range(n_par)]
            par_blocks = []                   # par_blocks[n][p]: (ho+T_p-1, K)
            for n in range(batch):
                base = n * hp
                blocks_n = []
                for p in range(n_par):
                    size = ho + taps_per_par[p] - 1
                    if sh > 1:
                        blk = src[pl.ds(base + p, size, stride=sh), :]
                    else:
                        blk = src[pl.ds(base + p, size), :]
                    blocks_n.append(blk.astype(jnp.bfloat16))
                par_blocks.append(blocks_n)

            # ---- convolution: one MXU matmul per tap, M = batch*ho ----------
            acc = None
            for i in range(kh):
                p, t = i % sh, i // sh
                parts = [par_blocks[n][p][t:t + ho, :] for n in range(batch)]
                rows = parts[0] if batch == 1 else jnp.concatenate(parts, axis=0)
                part = jnp.dot(rows, w_ref[i],
                               preferred_element_type=jnp.float32)
                acc = part if acc is None else acc + part
            y = acc                                   # (batch*ho, wo*cout) f32

            # ---- BatchNorm2d (training-mode batch stats), one scale+shift ----
            if g["bn"]:
                gamma_ref, beta_ref = gb_by_layer[li]
                count = float(batch * ho * wo)
                s1 = jnp.sum(y, axis=0, keepdims=True)        # (1, wo*cout)
                s2 = jnp.sum(y * y, axis=0, keepdims=True)
                # Per-channel fold of the wo lane groups on the MXU:
                # constant one-hot (wo*cout, cout); lane layout is channel-minor.
                r = jax.lax.broadcasted_iota(jnp.int32, (n_lanes, cout), 0)
                c = jax.lax.broadcasted_iota(jnp.int32, (n_lanes, cout), 1)
                fold = jnp.where(r % cout == c, 1.0, 0.0)
                ch = jnp.dot(jnp.concatenate([s1, s2], axis=0), fold,
                             preferred_element_type=jnp.float32)  # (2, cout)
                mean = ch[0:1, :] / count
                var = ch[1:2, :] / count - mean * mean           # biased var
                scale = gamma_ref[...] * jax.lax.rsqrt(var + BN_EPS)
                shift = beta_ref[...] - mean * scale
                y = (y * jnp.concatenate([scale] * wo, axis=1)
                     + jnp.concatenate([shift] * wo, axis=1))

            # ---- LeakyReLU(0.2) ----
            if g["act"]:
                y = jnp.where(y > 0, y, NEG_SLOPE * y)

            if li == n_layers - 1:
                # ---- Sigmoid: exp + approximate reciprocal (EUP) + store ----
                out_ref[...] = pl.reciprocal(1.0 + jnp.exp(-y), approx=True)
            else:
                # ---- write next layer's H-padded, W-unpadded VMEM plane ----
                nxt = geo[li + 1]
                ph_n, hp_n = nxt["ph"], nxt["hp"]
                dst = act_refs[li]
                zrow = (jnp.zeros((ph_n, n_lanes), jnp.float32)
                        if ph_n else None)
                for n in range(batch):
                    base = n * hp_n
                    if ph_n:
                        dst[pl.ds(base, ph_n), :] = zrow
                        dst[pl.ds(base + ph_n + ho, ph_n), :] = zrow
                    dst[pl.ds(base + ph_n, ho), :] = y[n * ho:(n + 1) * ho, :]
                src = dst

    return kernel


# ---------------------------------------------------------------------------
# Forward drivers
# ---------------------------------------------------------------------------
def discriminator_forward(x, params):
    """Pallas-backed forward of Discriminator. x: (N, C, H, W) float32 (NCHW)."""
    batch = x.shape[0]
    geo = compute_geometry(x.shape, [p["w"].shape for p in params])

    # Stored-plane lane widths (W pad folded into weights).  The layer-0 input
    # plane is lane-padded to a 128 multiple (weight K rows padded with zeros).
    k_stores = [(_round_up(g["k_lanes"], LANE) if li == 0 else g["k_lanes"])
                for li, g in enumerate(geo)]

    # Wrapper-side prep (a handful of tiny XLA ops): layout the input plane and
    # Toeplitz-expand the weights.  Everything else runs inside ONE kernel.
    g0 = geo[0]
    xt = jnp.transpose(x, (0, 2, 3, 1)).astype(jnp.float32)       # NHWC
    xt = jnp.pad(xt, ((0, 0), (g0["ph"], g0["ph"]), (0, 0), (0, 0)))
    x_plane = xt.reshape(batch * g0["hp"], g0["w_in"] * g0["cin"])
    if k_stores[0] > x_plane.shape[1]:
        x_plane = jnp.pad(x_plane, ((0, 0), (0, k_stores[0] - x_plane.shape[1])))

    inputs = [x_plane]
    inputs += [expand_weight(p["w"], g, ks)
               for p, g, ks in zip(params, geo, k_stores)]
    for p, g in zip(params, geo):
        if g["bn"]:
            inputs.append(p["gamma"].reshape(1, g["cout"]).astype(jnp.float32))
            inputs.append(p["beta"].reshape(1, g["cout"]).astype(jnp.float32))

    gl = geo[-1]
    out_shape = jax.ShapeDtypeStruct((batch * gl["ho"], gl["n_lanes"]),
                                     jnp.float32)
    # Scratch: layer (li+1)'s H-padded, W-unpadded, channels-last input plane.
    scratch_shapes = [
        pltpu.VMEM((batch * geo[li + 1]["hp"], k_stores[li + 1]), jnp.float32)
        for li in range(len(geo) - 1)
    ]

    y = pl.pallas_call(
        _make_kernel(batch, geo),
        out_shape=out_shape,
        grid_spec=pltpu.PrefetchScalarGridSpec(
            num_scalar_prefetch=0,
            grid=(1,),
            in_specs=[_full_block_spec(a.shape) for a in inputs],
            out_specs=_full_block_spec(out_shape.shape),
            scratch_shapes=scratch_shapes,
        ),
        compiler_params=pltpu.CompilerParams(
            dimension_semantics=("arbitrary",)),
    )(*inputs)

    # (N*Ho, Wo*Cout) channels-last -> NCHW
    return y.reshape(batch, gl["ho"], gl["wo"], gl["cout"]).transpose(0, 3, 1, 2)


def reference_forward(x, params):
    """Pure-JAX / XLA reference (f32, HIGHEST precision), for checking."""
    h = x
    for cfg, lp in zip(LAYER_CFGS, params):
        ph, pw = cfg["p"]
        y = jax.lax.conv_general_dilated(
            h, lp["w"], window_strides=cfg["s"], padding=((ph, ph), (pw, pw)),
            dimension_numbers=("NCHW", "OIHW", "NCHW"),
            precision=jax.lax.Precision.HIGHEST)
        if cfg["bn"]:
            mean = jnp.mean(y, axis=(0, 2, 3), keepdims=True)
            var = jnp.mean(jnp.square(y - mean), axis=(0, 2, 3), keepdims=True)
            y = (y - mean) * jax.lax.rsqrt(var + BN_EPS)
            y = y * lp["gamma"].reshape(1, -1, 1, 1) + lp["beta"].reshape(1, -1, 1, 1)
        if cfg["act"]:
            y = jnp.where(y > 0, y, NEG_SLOPE * y)
        h = y
    return jax.nn.sigmoid(h)


def init_params(key, ndf):
    chans = [(1, ndf), (ndf, ndf * 2), (ndf * 2, ndf * 4),
             (ndf * 4, ndf * 8), (ndf * 8, 1)]
    params = []
    for cfg, (cin, cout) in zip(LAYER_CFGS, chans):
        kh, kw = cfg["k"]
        key, kw_, kg, kb = jax.random.split(key, 4)
        layer = {"w": 0.1 * jax.random.normal(kw_, (cout, cin, kh, kw), jnp.float32)}
        if cfg["bn"]:
            layer["gamma"] = 1.0 + 0.1 * jax.random.normal(kg, (cout,), jnp.float32)
            layer["beta"] = 0.1 * jax.random.normal(kb, (cout,), jnp.float32)
        params.append(layer)
    return params


if __name__ == "__main__":
    ndf = 8
    key = jax.random.PRNGKey(0)
    kx, kp = jax.random.split(key)

    # Small but valid shape: (N=2, C=1, H=48, W=16) -> output (2, 1, 1, 4)
    x = jax.random.normal(kx, (2, 1, 48, 16), jnp.float32)
    params = init_params(kp, ndf)

    fwd = jax.jit(discriminator_forward)
    out = jax.block_until_ready(fwd(x, params))

    assert out.shape == (2, 1, 1, 4), out.shape
    assert bool(jnp.all(jnp.isfinite(out)))
    # Post-sigmoid range (tiny slack: the reciprocal uses the EUP approximation).
    assert bool(jnp.all((out >= -1e-3) & (out <= 1.0 + 1e-3)))

    ref = jax.block_until_ready(reference_forward(x, params))
    err = float(jnp.max(jnp.abs(out - ref)))
    # Kernel uses bf16 MXU operands (f32 accumulation); reference is f32 HIGHEST.
    assert err < 3e-2, err

    print("KERNEL_OK")
</pallas_src>

<mosaic_0001>
module attributes {stable_mosaic.version = 11 : i64} {
  func.func @kernel(%arg0: i32, %arg1: memref<100x128xf32, #tpu.memory_space<vmem>>, %arg2: memref<4x128x128xbf16, #tpu.memory_space<vmem>>, %arg3: memref<4x128x128xbf16, #tpu.memory_space<vmem>>, %arg4: memref<4x128x128xbf16, #tpu.memory_space<vmem>>, %arg5: memref<4x128x256xbf16, #tpu.memory_space<vmem>>, %arg6: memref<3x256x4xbf16, #tpu.memory_space<vmem>>, %arg7: memref<1x16xf32, #tpu.memory_space<vmem>>, %arg8: memref<1x16xf32, #tpu.memory_space<vmem>>, %arg9: memref<1x32xf32, #tpu.memory_space<vmem>>, %arg10: memref<1x32xf32, #tpu.memory_space<vmem>>, %arg11: memref<1x64xf32, #tpu.memory_space<vmem>>, %arg12: memref<1x64xf32, #tpu.memory_space<vmem>>, %arg13: memref<2x4xf32, #tpu.memory_space<vmem>>, %arg14: memref<52x128xf32, #tpu.memory_space<vmem>>, %arg15: memref<28x128xf32, #tpu.memory_space<vmem>>, %arg16: memref<16x128xf32, #tpu.memory_space<vmem>>, %arg17: memref<6x256xf32, #tpu.memory_space<vmem>>) attributes {dimension_semantics = [#tpu.dimension_semantics<arbitrary>], iteration_bounds = array<i64: 1>, scalar_prefetch = 0 : i64, scratch_operands = 4 : i64, tpu.core_type = #tpu.core_type<tc>, window_params = [{pipeline_mode = #tpu.pipeline_mode<synchronous>, transform_indices = @transform_0, window_bounds = array<i64: 100, 128>}, {pipeline_mode = #tpu.pipeline_mode<synchronous>, transform_indices = @transform_1, window_bounds = array<i64: 4, 128, 128>}, {pipeline_mode = #tpu.pipeline_mode<synchronous>, transform_indices = @transform_2, window_bounds = array<i64: 4, 128, 128>}, {pipeline_mode = #tpu.pipeline_mode<synchronous>, transform_indices = @transform_3, window_bounds = array<i64: 4, 128, 128>}, {pipeline_mode = #tpu.pipeline_mode<synchronous>, transform_indices = @transform_4, window_bounds = array<i64: 4, 128, 256>}, {pipeline_mode = #tpu.pipeline_mode<synchronous>, transform_indices = @transform_5, window_bounds = array<i64: 3, 256, 4>}, {pipeline_mode = #tpu.pipeline_mode<synchronous>, transform_indices = @transform_6, window_bounds = array<i64: 1, 16>}, {pipeline_mode = #tpu.pipeline_mode<synchronous>, transform_indices = @transform_7, window_bounds = array<i64: 1, 16>}, {pipeline_mode = #tpu.pipeline_mode<synchronous>, transform_indices = @transform_8, window_bounds = array<i64: 1, 32>}, {pipeline_mode = #tpu.pipeline_mode<synchronous>, transform_indices = @transform_9, window_bounds = array<i64: 1, 32>}, {pipeline_mode = #tpu.pipeline_mode<synchronous>, transform_indices = @transform_10, window_bounds = array<i64: 1, 64>}, {pipeline_mode = #tpu.pipeline_mode<synchronous>, transform_indices = @transform_11, window_bounds = array<i64: 1, 64>}, {pipeline_mode = #tpu.pipeline_mode<synchronous>, transform_indices = @transform_12, window_bounds = array<i64: 2, 4>}]} {
    %c0 = arith.constant 0 : index
    %c0_0 = arith.constant 0 : index
    %0 = tpu.strided_load %arg1[%c0, %c0_0] {strides = array<i32: 2, 1>} : memref<100x128xf32, #tpu.memory_space<vmem>>, vector<25x128xf32>
    %1 = arith.truncf %0 : vector<25x128xf32> to vector<25x128xbf16>
    %c1 = arith.constant 1 : index
    %c0_1 = arith.constant 0 : index
    %2 = tpu.strided_load %arg1[%c1, %c0_1] {strides = array<i32: 2, 1>} : memref<100x128xf32, #tpu.memory_space<vmem>>, vector<25x128xf32>
    %3 = arith.truncf %2 : vector<25x128xf32> to vector<25x128xbf16>
    %c50 = arith.constant 50 : index
    %c0_2 = arith.constant 0 : index
    %4 = tpu.strided_load %arg1[%c50, %c0_2] {strides = array<i32: 2, 1>} : memref<100x128xf32, #tpu.memory_space<vmem>>, vector<25x128xf32>
    %5 = arith.truncf %4 : vector<25x128xf32> to vector<25x128xbf16>
    %c51 = arith.constant 51 : index
    %c0_3 = arith.constant 0 : index
    %6 = tpu.strided_load %arg1[%c51, %c0_3] {strides = array<i32: 2, 1>} : memref<100x128xf32, #tpu.memory_space<vmem>>, vector<25x128xf32>
    %7 = arith.truncf %6 : vector<25x128xf32> to vector<25x128xbf16>
    %8 = vector.extract_strided_slice %1 {offsets = [0, 0], sizes = [24, 128], strides = [1, 1]} : vector<25x128xbf16> to vector<24x128xbf16>
    %9 = vector.extract_strided_slice %5 {offsets = [0, 0], sizes = [24, 128], strides = [1, 1]} : vector<25x128xbf16> to vector<24x128xbf16>
    %10 = tpu.concatenate %8, %9 in 0 : vector<24x128xbf16>, vector<24x128xbf16> -> vector<48x128xbf16>
    %c0_4 = arith.constant 0 : index
    %c0_5 = arith.constant 0 : index
    %c0_6 = arith.constant 0 : index
    %11 = vector.load %arg2[%c0_4, %c0_5, %c0_6] : memref<4x128x128xbf16, #tpu.memory_space<vmem>>, vector<1x128x128xbf16>
    %12 = vector.shape_cast %11 : vector<1x128x128xbf16> to vector<128x128xbf16>
    %cst = arith.constant dense<0.000000e+00> : vector<48x128xf32>
    %13 = tpu.matmul %10, %12, %cst {dimension_numbers = #tpu.dot_dimension_numbers<[1], [0], [0], [1], [0, 0, 1, 1], [], []>} : vector<48x128xbf16>, vector<128x128xbf16>, vector<48x128xf32> -> vector<48x128xf32>
    %14 = vector.extract_strided_slice %3 {offsets = [0, 0], sizes = [24, 128], strides = [1, 1]} : vector<25x128xbf16> to vector<24x128xbf16>
    %15 = vector.extract_strided_slice %7 {offsets = [0, 0], sizes = [24, 128], strides = [1, 1]} : vector<25x128xbf16> to vector<24x128xbf16>
    %16 = tpu.concatenate %14, %15 in 0 : vector<24x128xbf16>, vector<24x128xbf16> -> vector<48x128xbf16>
    %c1_7 = arith.constant 1 : index
    %c0_8 = arith.constant 0 : index
    %c0_9 = arith.constant 0 : index
    %17 = vector.load %arg2[%c1_7, %c0_8, %c0_9] : memref<4x128x128xbf16, #tpu.memory_space<vmem>>, vector<1x128x128xbf16>
    %18 = vector.shape_cast %17 : vector<1x128x128xbf16> to vector<128x128xbf16>
    %cst_10 = arith.constant dense<0.000000e+00> : vector<48x128xf32>
    %19 = tpu.matmul %16, %18, %cst_10 {dimension_numbers = #tpu.dot_dimension_numbers<[1], [0], [0], [1], [0, 0, 1, 1], [], []>} : vector<48x128xbf16>, vector<128x128xbf16>, vector<48x128xf32> -> vector<48x128xf32>
    %20 = arith.addf %13, %19 : vector<48x128xf32>
    %21 = vector.extract_strided_slice %1 {offsets = [1, 0], sizes = [24, 128], strides = [1, 1]} : vector<25x128xbf16> to vector<24x128xbf16>
    %22 = vector.extract_strided_slice %5 {offsets = [1, 0], sizes = [24, 128], strides = [1, 1]} : vector<25x128xbf16> to vector<24x128xbf16>
    %23 = tpu.concatenate %21, %22 in 0 : vector<24x128xbf16>, vector<24x128xbf16> -> vector<48x128xbf16>
    %c2 = arith.constant 2 : index
    %c0_11 = arith.constant 0 : index
    %c0_12 = arith.constant 0 : index
    %24 = vector.load %arg2[%c2, %c0_11, %c0_12] : memref<4x128x128xbf16, #tpu.memory_space<vmem>>, vector<1x128x128xbf16>
    %25 = vector.shape_cast %24 : vector<1x128x128xbf16> to vector<128x128xbf16>
    %cst_13 = arith.constant dense<0.000000e+00> : vector<48x128xf32>
    %26 = tpu.matmul %23, %25, %cst_13 {dimension_numbers = #tpu.dot_dimension_numbers<[1], [0], [0], [1], [0, 0, 1, 1], [], []>} : vector<48x128xbf16>, vector<128x128xbf16>, vector<48x128xf32> -> vector<48x128xf32>
    %27 = arith.addf %20, %26 : vector<48x128xf32>
    %28 = vector.extract_strided_slice %3 {offsets = [1, 0], sizes = [24, 128], strides = [1, 1]} : vector<25x128xbf16> to vector<24x128xbf16>
    %29 = vector.extract_strided_slice %7 {offsets = [1, 0], sizes = [24, 128], strides = [1, 1]} : vector<25x128xbf16> to vector<24x128xbf16>
    %30 = tpu.concatenate %28, %29 in 0 : vector<24x128xbf16>, vector<24x128xbf16> -> vector<48x128xbf16>
    %c3 = arith.constant 3 : index
    %c0_14 = arith.constant 0 : index
    %c0_15 = arith.constant 0 : index
    %31 = vector.load %arg2[%c3, %c0_14, %c0_15] : memref<4x128x128xbf16, #tpu.memory_space<vmem>>, vector<1x128x128xbf16>
    %32 = vector.shape_cast %31 : vector<1x128x128xbf16> to vector<128x128xbf16>
    %cst_16 = arith.constant dense<0.000000e+00> : vector<48x128xf32>
    %33 = tpu.matmul %30, %32, %cst_16 {dimension_numbers = #tpu.dot_dimension_numbers<[1], [0], [0], [1], [0, 0, 1, 1], [], []>} : vector<48x128xbf16>, vector<128x128xbf16>, vector<48x128xf32> -> vector<48x128xf32>
    %34 = arith.addf %27, %33 : vector<48x128xf32>
    %cst_17 = arith.constant 0.000000e+00 : f32
    %35 = vector.broadcast %cst_17 : f32 to vector<48x128xf32>
    %36 = arith.cmpf ogt, %34, %35 : vector<48x128xf32>
    %cst_18 = arith.constant 2.000000e-01 : f32
    %37 = vector.broadcast %cst_18 : f32 to vector<48x128xf32>
    %38 = arith.mulf %37, %34 : vector<48x128xf32>
    %39 = arith.select %36, %34, %38 : vector<48x128xi1>, vector<48x128xf32>
    %cst_19 = arith.constant 0.000000e+00 : f32
    %40 = vector.broadcast %cst_19 : f32 to vector<1x128xf32>
    %c0_20 = arith.constant 0 : index
    %c0_21 = arith.constant 0 : index
    %41 = vector.load %arg14[%c0_20, %c0_21] : memref<52x128xf32, #tpu.memory_space<vmem>>, vector<1x128xf32>
    tpu.vector_store %arg14[%c0_20, %c0_21], %40 {strides = array<i32>} : memref<52x128xf32, #tpu.memory_space<vmem>>, vector<1x128xf32>,
    %c25 = arith.constant 25 : index
    %c0_22 = arith.constant 0 : index
    %42 = vector.load %arg14[%c25, %c0_22] : memref<52x128xf32, #tpu.memory_space<vmem>>, vector<1x128xf32>
    tpu.vector_store %arg14[%c25, %c0_22], %40 {strides = array<i32>} : memref<52x128xf32, #tpu.memory_space<vmem>>, vector<1x128xf32>,
    %43 = vector.extract_strided_slice %39 {offsets = [0, 0], sizes = [24, 128], strides = [1, 1]} : vector<48x128xf32> to vector<24x128xf32>
    %c1_23 = arith.constant 1 : index
    %c0_24 = arith.constant 0 : index
    %44 = vector.load %arg14[%c1_23, %c0_24] : memref<52x128xf32, #tpu.memory_space<vmem>>, vector<24x128xf32>
    tpu.vector_store %arg14[%c1_23, %c0_24], %43 {strides = array<i32>} : memref<52x128xf32, #tpu.memory_space<vmem>>, vector<24x128xf32>,
    %c26 = arith.constant 26 : index
    %c0_25 = arith.constant 0 : index
    %45 = vector.load %arg14[%c26, %c0_25] : memref<52x128xf32, #tpu.memory_space<vmem>>, vector<1x128xf32>
    tpu.vector_store %arg14[%c26, %c0_25], %40 {strides = array<i32>} : memref<52x128xf32, #tpu.memory_space<vmem>>, vector<1x128xf32>,
    %c51_26 = arith.constant 51 : index
    %c0_27 = arith.constant 0 : index
    %46 = vector.load %arg14[%c51_26, %c0_27] : memref<52x128xf32, #tpu.memory_space<vmem>>, vector<1x128xf32>
    tpu.vector_store %arg14[%c51_26, %c0_27], %40 {strides = array<i32>} : memref<52x128xf32, #tpu.memory_space<vmem>>, vector<1x128xf32>,
    %47 = vector.extract_strided_slice %39 {offsets = [24, 0], sizes = [24, 128], strides = [1, 1]} : vector<48x128xf32> to vector<24x128xf32>
    %c27 = arith.constant 27 : index
    %c0_28 = arith.constant 0 : index
    %48 = vector.load %arg14[%c27, %c0_28] : memref<52x128xf32, #tpu.memory_space<vmem>>, vector<24x128xf32>
    tpu.vector_store %arg14[%c27, %c0_28], %47 {strides = array<i32>} : memref<52x128xf32, #tpu.memory_space<vmem>>, vector<24x128xf32>,
    %c0_29 = arith.constant 0 : index
    %c0_30 = arith.constant 0 : index
    %49 = tpu.strided_load %arg14[%c0_29, %c0_30] {strides = array<i32: 2, 1>} : memref<52x128xf32, #tpu.memory_space<vmem>>, vector<13x128xf32>
    %50 = arith.truncf %49 : vector<13x128xf32> to vector<13x128xbf16>
    %c1_31 = arith.constant 1 : index
    %c0_32 = arith.constant 0 : index
    %51 = tpu.strided_load %arg14[%c1_31, %c0_32] {strides = array<i32: 2, 1>} : memref<52x128xf32, #tpu.memory_space<vmem>>, vector<13x128xf32>
    %52 = arith.truncf %51 : vector<13x128xf32> to vector<13x128xbf16>
    %c26_33 = arith.constant 26 : index
    %c0_34 = arith.constant 0 : index
    %53 = tpu.strided_load %arg14[%c26_33, %c0_34] {strides = array<i32: 2, 1>} : memref<52x128xf32, #tpu.memory_space<vmem>>, vector<13x128xf32>
    %54 = arith.truncf %53 : vector<13x128xf32> to vector<13x128xbf16>
    %c27_35 = arith.constant 27 : index
    %c0_36 = arith.constant 0 : index
    %55 = tpu.strided_load %arg14[%c27_35, %c0_36] {strides = array<i32: 2, 1>} : memref<52x128xf32, #tpu.memory_space<vmem>>, vector<13x128xf32>
    %56 = arith.truncf %55 : vector<13x128xf32> to vector<13x128xbf16>
    %57 = vector.extract_strided_slice %50 {offsets = [0, 0], sizes = [12, 128], strides = [1, 1]} : vector<13x128xbf16> to vector<12x128xbf16>
    %58 = vector.extract_strided_slice %54 {offsets = [0, 0], sizes = [12, 128], strides = [1, 1]} : vector<13x128xbf16> to vector<12x128xbf16>
    %59 = tpu.concatenate %57, %58 in 0 : vector<12x128xbf16>, vector<12x128xbf16> -> vector<24x128xbf16>
    %c0_37 = arith.constant 0 : index
    %c0_38 = arith.constant 0 : index
    %c0_39 = arith.constant 0 : index
    %60 = vector.load %arg3[%c0_37, %c0_38, %c0_39] : memref<4x128x128xbf16, #tpu.memory_space<vmem>>, vector<1x128x128xbf16>
    %61 = vector.shape_cast %60 : vector<1x128x128xbf16> to vector<128x128xbf16>
    %cst_40 = arith.constant dense<0.000000e+00> : vector<24x128xf32>
    %62 = tpu.matmul %59, %61, %cst_40 {dimension_numbers = #tpu.dot_dimension_numbers<[1], [0], [0], [1], [0, 0, 1, 1], [], []>} : vector<24x128xbf16>, vector<128x128xbf16>, vector<24x128xf32> -> vector<24x128xf32>
    %63 = vector.extract_strided_slice %52 {offsets = [0, 0], sizes = [12, 128], strides = [1, 1]} : vector<13x128xbf16> to vector<12x128xbf16>
    %64 = vector.extract_strided_slice %56 {offsets = [0, 0], sizes = [12, 128], strides = [1, 1]} : vector<13x128xbf16> to vector<12x128xbf16>
    %65 = tpu.concatenate %63, %64 in 0 : vector<12x128xbf16>, vector<12x128xbf16> -> vector<24x128xbf16>
    %c1_41 = arith.constant 1 : index
    %c0_42 = arith.constant 0 : index
    %c0_43 = arith.constant 0 : index
    %66 = vector.load %arg3[%c1_41, %c0_42, %c0_43] : memref<4x128x128xbf16, #tpu.memory_space<vmem>>, vector<1x128x128xbf16>
    %67 = vector.shape_cast %66 : vector<1x128x128xbf16> to vector<128x128xbf16>
    %cst_44 = arith.constant dense<0.000000e+00> : vector<24x128xf32>
    %68 = tpu.matmul %65, %67, %cst_44 {dimension_numbers = #tpu.dot_dimension_numbers<[1], [0], [0], [1], [0, 0, 1, 1], [], []>} : vector<24x128xbf16>, vector<128x128xbf16>, vector<24x128xf32> -> vector<24x128xf32>
    %69 = arith.addf %62, %68 : vector<24x128xf32>
    %70 = vector.extract_strided_slice %50 {offsets = [1, 0], sizes = [12, 128], strides = [1, 1]} : vector<13x128xbf16> to vector<12x128xbf16>
    %71 = vector.extract_strided_slice %54 {offsets = [1, 0], sizes = [12, 128], strides = [1, 1]} : vector<13x128xbf16> to vector<12x128xbf16>
    %72 = tpu.concatenate %70, %71 in 0 : vector<12x128xbf16>, vector<12x128xbf16> -> vector<24x128xbf16>
    %c2_45 = arith.constant 2 : index
    %c0_46 = arith.constant 0 : index
    %c0_47 = arith.constant 0 : index
    %73 = vector.load %arg3[%c2_45, %c0_46, %c0_47] : memref<4x128x128xbf16, #tpu.memory_space<vmem>>, vector<1x128x128xbf16>
    %74 = vector.shape_cast %73 : vector<1x128x128xbf16> to vector<128x128xbf16>
    %cst_48 = arith.constant dense<0.000000e+00> : vector<24x128xf32>
    %75 = tpu.matmul %72, %74, %cst_48 {dimension_numbers = #tpu.dot_dimension_numbers<[1], [0], [0], [1], [0, 0, 1, 1], [], []>} : vector<24x128xbf16>, vector<128x128xbf16>, vector<24x128xf32> -> vector<24x128xf32>
    %76 = arith.addf %69, %75 : vector<24x128xf32>
    %77 = vector.extract_strided_slice %52 {offsets = [1, 0], sizes = [12, 128], strides = [1, 1]} : vector<13x128xbf16> to vector<12x128xbf16>
    %78 = vector.extract_strided_slice %56 {offsets = [1, 0], sizes = [12, 128], strides = [1, 1]} : vector<13x128xbf16> to vector<12x128xbf16>
    %79 = tpu.concatenate %77, %78 in 0 : vector<12x128xbf16>, vector<12x128xbf16> -> vector<24x128xbf16>
    %c3_49 = arith.constant 3 : index
    %c0_50 = arith.constant 0 : index
    %c0_51 = arith.constant 0 : index
    %80 = vector.load %arg3[%c3_49, %c0_50, %c0_51] : memref<4x128x128xbf16, #tpu.memory_space<vmem>>, vector<1x128x128xbf16>
    %81 = vector.shape_cast %80 : vector<1x128x128xbf16> to vector<128x128xbf16>
    %cst_52 = arith.constant dense<0.000000e+00> : vector<24x128xf32>
    %82 = tpu.matmul %79, %81, %cst_52 {dimension_numbers = #tpu.dot_dimension_numbers<[1], [0], [0], [1], [0, 0, 1, 1], [], []>} : vector<24x128xbf16>, vector<128x128xbf16>, vector<24x128xf32> -> vector<24x128xf32>
    %83 = arith.addf %76, %82 : vector<24x128xf32>
    %cst_53 = arith.constant dense<0.000000e+00> : vector<128xf32>
    %84 = vector.multi_reduction <add>, %83, %cst_53 [0] : vector<24x128xf32> to vector<128xf32>
    %85 = vector.shape_cast %84 : vector<128xf32> to vector<1x128xf32>
    %86 = arith.mulf %83, %83 : vector<24x128xf32>
    %cst_54 = arith.constant dense<0.000000e+00> : vector<128xf32>
    %87 = vector.multi_reduction <add>, %86, %cst_54 [0] : vector<24x128xf32> to vector<128xf32>
    %88 = vector.shape_cast %87 : vector<128xf32> to vector<1x128xf32>
    %89 = tpu.iota {dimensions = array<i32: 0>} : vector<128x16xi32>
    %90 = tpu.iota {dimensions = array<i32: 1>} : vector<128x16xi32>
    %c16_i32 = arith.constant 16 : i32
    %c0_i32 = arith.constant 0 : i32
    %91 = arith.cmpi eq, %c16_i32, %c0_i32 : i32
    %c1_i32 = arith.constant 1 : i32
    %92 = arith.select %91, %c1_i32, %c16_i32 : i32
    %93 = vector.broadcast %92 : i32 to vector<128x16xi32>
    %94 = arith.remsi %89, %93 : vector<128x16xi32>
    %c0_i32_55 = arith.constant 0 : i32
    %95 = vector.broadcast %c0_i32_55 : i32 to vector<128x16xi32>
    %96 = arith.cmpi ne, %94, %95 : vector<128x16xi32>
    %c0_i32_56 = arith.constant 0 : i32
    %97 = vector.broadcast %c0_i32_56 : i32 to vector<128x16xi32>
    %98 = arith.cmpi slt, %94, %97 : vector<128x16xi32>
    %c0_i32_57 = arith.constant 0 : i32
    %99 = arith.cmpi slt, %92, %c0_i32_57 : i32
    %100 = vector.broadcast %99 : i1 to vector<128x16xi1>
    %101 = vector.broadcast %100 : vector<128x16xi1> to vector<128x16xi1>
    %102 = arith.xori %98, %101 : vector<128x16xi1>
    %103 = arith.andi %102, %96 : vector<128x16xi1>
    %104 = vector.broadcast %92 : i32 to vector<128x16xi32>
    %105 = arith.addi %94, %104 : vector<128x16xi32>
    %106 = arith.select %103, %105, %94 : vector<128x16xi1>, vector<128x16xi32>
    %107 = arith.cmpi eq, %106, %90 : vector<128x16xi32>
    %cst_58 = arith.constant 1.000000e+00 : f32
    %cst_59 = arith.constant 0.000000e+00 : f32
    %108 = vector.broadcast %cst_58 : f32 to vector<128x16xf32>
    %109 = vector.broadcast %cst_59 : f32 to vector<128x16xf32>
    %110 = arith.select %107, %108, %109 : vector<128x16xi1>, vector<128x16xf32>
    %111 = tpu.concatenate %85, %88 in 0 : vector<1x128xf32>, vector<1x128xf32> -> vector<2x128xf32>
    %cst_60 = arith.constant dense<0.000000e+00> : vector<2x16xf32>
    %112 = tpu.matmul %111, %110, %cst_60 {dimension_numbers = #tpu.dot_dimension_numbers<[1], [0], [0], [1], [0, 0, 1, 1], [], []>} : vector<2x128xf32>, vector<128x16xf32>, vector<2x16xf32> -> vector<2x16xf32>
    %113 = vector.extract_strided_slice %112 {offsets = [0, 0], sizes = [1, 16], strides = [1, 1]} : vector<2x16xf32> to vector<1x16xf32>
    %cst_61 = arith.constant 1.920000e+02 : f32
    %114 = vector.broadcast %cst_61 : f32 to vector<1x16xf32>
    %115 = arith.divf %113, %114 : vector<1x16xf32>
    %116 = vector.extract_strided_slice %112 {offsets = [1, 0], sizes = [1, 16], strides = [1, 1]} : vector<2x16xf32> to vector<1x16xf32>
    %cst_62 = arith.constant 1.920000e+02 : f32
    %117 = vector.broadcast %cst_62 : f32 to vector<1x16xf32>
    %118 = arith.divf %116, %117 : vector<1x16xf32>
    %119 = arith.mulf %115, %115 : vector<1x16xf32>
    %120 = arith.subf %118, %119 : vector<1x16xf32>
    %c0_63 = arith.constant 0 : index
    %c0_64 = arith.constant 0 : index
    %121 = vector.load %arg7[%c0_63, %c0_64] : memref<1x16xf32, #tpu.memory_space<vmem>>, vector<1x16xf32>
    %cst_65 = arith.constant 9.99999974E-6 : f32
    %122 = vector.broadcast %cst_65 : f32 to vector<1x16xf32>
    %123 = arith.addf %120, %122 : vector<1x16xf32>
    %124 = math.rsqrt %123 : vector<1x16xf32>
    %125 = arith.mulf %121, %124 : vector<1x16xf32>
    %c0_66 = arith.constant 0 : index
    %c0_67 = arith.constant 0 : index
    %126 = vector.load %arg8[%c0_66, %c0_67] : memref<1x16xf32, #tpu.memory_space<vmem>>, vector<1x16xf32>
    %127 = arith.mulf %115, %125 : vector<1x16xf32>
    %128 = arith.subf %126, %127 : vector<1x16xf32>
    %129 = tpu.concatenate %125, %125, %125, %125, %125, %125, %125, %125 in 1 : vector<1x16xf32>, vector<1x16xf32>, vector<1x16xf32>, vector<1x16xf32>, vector<1x16xf32>, vector<1x16xf32>, vector<1x16xf32>, vector<1x16xf32> -> vector<1x128xf32>
    %130 = vector.broadcast %129 : vector<1x128xf32> to vector<24x128xf32>
    %131 = arith.mulf %83, %130 : vector<24x128xf32>
    %132 = tpu.concatenate %128, %128, %128, %128, %128, %128, %128, %128 in 1 : vector<1x16xf32>, vector<1x16xf32>, vector<1x16xf32>, vector<1x16xf32>, vector<1x16xf32>, vector<1x16xf32>, vector<1x16xf32>, vector<1x16xf32> -> vector<1x128xf32>
    %133 = vector.broadcast %132 : vector<1x128xf32> to vector<24x128xf32>
    %134 = arith.addf %131, %133 : vector<24x128xf32>
    %cst_68 = arith.constant 0.000000e+00 : f32
    %135 = vector.broadcast %cst_68 : f32 to vector<24x128xf32>
    %136 = arith.cmpf ogt, %134, %135 : vector<24x128xf32>
    %cst_69 = arith.constant 2.000000e-01 : f32
    %137 = vector.broadcast %cst_69 : f32 to vector<24x128xf32>
    %138 = arith.mulf %137, %134 : vector<24x128xf32>
    %139 = arith.select %136, %134, %138 : vector<24x128xi1>, vector<24x128xf32>
    %cst_70 = arith.constant 0.000000e+00 : f32
    %140 = vector.broadcast %cst_70 : f32 to vector<1x128xf32>
    %c0_71 = arith.constant 0 : index
    %c0_72 = arith.constant 0 : index
    %141 = vector.load %arg15[%c0_71, %c0_72] : memref<28x128xf32, #tpu.memory_space<vmem>>, vector<1x128xf32>
    tpu.vector_store %arg15[%c0_71, %c0_72], %140 {strides = array<i32>} : memref<28x128xf32, #tpu.memory_space<vmem>>, vector<1x128xf32>,
    %c13 = arith.constant 13 : index
    %c0_73 = arith.constant 0 : index
    %142 = vector.load %arg15[%c13, %c0_73] : memref<28x128xf32, #tpu.memory_space<vmem>>, vector<1x128xf32>
    tpu.vector_store %arg15[%c13, %c0_73], %140 {strides = array<i32>} : memref<28x128xf32, #tpu.memory_space<vmem>>, vector<1x128xf32>,
    %143 = vector.extract_strided_slice %139 {offsets = [0, 0], sizes = [12, 128], strides = [1, 1]} : vector<24x128xf32> to vector<12x128xf32>
    %c1_74 = arith.constant 1 : index
    %c0_75 = arith.constant 0 : index
    %144 = vector.load %arg15[%c1_74, %c0_75] : memref<28x128xf32, #tpu.memory_space<vmem>>, vector<12x128xf32>
    tpu.vector_store %arg15[%c1_74, %c0_75], %143 {strides = array<i32>} : memref<28x128xf32, #tpu.memory_space<vmem>>, vector<12x128xf32>,
    %c14 = arith.constant 14 : index
    %c0_76 = arith.constant 0 : index
    %145 = vector.load %arg15[%c14, %c0_76] : memref<28x128xf32, #tpu.memory_space<vmem>>, vector<1x128xf32>
    tpu.vector_store %arg15[%c14, %c0_76], %140 {strides = array<i32>} : memref<28x128xf32, #tpu.memory_space<vmem>>, vector<1x128xf32>,
    %c27_77 = arith.constant 27 : index
    %c0_78 = arith.constant 0 : index
    %146 = vector.load %arg15[%c27_77, %c0_78] : memref<28x128xf32, #tpu.memory_space<vmem>>, vector<1x128xf32>
    tpu.vector_store %arg15[%c27_77, %c0_78], %140 {strides = array<i32>} : memref<28x128xf32, #tpu.memory_space<vmem>>, vector<1x128xf32>,
    %147 = vector.extract_strided_slice %139 {offsets = [12, 0], sizes = [12, 128], strides = [1, 1]} : vector<24x128xf32> to vector<12x128xf32>
    %c15 = arith.constant 15 : index
    %c0_79 = arith.constant 0 : index
    %148 = vector.load %arg15[%c15, %c0_79] : memref<28x128xf32, #tpu.memory_space<vmem>>, vector<12x128xf32>
    tpu.vector_store %arg15[%c15, %c0_79], %147 {strides = array<i32>} : memref<28x128xf32, #tpu.memory_space<vmem>>, vector<12x128xf32>,
    %c0_80 = arith.constant 0 : index
    %c0_81 = arith.constant 0 : index
    %149 = tpu.strided_load %arg15[%c0_80, %c0_81] {strides = array<i32: 2, 1>} : memref<28x128xf32, #tpu.memory_space<vmem>>, vector<7x128xf32>
    %150 = arith.truncf %149 : vector<7x128xf32> to vector<7x128xbf16>
    %c1_82 = arith.constant 1 : index
    %c0_83 = arith.constant 0 : index
    %151 = tpu.strided_load %arg15[%c1_82, %c0_83] {strides = array<i32: 2, 1>} : memref<28x128xf32, #tpu.memory_space<vmem>>, vector<7x128xf32>
    %152 = arith.truncf %151 : vector<7x128xf32> to vector<7x128xbf16>
    %c14_84 = arith.constant 14 : index
    %c0_85 = arith.constant 0 : index
    %153 = tpu.strided_load %arg15[%c14_84, %c0_85] {strides = array<i32: 2, 1>} : memref<28x128xf32, #tpu.memory_space<vmem>>, vector<7x128xf32>
    %154 = arith.truncf %153 : vector<7x128xf32> to vector<7x128xbf16>
    %c15_86 = arith.constant 15 : index
    %c0_87 = arith.constant 0 : index
    %155 = tpu.strided_load %arg15[%c15_86, %c0_87] {strides = array<i32: 2, 1>} : memref<28x128xf32, #tpu.memory_space<vmem>>, vector<7x128xf32>
    %156 = arith.truncf %155 : vector<7x128xf32> to vector<7x128xbf16>
    %157 = vector.extract_strided_slice %150 {offsets = [0, 0], sizes = [6, 128], strides = [1, 1]} : vector<7x128xbf16> to vector<6x128xbf16>
    %158 = vector.extract_strided_slice %154 {offsets = [0, 0], sizes = [6, 128], strides = [1, 1]} : vector<7x128xbf16> to vector<6x128xbf16>
    %159 = tpu.concatenate %157, %158 in 0 : vector<6x128xbf16>, vector<6x128xbf16> -> vector<12x128xbf16>
    %c0_88 = arith.constant 0 : index
    %c0_89 = arith.constant 0 : index
    %c0_90 = arith.constant 0 : index
    %160 = vector.load %arg4[%c0_88, %c0_89, %c0_90] : memref<4x128x128xbf16, #tpu.memory_space<vmem>>, vector<1x128x128xbf16>
    %161 = vector.shape_cast %160 : vector<1x128x128xbf16> to vector<128x128xbf16>
    %cst_91 = arith.constant dense<0.000000e+00> : vector<12x128xf32>
    %162 = tpu.matmul %159, %161, %cst_91 {dimension_numbers = #tpu.dot_dimension_numbers<[1], [0], [0], [1], [0, 0, 1, 1], [], []>} : vector<12x128xbf16>, vector<128x128xbf16>, vector<12x128xf32> -> vector<12x128xf32>
    %163 = vector.extract_strided_slice %152 {offsets = [0, 0], sizes = [6, 128], strides = [1, 1]} : vector<7x128xbf16> to vector<6x128xbf16>
    %164 = vector.extract_strided_slice %156 {offsets = [0, 0], sizes = [6, 128], strides = [1, 1]} : vector<7x128xbf16> to vector<6x128xbf16>
    %165 = tpu.concatenate %163, %164 in 0 : vector<6x128xbf16>, vector<6x128xbf16> -> vector<12x128xbf16>
    %c1_92 = arith.constant 1 : index
    %c0_93 = arith.constant 0 : index
    %c0_94 = arith.constant 0 : index
    %166 = vector.load %arg4[%c1_92, %c0_93, %c0_94] : memref<4x128x128xbf16, #tpu.memory_space<vmem>>, vector<1x128x128xbf16>
    %167 = vector.shape_cast %166 : vector<1x128x128xbf16> to vector<128x128xbf16>
    %cst_95 = arith.constant dense<0.000000e+00> : vector<12x128xf32>
    %168 = tpu.matmul %165, %167, %cst_95 {dimension_numbers = #tpu.dot_dimension_numbers<[1], [0], [0], [1], [0, 0, 1, 1], [], []>} : vector<12x128xbf16>, vector<128x128xbf16>, vector<12x128xf32> -> vector<12x128xf32>
    %169 = arith.addf %162, %168 : vector<12x128xf32>
    %170 = vector.extract_strided_slice %150 {offsets = [1, 0], sizes = [6, 128], strides = [1, 1]} : vector<7x128xbf16> to vector<6x128xbf16>
    %171 = vector.extract_strided_slice %154 {offsets = [1, 0], sizes = [6, 128], strides = [1, 1]} : vector<7x128xbf16> to vector<6x128xbf16>
    %172 = tpu.concatenate %170, %171 in 0 : vector<6x128xbf16>, vector<6x128xbf16> -> vector<12x128xbf16>
    %c2_96 = arith.constant 2 : index
    %c0_97 = arith.constant 0 : index
    %c0_98 = arith.constant 0 : index
    %173 = vector.load %arg4[%c2_96, %c0_97, %c0_98] : memref<4x128x128xbf16, #tpu.memory_space<vmem>>, vector<1x128x128xbf16>
    %174 = vector.shape_cast %173 : vector<1x128x128xbf16> to vector<128x128xbf16>
    %cst_99 = arith.constant dense<0.000000e+00> : vector<12x128xf32>
    %175 = tpu.matmul %172, %174, %cst_99 {dimension_numbers = #tpu.dot_dimension_numbers<[1], [0], [0], [1], [0, 0, 1, 1], [], []>} : vector<12x128xbf16>, vector<128x128xbf16>, vector<12x128xf32> -> vector<12x128xf32>
    %176 = arith.addf %169, %175 : vector<12x128xf32>
    %177 = vector.extract_strided_slice %152 {offsets = [1, 0], sizes = [6, 128], strides = [1, 1]} : vector<7x128xbf16> to vector<6x128xbf16>
    %178 = vector.extract_strided_slice %156 {offsets = [1, 0], sizes = [6, 128], strides = [1, 1]} : vector<7x128xbf16> to vector<6x128xbf16>
    %179 = tpu.concatenate %177, %178 in 0 : vector<6x128xbf16>, vector<6x128xbf16> -> vector<12x128xbf16>
    %c3_100 = arith.constant 3 : index
    %c0_101 = arith.constant 0 : index
    %c0_102 = arith.constant 0 : index
    %180 = vector.load %arg4[%c3_100, %c0_101, %c0_102] : memref<4x128x128xbf16, #tpu.memory_space<vmem>>, vector<1x128x128xbf16>
    %181 = vector.shape_cast %180 : vector<1x128x128xbf16> to vector<128x128xbf16>
    %cst_103 = arith.constant dense<0.000000e+00> : vector<12x128xf32>
    %182 = tpu.matmul %179, %181, %cst_103 {dimension_numbers = #tpu.dot_dimension_numbers<[1], [0], [0], [1], [0, 0, 1, 1], [], []>} : vector<12x128xbf16>, vector<128x128xbf16>, vector<12x128xf32> -> vector<12x128xf32>
    %183 = arith.addf %176, %182 : vector<12x128xf32>
    %cst_104 = arith.constant dense<0.000000e+00> : vector<128xf32>
    %184 = vector.multi_reduction <add>, %183, %cst_104 [0] : vector<12x128xf32> to vector<128xf32>
    %185 = vector.shape_cast %184 : vector<128xf32> to vector<1x128xf32>
    %186 = arith.mulf %183, %183 : vector<12x128xf32>
    %cst_105 = arith.constant dense<0.000000e+00> : vector<128xf32>
    %187 = vector.multi_reduction <add>, %186, %cst_105 [0] : vector<12x128xf32> to vector<128xf32>
    %188 = vector.shape_cast %187 : vector<128xf32> to vector<1x128xf32>
    %189 = tpu.iota {dimensions = array<i32: 0>} : vector<128x32xi32>
    %190 = tpu.iota {dimensions = array<i32: 1>} : vector<128x32xi32>
    %c32_i32 = arith.constant 32 : i32
    %c0_i32_106 = arith.constant 0 : i32
    %191 = arith.cmpi eq, %c32_i32, %c0_i32_106 : i32
    %c1_i32_107 = arith.constant 1 : i32
    %192 = arith.select %191, %c1_i32_107, %c32_i32 : i32
    %193 = vector.broadcast %192 : i32 to vector<128x32xi32>
    %194 = arith.remsi %189, %193 : vector<128x32xi32>
    %c0_i32_108 = arith.constant 0 : i32
    %195 = vector.broadcast %c0_i32_108 : i32 to vector<128x32xi32>
    %196 = arith.cmpi ne, %194, %195 : vector<128x32xi32>
    %c0_i32_109 = arith.constant 0 : i32
    %197 = vector.broadcast %c0_i32_109 : i32 to vector<128x32xi32>
    %198 = arith.cmpi slt, %194, %197 : vector<128x32xi32>
    %c0_i32_110 = arith.constant 0 : i32
    %199 = arith.cmpi slt, %192, %c0_i32_110 : i32
    %200 = vector.broadcast %199 : i1 to vector<128x32xi1>
    %201 = vector.broadcast %200 : vector<128x32xi1> to vector<128x32xi1>
    %202 = arith.xori %198, %201 : vector<128x32xi1>
    %203 = arith.andi %202, %196 : vector<128x32xi1>
    %204 = vector.broadcast %192 : i32 to vector<128x32xi32>
    %205 = arith.addi %194, %204 : vector<128x32xi32>
    %206 = arith.select %203, %205, %194 : vector<128x32xi1>, vector<128x32xi32>
    %207 = arith.cmpi eq, %206, %190 : vector<128x32xi32>
    %cst_111 = arith.constant 1.000000e+00 : f32
    %cst_112 = arith.constant 0.000000e+00 : f32
    %208 = vector.broadcast %cst_111 : f32 to vector<128x32xf32>
    %209 = vector.broadcast %cst_112 : f32 to vector<128x32xf32>
    %210 = arith.select %207, %208, %209 : vector<128x32xi1>, vector<128x32xf32>
    %211 = tpu.concatenate %185, %188 in 0 : vector<1x128xf32>, vector<1x128xf32> -> vector<2x128xf32>
    %cst_113 = arith.constant dense<0.000000e+00> : vector<2x32xf32>
    %212 = tpu.matmul %211, %210, %cst_113 {dimension_numbers = #tpu.dot_dimension_numbers<[1], [0], [0], [1], [0, 0, 1, 1], [], []>} : vector<2x128xf32>, vector<128x32xf32>, vector<2x32xf32> -> vector<2x32xf32>
    %213 = vector.extract_strided_slice %212 {offsets = [0, 0], sizes = [1, 32], strides = [1, 1]} : vector<2x32xf32> to vector<1x32xf32>
    %cst_114 = arith.constant 4.800000e+01 : f32
    %214 = vector.broadcast %cst_114 : f32 to vector<1x32xf32>
    %215 = arith.divf %213, %214 : vector<1x32xf32>
    %216 = vector.extract_strided_slice %212 {offsets = [1, 0], sizes = [1, 32], strides = [1, 1]} : vector<2x32xf32> to vector<1x32xf32>
    %cst_115 = arith.constant 4.800000e+01 : f32
    %217 = vector.broadcast %cst_115 : f32 to vector<1x32xf32>
    %218 = arith.divf %216, %217 : vector<1x32xf32>
    %219 = arith.mulf %215, %215 : vector<1x32xf32>
    %220 = arith.subf %218, %219 : vector<1x32xf32>
    %c0_116 = arith.constant 0 : index
    %c0_117 = arith.constant 0 : index
    %221 = vector.load %arg9[%c0_116, %c0_117] : memref<1x32xf32, #tpu.memory_space<vmem>>, vector<1x32xf32>
    %cst_118 = arith.constant 9.99999974E-6 : f32
    %222 = vector.broadcast %cst_118 : f32 to vector<1x32xf32>
    %223 = arith.addf %220, %222 : vector<1x32xf32>
    %224 = math.rsqrt %223 : vector<1x32xf32>
    %225 = arith.mulf %221, %224 : vector<1x32xf32>
    %c0_119 = arith.constant 0 : index
    %c0_120 = arith.constant 0 : index
    %226 = vector.load %arg10[%c0_119, %c0_120] : memref<1x32xf32, #tpu.memory_space<vmem>>, vector<1x32xf32>
    %227 = arith.mulf %215, %225 : vector<1x32xf32>
    %228 = arith.subf %226, %227 : vector<1x32xf32>
    %229 = tpu.concatenate %225, %225, %225, %225 in 1 : vector<1x32xf32>, vector<1x32xf32>, vector<1x32xf32>, vector<1x32xf32> -> vector<1x128xf32>
    %230 = vector.broadcast %229 : vector<1x128xf32> to vector<12x128xf32>
    %231 = arith.mulf %183, %230 : vector<12x128xf32>
    %232 = tpu.concatenate %228, %228, %228, %228 in 1 : vector<1x32xf32>, vector<1x32xf32>, vector<1x32xf32>, vector<1x32xf32> -> vector<1x128xf32>
    %233 = vector.broadcast %232 : vector<1x128xf32> to vector<12x128xf32>
    %234 = arith.addf %231, %233 : vector<12x128xf32>
    %cst_121 = arith.constant 0.000000e+00 : f32
    %235 = vector.broadcast %cst_121 : f32 to vector<12x128xf32>
    %236 = arith.cmpf ogt, %234, %235 : vector<12x128xf32>
    %cst_122 = arith.constant 2.000000e-01 : f32
    %237 = vector.broadcast %cst_122 : f32 to vector<12x128xf32>
    %238 = arith.mulf %237, %234 : vector<12x128xf32>
    %239 = arith.select %236, %234, %238 : vector<12x128xi1>, vector<12x128xf32>
    %cst_123 = arith.constant 0.000000e+00 : f32
    %240 = vector.broadcast %cst_123 : f32 to vector<1x128xf32>
    %c0_124 = arith.constant 0 : index
    %c0_125 = arith.constant 0 : index
    %241 = vector.load %arg16[%c0_124, %c0_125] : memref<16x128xf32, #tpu.memory_space<vmem>>, vector<1x128xf32>
    tpu.vector_store %arg16[%c0_124, %c0_125], %240 {strides = array<i32>} : memref<16x128xf32, #tpu.memory_space<vmem>>, vector<1x128xf32>,
    %c7 = arith.constant 7 : index
    %c0_126 = arith.constant 0 : index
    %242 = vector.load %arg16[%c7, %c0_126] : memref<16x128xf32, #tpu.memory_space<vmem>>, vector<1x128xf32>
    tpu.vector_store %arg16[%c7, %c0_126], %240 {strides = array<i32>} : memref<16x128xf32, #tpu.memory_space<vmem>>, vector<1x128xf32>,
    %243 = vector.extract_strided_slice %239 {offsets = [0, 0], sizes = [6, 128], strides = [1, 1]} : vector<12x128xf32> to vector<6x128xf32>
    %c1_127 = arith.constant 1 : index
    %c0_128 = arith.constant 0 : index
    %244 = vector.load %arg16[%c1_127, %c0_128] : memref<16x128xf32, #tpu.memory_space<vmem>>, vector<6x128xf32>
    tpu.vector_store %arg16[%c1_127, %c0_128], %243 {strides = array<i32>} : memref<16x128xf32, #tpu.memory_space<vmem>>, vector<6x128xf32>,
    %c8 = arith.constant 8 : index
    %c0_129 = arith.constant 0 : index
    %245 = vector.load %arg16[%c8, %c0_129] : memref<16x128xf32, #tpu.memory_space<vmem>>, vector<1x128xf32>
    tpu.vector_store %arg16[%c8, %c0_129], %240 {strides = array<i32>} : memref<16x128xf32, #tpu.memory_space<vmem>>, vector<1x128xf32>,
    %c15_130 = arith.constant 15 : index
    %c0_131 = arith.constant 0 : index
    %246 = vector.load %arg16[%c15_130, %c0_131] : memref<16x128xf32, #tpu.memory_space<vmem>>, vector<1x128xf32>
    tpu.vector_store %arg16[%c15_130, %c0_131], %240 {strides = array<i32>} : memref<16x128xf32, #tpu.memory_space<vmem>>, vector<1x128xf32>,
    %247 = vector.extract_strided_slice %239 {offsets = [6, 0], sizes = [6, 128], strides = [1, 1]} : vector<12x128xf32> to vector<6x128xf32>
    %c9 = arith.constant 9 : index
    %c0_132 = arith.constant 0 : index
    %248 = vector.load %arg16[%c9, %c0_132] : memref<16x128xf32, #tpu.memory_space<vmem>>, vector<6x128xf32>
    tpu.vector_store %arg16[%c9, %c0_132], %247 {strides = array<i32>} : memref<16x128xf32, #tpu.memory_space<vmem>>, vector<6x128xf32>,
    %c0_133 = arith.constant 0 : index
    %c0_134 = arith.constant 0 : index
    %249 = tpu.strided_load %arg16[%c0_133, %c0_134] {strides = array<i32: 2, 1>} : memref<16x128xf32, #tpu.memory_space<vmem>>, vector<4x128xf32>
    %250 = arith.truncf %249 : vector<4x128xf32> to vector<4x128xbf16>
    %c1_135 = arith.constant 1 : index
    %c0_136 = arith.constant 0 : index
    %251 = tpu.strided_load %arg16[%c1_135, %c0_136] {strides = array<i32: 2, 1>} : memref<16x128xf32, #tpu.memory_space<vmem>>, vector<4x128xf32>
    %252 = arith.truncf %251 : vector<4x128xf32> to vector<4x128xbf16>
    %c8_137 = arith.constant 8 : index
    %c0_138 = arith.constant 0 : index
    %253 = tpu.strided_load %arg16[%c8_137, %c0_138] {strides = array<i32: 2, 1>} : memref<16x128xf32, #tpu.memory_space<vmem>>, vector<4x128xf32>
    %254 = arith.truncf %253 : vector<4x128xf32> to vector<4x128xbf16>
    %c9_139 = arith.constant 9 : index
    %c0_140 = arith.constant 0 : index
    %255 = tpu.strided_load %arg16[%c9_139, %c0_140] {strides = array<i32: 2, 1>} : memref<16x128xf32, #tpu.memory_space<vmem>>, vector<4x128xf32>
    %256 = arith.truncf %255 : vector<4x128xf32> to vector<4x128xbf16>
    %257 = vector.extract_strided_slice %250 {offsets = [0, 0], sizes = [3, 128], strides = [1, 1]} : vector<4x128xbf16> to vector<3x128xbf16>
    %258 = vector.extract_strided_slice %254 {offsets = [0, 0], sizes = [3, 128], strides = [1, 1]} : vector<4x128xbf16> to vector<3x128xbf16>
    %259 = tpu.concatenate %257, %258 in 0 : vector<3x128xbf16>, vector<3x128xbf16> -> vector<6x128xbf16>
    %c0_141 = arith.constant 0 : index
    %c0_142 = arith.constant 0 : index
    %c0_143 = arith.constant 0 : index
    %260 = vector.load %arg5[%c0_141, %c0_142, %c0_143] : memref<4x128x256xbf16, #tpu.memory_space<vmem>>, vector<1x128x256xbf16>
    %261 = vector.shape_cast %260 : vector<1x128x256xbf16> to vector<128x256xbf16>
    %cst_144 = arith.constant dense<0.000000e+00> : vector<6x256xf32>
    %262 = tpu.matmul %259, %261, %cst_144 {dimension_numbers = #tpu.dot_dimension_numbers<[1], [0], [0], [1], [0, 0, 1, 1], [], []>} : vector<6x128xbf16>, vector<128x256xbf16>, vector<6x256xf32> -> vector<6x256xf32>
    %263 = vector.extract_strided_slice %252 {offsets = [0, 0], sizes = [3, 128], strides = [1, 1]} : vector<4x128xbf16> to vector<3x128xbf16>
    %264 = vector.extract_strided_slice %256 {offsets = [0, 0], sizes = [3, 128], strides = [1, 1]} : vector<4x128xbf16> to vector<3x128xbf16>
    %265 = tpu.concatenate %263, %264 in 0 : vector<3x128xbf16>, vector<3x128xbf16> -> vector<6x128xbf16>
    %c1_145 = arith.constant 1 : index
    %c0_146 = arith.constant 0 : index
    %c0_147 = arith.constant 0 : index
    %266 = vector.load %arg5[%c1_145, %c0_146, %c0_147] : memref<4x128x256xbf16, #tpu.memory_space<vmem>>, vector<1x128x256xbf16>
    %267 = vector.shape_cast %266 : vector<1x128x256xbf16> to vector<128x256xbf16>
    %cst_148 = arith.constant dense<0.000000e+00> : vector<6x256xf32>
    %268 = tpu.matmul %265, %267, %cst_148 {dimension_numbers = #tpu.dot_dimension_numbers<[1], [0], [0], [1], [0, 0, 1, 1], [], []>} : vector<6x128xbf16>, vector<128x256xbf16>, vector<6x256xf32> -> vector<6x256xf32>
    %269 = arith.addf %262, %268 : vector<6x256xf32>
    %270 = vector.extract_strided_slice %250 {offsets = [1, 0], sizes = [3, 128], strides = [1, 1]} : vector<4x128xbf16> to vector<3x128xbf16>
    %271 = vector.extract_strided_slice %254 {offsets = [1, 0], sizes = [3, 128], strides = [1, 1]} : vector<4x128xbf16> to vector<3x128xbf16>
    %272 = tpu.concatenate %270, %271 in 0 : vector<3x128xbf16>, vector<3x128xbf16> -> vector<6x128xbf16>
    %c2_149 = arith.constant 2 : index
    %c0_150 = arith.constant 0 : index
    %c0_151 = arith.constant 0 : index
    %273 = vector.load %arg5[%c2_149, %c0_150, %c0_151] : memref<4x128x256xbf16, #tpu.memory_space<vmem>>, vector<1x128x256xbf16>
    %274 = vector.shape_cast %273 : vector<1x128x256xbf16> to vector<128x256xbf16>
    %cst_152 = arith.constant dense<0.000000e+00> : vector<6x256xf32>
    %275 = tpu.matmul %272, %274, %cst_152 {dimension_numbers = #tpu.dot_dimension_numbers<[1], [0], [0], [1], [0, 0, 1, 1], [], []>} : vector<6x128xbf16>, vector<128x256xbf16>, vector<6x256xf32> -> vector<6x256xf32>
    %276 = arith.addf %269, %275 : vector<6x256xf32>
    %277 = vector.extract_strided_slice %252 {offsets = [1, 0], sizes = [3, 128], strides = [1, 1]} : vector<4x128xbf16> to vector<3x128xbf16>
    %278 = vector.extract_strided_slice %256 {offsets = [1, 0], sizes = [3, 128], strides = [1, 1]} : vector<4x128xbf16> to vector<3x128xbf16>
    %279 = tpu.concatenate %277, %278 in 0 : vector<3x128xbf16>, vector<3x128xbf16> -> vector<6x128xbf16>
    %c3_153 = arith.constant 3 : index
    %c0_154 = arith.constant 0 : index
    %c0_155 = arith.constant 0 : index
    %280 = vector.load %arg5[%c3_153, %c0_154, %c0_155] : memref<4x128x256xbf16, #tpu.memory_space<vmem>>, vector<1x128x256xbf16>
    %281 = vector.shape_cast %280 : vector<1x128x256xbf16> to vector<128x256xbf16>
    %cst_156 = arith.constant dense<0.000000e+00> : vector<6x256xf32>
    %282 = tpu.matmul %279, %281, %cst_156 {dimension_numbers = #tpu.dot_dimension_numbers<[1], [0], [0], [1], [0, 0, 1, 1], [], []>} : vector<6x128xbf16>, vector<128x256xbf16>, vector<6x256xf32> -> vector<6x256xf32>
    %283 = arith.addf %276, %282 : vector<6x256xf32>
    %cst_157 = arith.constant dense<0.000000e+00> : vector<256xf32>
    %284 = vector.multi_reduction <add>, %283, %cst_157 [0] : vector<6x256xf32> to vector<256xf32>
    %285 = vector.shape_cast %284 : vector<256xf32> to vector<1x256xf32>
    %286 = arith.mulf %283, %283 : vector<6x256xf32>
    %cst_158 = arith.constant dense<0.000000e+00> : vector<256xf32>
    %287 = vector.multi_reduction <add>, %286, %cst_158 [0] : vector<6x256xf32> to vector<256xf32>
    %288 = vector.shape_cast %287 : vector<256xf32> to vector<1x256xf32>
    %289 = tpu.iota {dimensions = array<i32: 0>} : vector<256x64xi32>
    %290 = tpu.iota {dimensions = array<i32: 1>} : vector<256x64xi32>
    %c64_i32 = arith.constant 64 : i32
    %c0_i32_159 = arith.constant 0 : i32
    %291 = arith.cmpi eq, %c64_i32, %c0_i32_159 : i32
    %c1_i32_160 = arith.constant 1 : i32
    %292 = arith.select %291, %c1_i32_160, %c64_i32 : i32
    %293 = vector.broadcast %292 : i32 to vector<256x64xi32>
    %294 = arith.remsi %289, %293 : vector<256x64xi32>
    %c0_i32_161 = arith.constant 0 : i32
    %295 = vector.broadcast %c0_i32_161 : i32 to vector<256x64xi32>
    %296 = arith.cmpi ne, %294, %295 : vector<256x64xi32>
    %c0_i32_162 = arith.constant 0 : i32
    %297 = vector.broadcast %c0_i32_162 : i32 to vector<256x64xi32>
    %298 = arith.cmpi slt, %294, %297 : vector<256x64xi32>
    %c0_i32_163 = arith.constant 0 : i32
    %299 = arith.cmpi slt, %292, %c0_i32_163 : i32
    %300 = vector.broadcast %299 : i1 to vector<256x64xi1>
    %301 = vector.broadcast %300 : vector<256x64xi1> to vector<256x64xi1>
    %302 = arith.xori %298, %301 : vector<256x64xi1>
    %303 = arith.andi %302, %296 : vector<256x64xi1>
    %304 = vector.broadcast %292 : i32 to vector<256x64xi32>
    %305 = arith.addi %294, %304 : vector<256x64xi32>
    %306 = arith.select %303, %305, %294 : vector<256x64xi1>, vector<256x64xi32>
    %307 = arith.cmpi eq, %306, %290 : vector<256x64xi32>
    %cst_164 = arith.constant 1.000000e+00 : f32
    %cst_165 = arith.constant 0.000000e+00 : f32
    %308 = vector.broadcast %cst_164 : f32 to vector<256x64xf32>
    %309 = vector.broadcast %cst_165 : f32 to vector<256x64xf32>
    %310 = arith.select %307, %308, %309 : vector<256x64xi1>, vector<256x64xf32>
    %311 = tpu.concatenate %285, %288 in 0 : vector<1x256xf32>, vector<1x256xf32> -> vector<2x256xf32>
    %cst_166 = arith.constant dense<0.000000e+00> : vector<2x64xf32>
    %312 = tpu.matmul %311, %310, %cst_166 {dimension_numbers = #tpu.dot_dimension_numbers<[1], [0], [0], [1], [0, 0, 1, 1], [], []>} : vector<2x256xf32>, vector<256x64xf32>, vector<2x64xf32> -> vector<2x64xf32>
    %313 = vector.extract_strided_slice %312 {offsets = [0, 0], sizes = [1, 64], strides = [1, 1]} : vector<2x64xf32> to vector<1x64xf32>
    %cst_167 = arith.constant 2.400000e+01 : f32
    %314 = vector.broadcast %cst_167 : f32 to vector<1x64xf32>
    %315 = arith.divf %313, %314 : vector<1x64xf32>
    %316 = vector.extract_strided_slice %312 {offsets = [1, 0], sizes = [1, 64], strides = [1, 1]} : vector<2x64xf32> to vector<1x64xf32>
    %cst_168 = arith.constant 2.400000e+01 : f32
    %317 = vector.broadcast %cst_168 : f32 to vector<1x64xf32>
    %318 = arith.divf %316, %317 : vector<1x64xf32>
    %319 = arith.mulf %315, %315 : vector<1x64xf32>
    %320 = arith.subf %318, %319 : vector<1x64xf32>
    %c0_169 = arith.constant 0 : index
    %c0_170 = arith.constant 0 : index
    %321 = vector.load %arg11[%c0_169, %c0_170] : memref<1x64xf32, #tpu.memory_space<vmem>>, vector<1x64xf32>
    %cst_171 = arith.constant 9.99999974E-6 : f32
    %322 = vector.broadcast %cst_171 : f32 to vector<1x64xf32>
    %323 = arith.addf %320, %322 : vector<1x64xf32>
    %324 = math.rsqrt %323 : vector<1x64xf32>
    %325 = arith.mulf %321, %324 : vector<1x64xf32>
    %c0_172 = arith.constant 0 : index
    %c0_173 = arith.constant 0 : index
    %326 = vector.load %arg12[%c0_172, %c0_173] : memref<1x64xf32, #tpu.memory_space<vmem>>, vector<1x64xf32>
    %327 = arith.mulf %315, %325 : vector<1x64xf32>
    %328 = arith.subf %326, %327 : vector<1x64xf32>
    %329 = tpu.concatenate %325, %325, %325, %325 in 1 : vector<1x64xf32>, vector<1x64xf32>, vector<1x64xf32>, vector<1x64xf32> -> vector<1x256xf32>
    %330 = vector.broadcast %329 : vector<1x256xf32> to vector<6x256xf32>
    %331 = arith.mulf %283, %330 : vector<6x256xf32>
    %332 = tpu.concatenate %328, %328, %328, %328 in 1 : vector<1x64xf32>, vector<1x64xf32>, vector<1x64xf32>, vector<1x64xf32> -> vector<1x256xf32>
    %333 = vector.broadcast %332 : vector<1x256xf32> to vector<6x256xf32>
    %334 = arith.addf %331, %333 : vector<6x256xf32>
    %cst_174 = arith.constant 0.000000e+00 : f32
    %335 = vector.broadcast %cst_174 : f32 to vector<6x256xf32>
    %336 = arith.cmpf ogt, %334, %335 : vector<6x256xf32>
    %cst_175 = arith.constant 2.000000e-01 : f32
    %337 = vector.broadcast %cst_175 : f32 to vector<6x256xf32>
    %338 = arith.mulf %337, %334 : vector<6x256xf32>
    %339 = arith.select %336, %334, %338 : vector<6x256xi1>, vector<6x256xf32>
    %340 = vector.extract_strided_slice %339 {offsets = [0, 0], sizes = [3, 256], strides = [1, 1]} : vector<6x256xf32> to vector<3x256xf32>
    %c0_176 = arith.constant 0 : index
    %c0_177 = arith.constant 0 : index
    %341 = vector.load %arg17[%c0_176, %c0_177] : memref<6x256xf32, #tpu.memory_space<vmem>>, vector<3x256xf32>
    tpu.vector_store %arg17[%c0_176, %c0_177], %340 {strides = array<i32>} : memref<6x256xf32, #tpu.memory_space<vmem>>, vector<3x256xf32>,
    %342 = vector.extract_strided_slice %339 {offsets = [3, 0], sizes = [3, 256], strides = [1, 1]} : vector<6x256xf32> to vector<3x256xf32>
    %c3_178 = arith.constant 3 : index
    %c0_179 = arith.constant 0 : index
    %343 = vector.load %arg17[%c3_178, %c0_179] : memref<6x256xf32, #tpu.memory_space<vmem>>, vector<3x256xf32>
    tpu.vector_store %arg17[%c3_178, %c0_179], %342 {strides = array<i32>} : memref<6x256xf32, #tpu.memory_space<vmem>>, vector<3x256xf32>,
    %c0_180 = arith.constant 0 : index
    %c0_181 = arith.constant 0 : index
    %344 = vector.load %arg17[%c0_180, %c0_181] : memref<6x256xf32, #tpu.memory_space<vmem>>, vector<3x256xf32>
    %345 = arith.truncf %344 : vector<3x256xf32> to vector<3x256xbf16>
    %c3_182 = arith.constant 3 : index
    %c0_183 = arith.constant 0 : index
    %346 = vector.load %arg17[%c3_182, %c0_183] : memref<6x256xf32, #tpu.memory_space<vmem>>, vector<3x256xf32>
    %347 = arith.truncf %346 : vector<3x256xf32> to vector<3x256xbf16>
    %348 = vector.extract_strided_slice %345 {offsets = [0, 0], sizes = [1, 256], strides = [1, 1]} : vector<3x256xbf16> to vector<1x256xbf16>
    %349 = vector.extract_strided_slice %347 {offsets = [0, 0], sizes = [1, 256], strides = [1, 1]} : vector<3x256xbf16> to vector<1x256xbf16>
    %350 = tpu.concatenate %348, %349 in 0 : vector<1x256xbf16>, vector<1x256xbf16> -> vector<2x256xbf16>
    %c0_184 = arith.constant 0 : index
    %c0_185 = arith.constant 0 : index
    %c0_186 = arith.constant 0 : index
    %351 = vector.load %arg6[%c0_184, %c0_185, %c0_186] : memref<3x256x4xbf16, #tpu.memory_space<vmem>>, vector<1x256x4xbf16>
    %352 = vector.shape_cast %351 : vector<1x256x4xbf16> to vector<256x4xbf16>
    %cst_187 = arith.constant dense<0.000000e+00> : vector<2x4xf32>
    %353 = tpu.matmul %350, %352, %cst_187 {dimension_numbers = #tpu.dot_dimension_numbers<[1], [0], [0], [1], [0, 0, 1, 1], [], []>} : vector<2x256xbf16>, vector<256x4xbf16>, vector<2x4xf32> -> vector<2x4xf32>
    %354 = vector.extract_strided_slice %345 {offsets = [1, 0], sizes = [1, 256], strides = [1, 1]} : vector<3x256xbf16> to vector<1x256xbf16>
    %355 = vector.extract_strided_slice %347 {offsets = [1, 0], sizes = [1, 256], strides = [1, 1]} : vector<3x256xbf16> to vector<1x256xbf16>
    %356 = tpu.concatenate %354, %355 in 0 : vector<1x256xbf16>, vector<1x256xbf16> -> vector<2x256xbf16>
    %c1_188 = arith.constant 1 : index
    %c0_189 = arith.constant 0 : index
    %c0_190 = arith.constant 0 : index
    %357 = vector.load %arg6[%c1_188, %c0_189, %c0_190] : memref<3x256x4xbf16, #tpu.memory_space<vmem>>, vector<1x256x4xbf16>
    %358 = vector.shape_cast %357 : vector<1x256x4xbf16> to vector<256x4xbf16>
    %cst_191 = arith.constant dense<0.000000e+00> : vector<2x4xf32>
    %359 = tpu.matmul %356, %358, %cst_191 {dimension_numbers = #tpu.dot_dimension_numbers<[1], [0], [0], [1], [0, 0, 1, 1], [], []>} : vector<2x256xbf16>, vector<256x4xbf16>, vector<2x4xf32> -> vector<2x4xf32>
    %360 = arith.addf %353, %359 : vector<2x4xf32>
    %361 = vector.extract_strided_slice %345 {offsets = [2, 0], sizes = [1, 256], strides = [1, 1]} : vector<3x256xbf16> to vector<1x256xbf16>
    %362 = vector.extract_strided_slice %347 {offsets = [2, 0], sizes = [1, 256], strides = [1, 1]} : vector<3x256xbf16> to vector<1x256xbf16>
    %363 = tpu.concatenate %361, %362 in 0 : vector<1x256xbf16>, vector<1x256xbf16> -> vector<2x256xbf16>
    %c2_192 = arith.constant 2 : index
    %c0_193 = arith.constant 0 : index
    %c0_194 = arith.constant 0 : index
    %364 = vector.load %arg6[%c2_192, %c0_193, %c0_194] : memref<3x256x4xbf16, #tpu.memory_space<vmem>>, vector<1x256x4xbf16>
    %365 = vector.shape_cast %364 : vector<1x256x4xbf16> to vector<256x4xbf16>
    %cst_195 = arith.constant dense<0.000000e+00> : vector<2x4xf32>
    %366 = tpu.matmul %363, %365, %cst_195 {dimension_numbers = #tpu.dot_dimension_numbers<[1], [0], [0], [1], [0, 0, 1, 1], [], []>} : vector<2x256xbf16>, vector<256x4xbf16>, vector<2x4xf32> -> vector<2x4xf32>
    %367 = arith.addf %360, %366 : vector<2x4xf32>
    %cst_196 = arith.constant 0.000000e+00 : f32
    %368 = vector.broadcast %cst_196 : f32 to vector<2x4xf32>
    %369 = arith.subf %368, %367 : vector<2x4xf32>
    %370 = math.exp %369 : vector<2x4xf32>
    %cst_197 = arith.constant 1.000000e+00 : f32
    %371 = vector.broadcast %cst_197 : f32 to vector<2x4xf32>
    %372 = arith.addf %371, %370 : vector<2x4xf32>
    %373 = tpu.reciprocal %372 {approx = true} : vector<2x4xf32> -> vector<2x4xf32>
    %c0_198 = arith.constant 0 : index
    %c0_199 = arith.constant 0 : index
    %374 = vector.load %arg13[%c0_198, %c0_199] : memref<2x4xf32, #tpu.memory_space<vmem>>, vector<2x4xf32>
    tpu.vector_store %arg13[%c0_198, %c0_199], %373 {strides = array<i32>} : memref<2x4xf32, #tpu.memory_space<vmem>>, vector<2x4xf32>,
    return
  }
  func.func @transform_0(%arg0: i32) -> (i32, i32) {
    %c0_i32 = arith.constant 0 : i32
    %c0_i32_0 = arith.constant 0 : i32
    %c0_i32_1 = arith.constant 0 : i32
    return %c0_i32, %c0_i32_0 : i32, i32
  }
  func.func @transform_1(%arg0: i32) -> (i32, i32, i32) {
    %c0_i32 = arith.constant 0 : i32
    %c0_i32_0 = arith.constant 0 : i32
    %c0_i32_1 = arith.constant 0 : i32
    %c0_i32_2 = arith.constant 0 : i32
    return %c0_i32, %c0_i32_0, %c0_i32_1 : i32, i32, i32
  }
  func.func @transform_2(%arg0: i32) -> (i32, i32, i32) {
    %c0_i32 = arith.constant 0 : i32
    %c0_i32_0 = arith.constant 0 : i32
    %c0_i32_1 = arith.constant 0 : i32
    %c0_i32_2 = arith.constant 0 : i32
    return %c0_i32, %c0_i32_0, %c0_i32_1 : i32, i32, i32
  }
  func.func @transform_3(%arg0: i32) -> (i32, i32, i32) {
    %c0_i32 = arith.constant 0 : i32
    %c0_i32_0 = arith.constant 0 : i32
    %c0_i32_1 = arith.constant 0 : i32
    %c0_i32_2 = arith.constant 0 : i32
    return %c0_i32, %c0_i32_0, %c0_i32_1 : i32, i32, i32
  }
  func.func @transform_4(%arg0: i32) -> (i32, i32, i32) {
    %c0_i32 = arith.constant 0 : i32
    %c0_i32_0 = arith.constant 0 : i32
    %c0_i32_1 = arith.constant 0 : i32
    %c0_i32_2 = arith.constant 0 : i32
    return %c0_i32, %c0_i32_0, %c0_i32_1 : i32, i32, i32
  }
  func.func @transform_5(%arg0: i32) -> (i32, i32, i32) {
    %c0_i32 = arith.constant 0 : i32
    %c0_i32_0 = arith.constant 0 : i32
    %c0_i32_1 = arith.constant 0 : i32
    %c0_i32_2 = arith.constant 0 : i32
    return %c0_i32, %c0_i32_0, %c0_i32_1 : i32, i32, i32
  }
  func.func @transform_6(%arg0: i32) -> (i32, i32) {
    %c0_i32 = arith.constant 0 : i32
    %c0_i32_0 = arith.constant 0 : i32
    %c0_i32_1 = arith.constant 0 : i32
    return %c0_i32, %c0_i32_0 : i32, i32
  }
  func.func @transform_7(%arg0: i32) -> (i32, i32) {
    %c0_i32 = arith.constant 0 : i32
    %c0_i32_0 = arith.constant 0 : i32
    %c0_i32_1 = arith.constant 0 : i32
    return %c0_i32, %c0_i32_0 : i32, i32
  }
  func.func @transform_8(%arg0: i32) -> (i32, i32) {
    %c0_i32 = arith.constant 0 : i32
    %c0_i32_0 = arith.constant 0 : i32
    %c0_i32_1 = arith.constant 0 : i32
    return %c0_i32, %c0_i32_0 : i32, i32
  }
  func.func @transform_9(%arg0: i32) -> (i32, i32) {
    %c0_i32 = arith.constant 0 : i32
    %c0_i32_0 = arith.constant 0 : i32
    %c0_i32_1 = arith.constant 0 : i32
    return %c0_i32, %c0_i32_0 : i32, i32
  }
  func.func @transform_10(%arg0: i32) -> (i32, i32) {
    %c0_i32 = arith.constant 0 : i32
    %c0_i32_0 = arith.constant 0 : i32
    %c0_i32_1 = arith.constant 0 : i32
    return %c0_i32, %c0_i32_0 : i32, i32
  }
  func.func @transform_11(%arg0: i32) -> (i32, i32) {
    %c0_i32 = arith.constant 0 : i32
    %c0_i32_0 = arith.constant 0 : i32
    %c0_i32_1 = arith.constant 0 : i32
    return %c0_i32, %c0_i32_0 : i32, i32
  }
  func.func @transform_12(%arg0: i32) -> (i32, i32) {
    %c0_i32 = arith.constant 0 : i32
    %c0_i32_0 = arith.constant 0 : i32
    %c0_i32_1 = arith.constant 0 : i32
    return %c0_i32, %c0_i32_0 : i32, i32
  }
}

</mosaic_0001>

<bundles_post_ra>
// kernel: discriminator_forward.1
= control target key start
LH: loop header
LB: loop body
LE: loop exit
PB: predicated region body
PF: predicated region fallthrough
CT: control target
= control target key end

     0   :  { %v6004_v1 = vmov 0.0   ;;  %vm6005_vm0 = vmmov 0   ;;  %vm347_vm1 = vsmask.f32 7424  ;;  %vm84_vm2 = vcmask 1043456   ;;  %s7421_s0 = inlined_call_operand.vmem [shape: f32[100,128], index: 0, kind: input, shape index: {}]   ;;  %s7422_s1 = inlined_call_operand.vmem [shape: bf16[4,128,128], index: 1, kind: input, shape index: {}]   ;;  %s7423_s2 = inlined_call_operand.vmem [shape: bf16[4,128,128], index: 2, kind: input, shape index: {}]   ;;  %s7424_s3 = inlined_call_operand.vmem [shape: bf16[4,128,128], index: 3, kind: input, shape index: {}]   ;;  %s7425_s4 = inlined_call_operand.vmem [shape: bf16[4,128,256], index: 4, kind: input, shape index: {}]   ;;  %s7426_s5 = inlined_call_operand.vmem [shape: bf16[3,256,4], index: 5, kind: input, shape index: {}]   ;;  %s7427_s6 = inlined_call_operand.vmem [shape: f32[1,16], index: 6, kind: input, shape index: {}]   ;;  %s7428_s7 = inlined_call_operand.vmem [shape: f32[1,16], index: 7, kind: input, shape index: {}]   ;;  %s7429_s8 = inlined_call_operand.vmem [shape: f32[1,32], index: 8, kind: input, shape index: {}]   ;;  %s7430_s9 = inlined_call_operand.vmem [shape: f32[1,32], index: 9, kind: input, shape index: {}]   ;;  %s7431_s10 = inlined_call_operand.vmem [shape: f32[1,64], index: 10, kind: input, shape index: {}]   ;;  %s7432_s11 = inlined_call_operand.vmem [shape: f32[1,64], index: 11, kind: input, shape index: {}]   ;;  %s7433_s12 = inlined_call_operand.hbm [shape: f32[2,4], index: 12, kind: output, shape index: {}]  }
   0x1   :  { %v5730_v0 = vld [vmem:[%s7422_s1 + $0x40] sm:$0xff]   ;;  %5222 = vmatprep.subr.bf16.mxu0 %v6004_v1  ;;  %697 = vst [vmem:[#allocation2] sm:$0x1] %v6004_v1  ;;  %698 = vst [vmem:[#allocation2 + $0x19] sm:$0x1] %v6004_v1  ;;  %v5731_v2 = vld [vmem:[%s7422_s1 + $0x48] sm:$0xff]   ;;  %5238 = vmatprep.mubr.msk.bf16.mxu0 %vm6005_vm0, %v6004_v1 }
   0x2   :  { %702 = vst [vmem:[#allocation2 + $0x1a] sm:$0x1] %v6004_v1  ;;  %703 = vst [vmem:[#allocation2 + $0x33] sm:$0x1] %v6004_v1  ;;  %5223 = vmatpush3.bf16.msra.mxu0 %v5730_v0  ;;  %v5732_v3 = vld [vmem:[%s7422_s1 + $0x50] sm:$0xff]   ;;  %v5733_v4 = vld [vmem:[%s7422_s1 + $0x58] sm:$0xff]  }
   0x3   :  { %1697 = vst [vmem:[#allocation3] sm:$0x1] %v6004_v1  ;;  %1698 = vst [vmem:[#allocation3 + $0xd] sm:$0x1] %v6004_v1  ;;  %5224 = vmatprep.subr.bf16.mxu0 %v6004_v1  ;;  %v4427_v5 = vld [vmem:[%s7421_s0 + $0x1] ss:$2 sm:$0xff] }
   0x4   :  { %1701 = vst [vmem:[#allocation3 + $0xe] sm:$0x1] %v6004_v1  ;;  %1702 = vst [vmem:[#allocation3 + $0x1b] sm:$0x1] %v6004_v1  ;;  %v4428_v6 = vld [vmem:[%s7421_s0 + $0x11] ss:$2 sm:$0xff] }
   0x5   :  { %2588 = vst [vmem:[#allocation4] sm:$0x1] %v6004_v1  ;;  %2589 = vst [vmem:[#allocation4 + $0x7] sm:$0x1] %v6004_v1  ;;  %v5734_v7 = vld [vmem:[%s7422_s1 + $0x60] sm:$0xff]   ;;  %v60_v8 = vpack.c.bf16 %v4428_v6, %v4427_v5  ;;  %v5735_v11 = vld [vmem:[%s7422_s1 + $0x68] sm:$0xff]  }
   0x6   :  { %2591 = vst [vmem:[#allocation4 + $0x8] sm:$0x1] %v6004_v1  ;;  %2592 = vst [vmem:[#allocation4 + $0xf] sm:$0x1] %v6004_v1  ;;  %5225 = vmatpush3.bf16.msra.mxu0 %v5731_v2  ;;  %v4429_v10 = vld [vmem:[%s7421_s0 + $0x21] ss:$2 sm:$0xff] }
   0x7   :  { %5226 = vmatprep.subr.bf16.mxu0 %v6004_v1  ;;  %v4430_v9 = vld [vmem:[%s7421_s0 + $0x31] ss:$2 sm:$0x1]  ;;  %v517_v12 = vshll.u32 %v60_v8, 16  ;;  %v515_v15 = vshrl.u32 %v60_v8, 16  ;;  %v5737_v20 = vld [vmem:[%s7422_s1 + $0x78] sm:$0xff]  }
   0x8   :  { %v61_v13 = vpack.c.bf16 %v4430_v9, %v4429_v10  ;;  %v5736_v14 = vld [vmem:[%s7422_s1 + $0x70] sm:$0xff]   ;;  %v4438_v24 = vld [vmem:[%s7421_s0 + $0x63] ss:$2 sm:$0x1]  ;;  %v43_v27 = vld [vmem:[%s7421_s0] ss:$2 sm:$0xff] }
   0x9   :  { %v519_v16 = vrot.slane %v517_v12, 1  ;;  %v4435_v18 = vld [vmem:[%s7421_s0 + $0x33] ss:$2 sm:$0xff]  ;;  %v4436_v19 = vld [vmem:[%s7421_s0 + $0x43] ss:$2 sm:$0xff] }
   0xa   :  { %5227 = vmatpush3.bf16.msra.mxu0 %v5732_v3  ;;  %v521_v17 = vshll.u32 %v61_v13, 16  ;;  %v4437_v23 = vld [vmem:[%s7421_s0 + $0x53] ss:$2 sm:$0xff]  ;;  %v4431_v26 = vld [vmem:[%s7421_s0 + $0x32] ss:$2 sm:$0xff]  ;;  %v80_v28 = vpack.c.bf16 %v4436_v19, %v4435_v18  ;;  %v5739_v36 = vld [vmem:[%s7422_s1 + $0x8] sm:$0xff]  }
   0xb   :  { %5228 = vmatprep.subr.bf16.mxu0 %v6004_v1  ;;  %v520_v21 = vor.u32 %v519_v16, %v515_v15  ;;  %v5738_v25 = vld [vmem:[%s7422_s1] sm:$0xff]   ;;  %v4424_v32 = vld [vmem:[%s7421_s0 + $0x10] ss:$2 sm:$0xff]  ;;  %v81_v33 = vpack.c.bf16 %v4438_v24, %v4437_v23  ;;  %v525_v44 = vshrl.u32 %v61_v13, 16  ;;  %vm363_vm3 = vsmask.f32 3328 }
   0xc   :  { %v523_v22 = vrot.slane %v521_v17, 1  ;;  %v4432_v29 = vld [vmem:[%s7421_s0 + $0x42] ss:$2 sm:$0xff]  ;;  %v4433_v34 = vld [vmem:[%s7421_s0 + $0x52] ss:$2 sm:$0xff]  ;;  %v112_v37 = vrot.slane %v80_v28, 4  ;;  %v6185_v38 = vpack.c.bf16 %v4424_v32, %v43_v27 }
   0xd   :  { %v4434_v30 = vld [vmem:[%s7421_s0 + $0x62] ss:$2 sm:$0x1]  ;;  %v6178_v35 = vpack.c.bf16 %v4432_v29, %v4431_v26  ;;  %v5740_v40 = vld [vmem:[%s7422_s1 + $0x10] sm:$0xff]   ;;  %v113_v41 = vrot.slane %v81_v33, 4  ;;  %v530_v47 = vshrl.u32 %v80_v28, 16 }
   0xe   :  { %5229 = vmatpush3.bf16.msra.mxu0 %v5733_v4  ;;  %v6169_v31 = vsel %vm347_vm1, %v520_v21, %v523_v22  ;;  %v6188_v39 = vpack.c.bf16 %v4434_v30, %v4433_v34  ;;  %v351_v42 = vshll.u32 %v6185_v38, 16  ;;  %v118_v45 = vsel %vm84_vm2, %v61_v13, %v112_v37  ;;  %v5741_v50 = vld [vmem:[%s7422_s1 + $0x18] sm:$0xff]   ;;  %v5742_v58 = vld [vmem:[%s7422_s1 + $0x20] sm:$0xff]   ;;  %v5743_v63 = vld [vmem:[%s7422_s1 + $0x28] sm:$0xff]  }
   0xf   :  { %5230 = vmatprep.subr.bf16.mxu0 %v6004_v1  ;;  %v85_v43 = vrot.slane %v6178_v35, 4  ;;  %v533_v48 = vshll.u32 %v80_v28, 16  ;;  %v538_v49 = vshrl.u32 %v81_v33, 16  ;;  %v541_v51 = vshll.u32 %v81_v33, 16  ;;  %v5744_v0 = vld [vmem:[%s7422_s1 + $0x30] sm:$0xff]   ;;  %v5745_v2 = vld [vmem:[%s7422_s1 + $0x38] sm:$0xff]  }
  0x10   :  { %v86_v46 = vrot.slane %v6188_v39, 4  ;;  %v527_v52 = vor.u32 %v525_v44, %v523_v22  ;;  %v532_v53 = vrot.slane %v530_v47, 4  ;;  %v114_v61 = vsel %vm84_vm2, %v112_v37, %v113_v41  ;;  %v5746_v3 = vld [vmem:[%s7422_s1 + $0x80] sm:$0xff]   ;;  %v4426_v5 = vld [vmem:[%s7421_s0 + $0x30] ss:$2 sm:$0x1] }
  0x11   :  { %v535_v54 = vrot.slane %v533_v48, 5  ;;  %v540_v55 = vrot.slane %v538_v49, 4  ;;  %v543_v56 = vrot.slane %v541_v51, 5  ;;  %v4425_v4 = vld [vmem:[%s7421_s0 + $0x20] ss:$2 sm:$0xff]  ;;  %v5749_v10 = vld [vmem:[%s7422_s1 + $0x98] sm:$0xff]  }
  0x12   :  { %5231 = vmatpush3.bf16.msra.mxu0 %v5734_v7  ;;  %v5747_v6 = vld [vmem:[%s7422_s1 + $0x88] sm:$0xff]   ;;  %v51_v7 = vpack.c.bf16 %v4426_v5, %v4425_v4  ;;  %v87_v12 = vsel %vm84_vm2, %v85_v43, %v86_v46  ;;  %v349_v15 = vshrl.u32 %v6185_v38, 16  ;;  %v353_v16 = vrot.slane %v351_v42, 1  ;;  %v5753_v18 = vld [vmem:[%s7422_s1 + $0xb8] sm:$0xff]   ;;  %v5754_v23 = vld [vmem:[%s7422_s1 + $0xc0] sm:$0xff]  }
  0x13   :  { %5232 = vmatprep.subr.bf16.mxu0 %v6004_v1  ;;  %v536_v57 = vor.u32 %v535_v54, %v532_v53  ;;  %v544_v59 = vor.u32 %v543_v56, %v540_v55  ;;  %v5751_v13 = vld [vmem:[%s7422_s1 + $0xa8] sm:$0xff]   ;;  %v365_v21 = vshrl.u32 %v6178_v35, 16  ;;  %v368_v22 = vshll.u32 %v6178_v35, 16  ;;  %v5756_v34 = vld [vmem:[%s7422_s1 + $0xd0] sm:$0xff]   ;;  %v5761_v44 = vld [vmem:[%s7422_s1 + $0xf8] sm:$0xff]  }
  0x14   :  { %v92_v9 = vsel %vm84_vm2, %v51_v7, %v85_v43  ;;  %v355_v17 = vshll.u32 %v51_v7, 16  ;;  %v354_v19 = vor.u32 %v353_v16, %v349_v15  ;;  %v5755_v28 = vld [vmem:[%s7422_s1 + $0xc8] sm:$0xff]   ;;  %v373_v32 = vshrl.u32 %v6188_v39, 16  ;;  %v5760_v43 = vld [vmem:[%s7422_s1 + $0xf0] sm:$0xff]  }
  0x15   :  { %v6208_v60 = vsel %vm84_vm2, %v527_v52, %v536_v57  ;;  %v6212_v62 = vsel %vm363_vm3, %v536_v57, %v544_v59  ;;  %v367_v26 = vrot.slane %v365_v21, 4  ;;  %v370_v27 = vrot.slane %v368_v22, 5  ;;  %v5759_v42 = vld [vmem:[%s7422_s1 + $0xe8] sm:$0xff]  }
  0x16   :  { %5233 = vmatpush3.bf16.msra.mxu0 %v5735_v11  ;;  %v5750_v11 = vld [vmem:[%s7422_s1 + $0xa0] sm:$0xff]   ;;  %v376_v33 = vshll.u32 %v6188_v39, 16 }
  0x17   :  { %5234 = vmatprep.subr.bf16.mxu0 %v6004_v1  ;;  %v371_v30 = vor.u32 %v370_v27, %v367_v26 }
  0x18   :  { %v378_v37 = vrot.slane %v376_v33, 5 }
  0x1a   :  { %5235 = vmatpush3.bf16.msra.mxu0 %v5736_v14  ;;  %v5752_v14 = vld [vmem:[%s7422_s1 + $0xb0] sm:$0xff]  }
  0x1b   :  { %5236 = vmatprep.subr.bf16.mxu0 %v6004_v1 }
  0x1e   :  { %5237 = vmatpush3.bf16.msra.mxu0 %v5737_v20  ;;  %v357_v20 = vrot.slane %v355_v17, 1 }
  0x1f   :  { %5250 = vmatprep.subr.bf16.mxu0 %v6004_v1 }
  0x20   :  { %v358_v24 = vsel %vm347_vm1, %v354_v19, %v357_v20 }
  0x21   :  { %5239 = vmatmul.mubr.bf16.vlgmr.msra.gmra.mrb[0].mxu0 %v60_v8  ;;  %v5748_v8 = vld [vmem:[%s7422_s1 + $0x90] sm:$0xff]  }
  0x22   :  { %5251 = vmatpush3.bf16.msra.mxu0 %v5738_v25  ;;  %5242 = vmatprep.mubr.msk.bf16.mxu0 %vm6005_vm0, %v6004_v1  ;;  %v359_v25 = vshrl.u32 %v51_v7, 16 }
  0x23   :  { %5252 = vmatprep.subr.bf16.mxu0 %v6004_v1 }
  0x24   :  { %v361_v29 = vor.u32 %v359_v25, %v357_v20 }
  0x26   :  { %5253 = vmatpush3.bf16.msra.mxu0 %v5739_v36  ;;  %v384_v35 = vsel %vm84_vm2, %v361_v29, %v371_v30  ;;  %v375_v36 = vrot.slane %v373_v32, 4 }
  0x27   :  { %5254 = vmatprep.subr.bf16.mxu0 %v6004_v1 }
  0x28   :  { %v379_v39 = vor.u32 %v378_v37, %v375_v36 }
  0x29   :  { %5243 = vmatmul.mubr.bf16.gmra.mrb[4].mxu0 %v118_v45 }
  0x2a   :  { %5255 = vmatpush3.bf16.msra.mxu0 %v5740_v40  ;;  %5246 = vmatprep.mubr.msk.bf16.mxu0 %vm6005_vm0, %v6004_v1  ;;  %v5758_v40 = vld [vmem:[%s7422_s1 + $0xe0] sm:$0xff]   ;;  %v380_v41 = vsel %vm363_vm3, %v371_v30, %v379_v39 }
  0x2b   :  { %5256 = vmatprep.subr.bf16.mxu0 %v6004_v1 }
  0x2e   :  { %5257 = vmatpush3.bf16.msra.mxu0 %v5741_v50 }
  0x2f   :  { %5258 = vmatprep.subr.bf16.mxu0 %v6004_v1 }
  0x31   :  { %5247 = vmatmul.mubr.bf16.gmra.mrb[8].mxu0 %v114_v61 }
  0x32   :  { %5259 = vmatpush3.bf16.msra.mxu0 %v5742_v58  ;;  %5266 = vmatprep.mubr.msk.bf16.mxu0 %vm6005_vm0, %v6004_v1 }
  0x33   :  { %5260 = vmatprep.subr.bf16.mxu0 %v6004_v1 }
  0x36   :  { %5261 = vmatpush3.bf16.msra.mxu0 %v5743_v63 }
  0x37   :  { %5262 = vmatprep.subr.bf16.mxu0 %v6004_v1 }
  0x3a   :  { %5263 = vmatpush3.bf16.msra.mxu0 %v5744_v0 }
  0x3b   :  { %5264 = vmatprep.subr.bf16.mxu0 %v6004_v1 }
  0x3e   :  { %5265 = vmatpush3.bf16.msra.mxu0 %v5745_v2 }
  0x3f   :  { %5278 = vmatprep.subr.bf16.mxu0 %v6004_v1 }
  0x41   :  { %5267 = vmatmul.mubr.bf16.vlgmr.msra.gmra.mrb[0].mxu0 %v6185_v38  ;;  %v5757_v38 = vld [vmem:[%s7422_s1 + $0xd8] sm:$0xff]  }
  0x42   :  { %5279 = vmatpush3.bf16.msra.mxu0 %v5746_v3  ;;  %5270 = vmatprep.mubr.msk.bf16.mxu0 %vm6005_vm0, %v6004_v1 }
  0x43   :  { %5280 = vmatprep.subr.bf16.mxu0 %v6004_v1 }
  0x46   :  { %5281 = vmatpush3.bf16.msra.mxu0 %v5747_v6 }
  0x47   :  { %5282 = vmatprep.subr.bf16.mxu0 %v6004_v1 }
  0x49   :  { %5271 = vmatmul.mubr.bf16.gmra.mrb[4].mxu0 %v92_v9 }
  0x4a   :  { %5283 = vmatpush3.bf16.msra.mxu0 %v5748_v8  ;;  %5274 = vmatprep.mubr.msk.bf16.mxu0 %vm6005_vm0, %v6004_v1 }
  0x4b   :  { %5284 = vmatprep.subr.bf16.mxu0 %v6004_v1 }
  0x4e   :  { %5285 = vmatpush3.bf16.msra.mxu0 %v5749_v10 }
  0x4f   :  { %5286 = vmatprep.subr.bf16.mxu0 %v6004_v1 }
  0x51   :  { %5275 = vmatmul.mubr.bf16.gmra.mrb[8].mxu0 %v87_v12 }
  0x52   :  { %5287 = vmatpush3.bf16.msra.mxu0 %v5750_v11  ;;  %5294 = vmatprep.mubr.msk.bf16.mxu0 %vm6005_vm0, %v6004_v1 }
  0x53   :  { %5288 = vmatprep.subr.bf16.mxu0 %v6004_v1 }
  0x56   :  { %5289 = vmatpush3.bf16.msra.mxu0 %v5751_v13 }
  0x57   :  { %5290 = vmatprep.subr.bf16.mxu0 %v6004_v1 }
  0x5a   :  { %5291 = vmatpush3.bf16.msra.mxu0 %v5752_v14 }
  0x5b   :  { %5292 = vmatprep.subr.bf16.mxu0 %v6004_v1 }
  0x5e   :  { %5293 = vmatpush3.bf16.msra.mxu0 %v5753_v18 }
  0x5f   :  { %5306 = vmatprep.subr.bf16.mxu0 %v6004_v1 }
  0x61   :  { %5295 = vmatmul.mubr.bf16.vlgmr.msra.gmra.mrb[0].mxu0 %v358_v24 }
  0x62   :  { %5307 = vmatpush3.bf16.msra.mxu0 %v5754_v23  ;;  %5298 = vmatprep.mubr.msk.bf16.mxu0 %vm6005_vm0, %v6004_v1 }
  0x63   :  { %5308 = vmatprep.subr.bf16.mxu0 %v6004_v1 }
  0x66   :  { %5309 = vmatpush3.bf16.msra.mxu0 %v5755_v28 }
  0x67   :  { %5310 = vmatprep.subr.bf16.mxu0 %v6004_v1 }
  0x69   :  { %5299 = vmatmul.mubr.bf16.gmra.mrb[4].mxu0 %v384_v35 }
  0x6a   :  { %5311 = vmatpush3.bf16.msra.mxu0 %v5756_v34  ;;  %5302 = vmatprep.mubr.msk.bf16.mxu0 %vm6005_vm0, %v6004_v1 }
  0x6b   :  { %5312 = vmatprep.subr.bf16.mxu0 %v6004_v1 }
  0x6e   :  { %5313 = vmatpush3.bf16.msra.mxu0 %v5757_v38 }
  0x6f   :  { %5314 = vmatprep.subr.bf16.mxu0 %v6004_v1 }
  0x71   :  { %5303 = vmatmul.mubr.bf16.gmra.mrb[8].mxu0 %v380_v41 }
  0x72   :  { %5315 = vmatpush3.bf16.msra.mxu0 %v5758_v40  ;;  %5322 = vmatprep.mubr.msk.bf16.mxu0 %vm6005_vm0, %v6004_v1 }
  0x73   :  { %5316 = vmatprep.subr.bf16.mxu0 %v6004_v1 }
  0x76   :  { %5317 = vmatpush3.bf16.msra.mxu0 %v5759_v42 }
  0x77   :  { %5318 = vmatprep.subr.bf16.mxu0 %v6004_v1 }
  0x7a   :  { %5319 = vmatpush3.bf16.msra.mxu0 %v5760_v43 }
  0x7b   :  { %5320 = vmatprep.subr.bf16.mxu0 %v6004_v1 }
  0x7e   :  { %5321 = vmatpush3.bf16.msra.mxu0 %v5761_v44 }
  0x81   :  { %5323 = vmatmul.mubr.bf16.vlgmr.msra.gmra.mrb[0].mxu0 %v6169_v31 }
  0x82   :  { %5326 = vmatprep.mubr.msk.bf16.mxu0 %vm6005_vm0, %v6004_v1 }
  0x83   :  { %17 = vsyncpa [#allocation7], 0  ;;  %v5762_v45 = vld [vmem:[%s7423_s2 + $0x40] sm:$0xff]   ;;  %v5763_v31 = vld [vmem:[%s7423_s2 + $0x48] sm:$0xff]   ;;  %v6007_v18 = vmov 1.0|1.0  }
  0x84   :  { %5334 = vmatprep.subr.bf16.mxu1 %v5762_v45  ;;  %v5764_v46 = vld [vmem:[%s7423_s2 + $0x50] sm:$0xff]   ;;  %v5765_v47 = vld [vmem:[%s7423_s2 + $0x58] sm:$0xff]   ;;  %v5766_v48 = vld [vmem:[%s7423_s2 + $0x60] sm:$0xff]   ;;  %vm729_vm1 = vcmask 1045504   ;;  %s6010_s15 = smov 16   ;;  %s6011_s17 = smov 32  }
  0x85   :  { %5335 = vmatpush3.bf16.msra.mxu1 %v5762_v45  ;;  %v5767_v49 = vld [vmem:[%s7423_s2 + $0x68] sm:$0xff]   ;;  %v5768_v50 = vld [vmem:[%s7423_s2 + $0x70] sm:$0xff]   ;;  %v5769_v51 = vld [vmem:[%s7423_s2 + $0x78] sm:$0xff]   ;;  %s6012_s19 = smov 64   ;;  %s6013_s20 = smov 80  }
  0x86   :  { %5336 = vmatprep.subr.bf16.mxu1 %v5763_v31  ;;  %v6364_v52 = vld [vmem:[%s7423_s2] sm:$0xff]   ;;  %v5771_v43 = vld [vmem:[%s7423_s2 + $0x8] sm:$0xff]   ;;  %v5772_v45 = vld [vmem:[%s7423_s2 + $0x10] sm:$0xff]   ;;  %s6014_s23 = smov 96   ;;  %s6015_s25 = smov 112  }
  0x89   :  { %5327 = vmatmul.mubr.bf16.gmra.mrb[4].mxu0 %v6208_v60  ;;  %5337 = vmatpush3.bf16.msra.mxu1 %v5763_v31  ;;  %v1255_v60 = vlaneseq  ;;  %v5773_v31 = vld [vmem:[%s7423_s2 + $0x18] sm:$0xff]  }
  0x8a   :  { %5330 = vmatprep.mubr.msk.bf16.mxu0 %vm6005_vm0, %v6004_v1  ;;  %5338 = vmatprep.subr.bf16.mxu1 %v5764_v46 }
  0x8b   :  { %v6368_v63 = vshrl.u32 %v1255_v60, 7  ;;  %v6370_v0 = vand.u32 127, %v1255_v60  ;;  %v5779_v60 = vld [vmem:[%s7423_s2 + $0x88] sm:$0xff]  }
  0x8d   :  { %5339 = vmatpush3.bf16.msra.mxu1 %v5764_v46  ;;  %v6373_v3 = vadd.s32 8, %v6368_v63  ;;  %v1278_v4 = vand.u32 15, %v6368_v63  ;;  %v6377_v5 = vadd.s32 16, %v6368_v63  ;;  %v6380_v6 = vadd.s32 24, %v6368_v63  ;;  %v5774_v46 = vld [vmem:[%s7423_s2 + $0x20] sm:$0xff]  }
  0x8e   :  { %5340 = vmatprep.subr.bf16.mxu1 %v5765_v47 }
  0x8f   :  { %v1285_v10 = vand.u32 15, %v6373_v3  ;;  %vm6384_vm7 = vcmp.eq.s32.totalorder %v1278_v4, %v6370_v0  ;;  %v1292_v12 = vand.u32 15, %v6377_v5  ;;  %v1299_v13 = vand.u32 15, %v6380_v6  ;;  %v5781_v4 = vld [vmem:[%s7423_s2 + $0x98] sm:$0xff]  }
  0x91   :  { %5331 = vmatmul.mubr.bf16.gmra.mrb[8].mxu0 %v6212_v62  ;;  %5341 = vmatpush3.bf16.msra.mxu1 %v5765_v47  ;;  %v6006_v62 = vmov 0.0|0.0   ;;  %vm1467_vm9 = vcmp.eq.s32.totalorder %v1285_v10, %v6370_v0  ;;  %vm1468_vm10 = vcmp.eq.s32.totalorder %v1292_v12, %v6370_v0  ;;  %vm1469_vm11 = vcmp.eq.s32.totalorder %v1299_v13, %v6370_v0  ;;  %v5775_v47 = vld [vmem:[%s7423_s2 + $0x28] sm:$0xff]   ;;  %v5785_v12 = vld [vmem:[%s7423_s2 + $0xb8] sm:$0xff]  }
  0x92   :  { %5446 = vmatprep.mubr.msk.f32.mxu0 %vm6005_vm0, %v6004_v1  ;;  %5342 = vmatprep.subr.bf16.mxu1 %v5766_v48  ;;  %vm5565_vm12 = vmpackc.low %vm1467_vm9, %vm6384_vm7 }
  0x93   :  { %5564 = vmatprep.subr.bf16.mxu0 %v6006_v62  ;;  %vm5568_vm13 = vmpackc.low %vm1469_vm11, %vm1468_vm10 }
  0x94   :  { %5566 = vmatpush3.bf16.msk.msra.mxu0 %vm5565_vm12, %v6007_v18 }
  0x95   :  { %5343 = vmatpush3.bf16.msra.mxu1 %v5766_v48  ;;  %5567 = vmatprep.subr.bf16.mxu0 %v6006_v62  ;;  %v5776_v48 = vld [vmem:[%s7423_s2 + $0x30] sm:$0xff]  }
  0x96   :  { %5344 = vmatprep.subr.bf16.mxu1 %v5767_v49 }
  0x98   :  { %5569 = vmatpush3.bf16.msk.msra.mxu0 %vm5568_vm13, %v6007_v18 }
  0x99   :  { %5345 = vmatpush3.bf16.msra.mxu1 %v5767_v49  ;;  %5570 = vmatprep.subr.bf16.mxu0 %v6006_v62 }
  0x9a   :  { %5346 = vmatprep.subr.bf16.mxu1 %v5768_v50 }
  0x9d   :  { %5347 = vmatpush3.bf16.msra.mxu1 %v5768_v50 }
  0x9e   :  { %5348 = vmatprep.subr.bf16.mxu1 %v5769_v51 }
  0xa1   :  { %5349 = vmatpush3.bf16.msra.mxu1 %v5769_v51  ;;  %v5777_v51 = vld [vmem:[%s7423_s2 + $0x38] sm:$0xff]  }
  0xa2   :  { %5354 = vmatprep.subr.bf16.mxu1 %v6364_v52 }
 0x154   :  { %v650_v53 = vpop.f32.mrb[0].mxu0 }
 0x155   :  { %vm679_vm4 = vcmp.gt.f32.partialorder %v650_v53, 0.0  ;;  %v685_v54 = vmul.f32 0.2, %v650_v53  ;;  %v5324_v55 = vpop.f32.mrb[1].mxu0 }
 0x156   :  { %v653_v56 = vpop.f32.mrb[2].mxu0  ;;  %v5778_v55 = vld [vmem:[%s7423_s2 + $0x80] sm:$0xff]  }
 0x157   :  { %v691_v57 = vsel %vm679_vm4, %v650_v53, %v685_v54  ;;  %vm680_vm5 = vcmp.gt.f32.partialorder %v653_v56, 0.0  ;;  %v686_v58 = vmul.f32 0.2, %v653_v56  ;;  %v5325_v59 = vpop.f32.mrb[3].mxu0 }
 0x158   :  { %699 = vst [vmem:[#allocation2 + $0x1] sm:$0xff] %v691_v57 }
 0x159   :  { %v692_v61 = vsel %vm680_vm5, %v653_v56, %v686_v58 }
 0x15a   :  { %700 = vst [vmem:[#allocation2 + $0x9] sm:$0xff] %v692_v61 }
 0x15c   :  { %v658_v2 = vpop.f32.mrb[4].mxu0 }
 0x15d   :  { %vm681_vm6 = vcmp.gt.f32.partialorder %v658_v2, 0.0  ;;  %v687_v7 = vmul.f32 0.2, %v658_v2  ;;  %v5328_v8 = vpop.f32.mrb[5].mxu0 }
 0x15e   :  { %v661_v9 = vpop.f32.mrb[6].mxu0  ;;  %v5783_v8 = vld [vmem:[%s7423_s2 + $0xa8] sm:$0xff]  }
 0x15f   :  { %v693_v14 = vsel %vm681_vm6, %v658_v2, %v687_v7  ;;  %vm682_vm8 = vcmp.gt.f32.partialorder %v661_v9, 0.0  ;;  %v688_v15 = vmul.f32 0.2, %v661_v9  ;;  %v5329_v16 = vpop.f32.mrb[7].mxu0  ;;  %v5780_v2 = vld [vmem:[%s7423_s2 + $0x90] sm:$0xff]   ;;  %v5782_v7 = vld [vmem:[%s7423_s2 + $0xa0] sm:$0xff]  }
 0x160   :  { %701 = vst [vmem:[#allocation2 + $0x11] sm:$0xff] %v693_v14  ;;  %v5786_v16 = vld [vmem:[%s7423_s2 + $0xc0] sm:$0xff]  }
 0x161   :  { %v694_v17 = vsel %vm682_vm8, %v661_v9, %v688_v15  ;;  %v712_v35 = vld [vmem:[#allocation2 + $0x1] ss:$2 sm:$0xff]  ;;  %v707_v40 = vld [vmem:[#allocation2] ss:$2 sm:$0xff]  ;;  %v5784_v9 = vld [vmem:[%s7423_s2 + $0xb0] sm:$0xff]  }
 0x162   :  { %704 = vst [vmem:[#allocation2 + $0x1b] sm:$0xff] %v694_v17 }
 0x164   :  { %v666_v19 = vpop.f32.mrb[8].mxu0 }
 0x165   :  { %vm683_vm14 = vcmp.gt.f32.partialorder %v666_v19, 0.0  ;;  %v689_v20 = vmul.f32 0.2, %v666_v19  ;;  %v5332_v21 = vpop.f32.mrb[9].mxu0 }
 0x166   :  { %v669_v22 = vpop.f32.mrb[10].mxu0 }
 0x167   :  { %v695_v23 = vsel %vm683_vm14, %v666_v19, %v689_v20  ;;  %vm684_vm15 = vcmp.gt.f32.partialorder %v669_v22, 0.0  ;;  %v690_v24 = vmul.f32 0.2, %v669_v22  ;;  %v5333_v25 = vpop.f32.mrb[11].mxu0 }
 0x168   :  { %705 = vst [vmem:[#allocation2 + $0x23] sm:$0xff] %v695_v23  ;;  %v714_v27 = vld [vmem:[#allocation2 + $0x11] ss:$2 sm:$0x1f] }
 0x169   :  { %v696_v26 = vsel %vm684_vm15, %v669_v22, %v690_v24  ;;  %v709_v36 = vld [vmem:[#allocation2 + $0x10] ss:$2 sm:$0x1f]  ;;  %v6401_v37 = vpack.c.bf16 %v714_v27, %v712_v35  ;;  %v5787_v22 = vld [vmem:[%s7423_s2 + $0xc8] sm:$0xff]   ;;  %v6497_v35 = vadd.s32 48, %v6368_v63 }
 0x16a   :  { %706 = vst [vmem:[#allocation2 + $0x2b] sm:$0xff] %v696_v26  ;;  %v710_v42 = vpack.c.bf16 %v709_v36, %v707_v40  ;;  %v5788_v24 = vld [vmem:[%s7423_s2 + $0xd0] sm:$0xff]   ;;  %v5789_v25 = vld [vmem:[%s7423_s2 + $0xd8] sm:$0xff]   ;;  %v5790_v26 = vld [vmem:[%s7423_s2 + $0xe0] sm:$0xff]   ;;  %v6500_v36 = vadd.s32 56, %v6368_v63  ;;  %v6512_v40 = vadd.s32 72, %v6368_v63 }
 0x16b   :  { %v1103_v13 = vshll.u32 %v6401_v37, 16  ;;  %v1101_v19 = vshrl.u32 %v6401_v37, 16  ;;  %v5791_v27 = vld [vmem:[%s7423_s2 + $0xe8] sm:$0xff]  }
 0x16c   :  { %v966_v57 = vshrl.u32 %v710_v42, 16 }
 0x16d   :  { %v1105_v17 = vrot.slane %v1103_v13, 1 }
 0x16f   :  { %v722_v28 = vld [vmem:[#allocation2 + $0x1b] ss:$2 sm:$0xff]  ;;  %v717_v29 = vld [vmem:[#allocation2 + $0x1a] ss:$2 sm:$0xff]  ;;  %v1106_v21 = vor.u32 %v1105_v17, %v1101_v19 }
 0x171   :  { %v724_v30 = vld [vmem:[#allocation2 + $0x2b] ss:$2 sm:$0x1f]  ;;  %v719_v32 = vld [vmem:[#allocation2 + $0x2a] ss:$2 sm:$0x1f] }
 0x172   :  { %v6399_v33 = vpack.c.bf16 %v724_v30, %v722_v28  ;;  %v720_v34 = vpack.c.bf16 %v719_v32, %v717_v29  ;;  %v5792_v28 = vld [vmem:[%s7423_s2 + $0xf0] sm:$0xff]   ;;  %v5793_v29 = vld [vmem:[%s7423_s2 + $0xf8] sm:$0xff]   ;;  %v6487_v30 = vadd.s32 32, %v6368_v63  ;;  %v6490_v32 = vadd.s32 40, %v6368_v63 }
 0x174   :  { %v751_v38 = vrot.slane %v6399_v33, 2  ;;  %v727_v39 = vrot.slane %v720_v34, 2  ;;  %v973_v49 = vshrl.u32 %v720_v34, 16  ;;  %v976_v50 = vshll.u32 %v720_v34, 16 }
 0x175   :  { %v1108_v10 = vshrl.u32 %v6399_v33, 16  ;;  %v1111_v11 = vshll.u32 %v6399_v33, 16  ;;  %v1306_v33 = vand.u32 15, %v6487_v30  ;;  %v1313_v34 = vand.u32 15, %v6490_v32 }
 0x176   :  { %v755_v41 = vsel %vm729_vm1, %v6401_v37, %v751_v38  ;;  %v732_v44 = vsel %vm729_vm1, %v710_v42, %v727_v39  ;;  %v975_v53 = vrot.slane %v973_v49, 2  ;;  %v978_v54 = vrot.slane %v976_v50, 3 }
 0x177   :  { %5350 = vmatprep.mubr.bf16.mxu1 %v755_v41  ;;  %v1110_v14 = vrot.slane %v1108_v10, 2  ;;  %v1113_v15 = vrot.slane %v1111_v11, 3  ;;  %vm1470_vm3 = vcmp.eq.s32.totalorder %v1306_v33, %v6370_v0  ;;  %vm1471_vm4 = vcmp.eq.s32.totalorder %v1313_v34, %v6370_v0 }
 0x178   :  { %5351 = vmatmul.mubr.bf16.vlgmr.msra.gmra.mrb[0].mxu1 %v751_v38  ;;  %v979_v58 = vor.u32 %v978_v54, %v975_v53  ;;  %vm5571_vm5 = vmpackc.low %vm1471_vm4, %vm1470_vm3  ;;  %v1320_v37 = vand.u32 15, %v6497_v35  ;;  %v1327_v38 = vand.u32 15, %v6500_v36  ;;  %v6545_v50 = vadd.s32 112, %v6368_v63 }
 0x179   :  { %5355 = vmatpush3.bf16.msra.mxu1 %v6364_v52  ;;  %5370 = vmatprep.mubr.bf16.mxu1 %v732_v44  ;;  %v968_v52 = vshll.u32 %v710_v42, 16  ;;  %v1114_v20 = vor.u32 %v1113_v15, %v1110_v14  ;;  %v1341_v42 = vand.u32 15, %v6512_v40  ;;  %v6524_v44 = vadd.s32 88, %v6368_v63 }
 0x17a   :  { %5356 = vmatprep.subr.bf16.mxu1 %v5771_v43  ;;  %5572 = vmatpush3.bf16.msk.msra.mxu0 %vm5571_vm5, %v6007_v18  ;;  %vm1472_vm6 = vcmp.eq.s32.totalorder %v1320_v37, %v6370_v0  ;;  %vm1473_vm7 = vcmp.eq.s32.totalorder %v1327_v38, %v6370_v0 }
 0x17b   :  { %v970_v56 = vrot.slane %v968_v52, 1  ;;  %v1118_v23 = vsel %vm729_vm1, %v1106_v21, %v1114_v20  ;;  %5573 = vmatprep.subr.bf16.mxu0 %v6006_v62  ;;  %vm5574_vm8 = vmpackc.low %vm1473_vm7, %vm1472_vm6  ;;  %vm1475_vm10 = vcmp.eq.s32.totalorder %v1341_v42, %v6370_v0  ;;  %v1376_v52 = vand.u32 15, %v6545_v50 }
 0x17d   :  { %5357 = vmatpush3.bf16.msra.mxu1 %v5771_v43  ;;  %v971_v59 = vor.u32 %v970_v56, %v966_v57  ;;  %v6521_v43 = vadd.s32 80, %v6368_v63  ;;  %vm1480_vm5 = vcmp.eq.s32.totalorder %v1376_v52, %v6370_v0  ;;  %v1598_v52 = vld [vmem:[%s7428_s7] sm:$0x1] }
 0x17e   :  { %5358 = vmatprep.subr.bf16.mxu1 %v5772_v45  ;;  %5575 = vmatpush3.bf16.msk.msra.mxu0 %vm5574_vm8, %v6007_v18  ;;  %vm1498_vm8 = vcmask 1040384  }
 0x17f   :  { %v983_v61 = vsel %vm729_vm1, %v971_v59, %v979_v58  ;;  %5576 = vmatprep.subr.bf16.mxu0 %v6006_v62 }
 0x181   :  { %5359 = vmatpush3.bf16.msra.mxu1 %v5772_v45  ;;  %v1348_v45 = vand.u32 15, %v6521_v43 }
 0x182   :  { %5360 = vmatprep.subr.bf16.mxu1 %v5773_v31 }
 0x183   :  { %vm1476_vm12 = vcmp.eq.s32.totalorder %v1348_v45, %v6370_v0  ;;  %v1577_v45 = vld [vmem:[%s7427_s6] sm:$0x1]  ;;  %s6009_s6 = smov 48  }
 0x185   :  { %5361 = vmatpush3.bf16.msra.mxu1 %v5773_v31  ;;  %v1355_v31 = vand.u32 15, %v6524_v44 }
 0x186   :  { %5362 = vmatprep.subr.bf16.mxu1 %v5774_v46 }
 0x187   :  { %vm1477_vm13 = vcmp.eq.s32.totalorder %v1355_v31, %v6370_v0 }
 0x188   :  { %vm5580_vm14 = vmpackc.low %vm1477_vm13, %vm1476_vm12  ;;  %vm1633_vm12 = vcmask 523264   ;;  %vm1635_vm13 = vcmask 654336  }
 0x189   :  { %5363 = vmatpush3.bf16.msra.mxu1 %v5774_v46  ;;  %v6533_v46 = vadd.s32 96, %v6368_v63 }
 0x18a   :  { %5364 = vmatprep.subr.bf16.mxu1 %v5775_v47 }
 0x18d   :  { %5365 = vmatpush3.bf16.msra.mxu1 %v5775_v47  ;;  %v6536_v47 = vadd.s32 104, %v6368_v63 }
 0x18e   :  { %5366 = vmatprep.subr.bf16.mxu1 %v5776_v48 }
 0x18f   :  { %v1369_v49 = vand.u32 15, %v6536_v47 }
 0x191   :  { %5367 = vmatpush3.bf16.msra.mxu1 %v5776_v48  ;;  %v1362_v48 = vand.u32 15, %v6533_v46  ;;  %vm1479_vm3 = vcmp.eq.s32.totalorder %v1369_v49, %v6370_v0 }
 0x192   :  { %5368 = vmatprep.subr.bf16.mxu1 %v5777_v51 }
 0x193   :  { %vm1478_vm15 = vcmp.eq.s32.totalorder %v1362_v48, %v6370_v0  ;;  %v6585_v48 = vsub.s32 0, %v6368_v63 }
 0x194   :  { %vm5583_vm4 = vmpackc.low %vm1479_vm3, %vm1478_vm15  ;;  %vm1639_vm15 = vcmask 916480  }
 0x195   :  { %5369 = vmatpush3.bf16.msra.mxu1 %v5777_v51  ;;  %v6548_v51 = vadd.s32 120, %v6368_v63 }
 0x196   :  { %5374 = vmatprep.subr.bf16.mxu1 %v5778_v55 }
 0x197   :  { %v1383_v53 = vand.u32 15, %v6548_v51 }
 0x198   :  { %5371 = vmatmul.mubr.bf16.vlgmr.msra.gmra.mrb[0].mxu1 %v727_v39  ;;  %v6509_v39 = vadd.s32 64, %v6368_v63 }
 0x199   :  { %5375 = vmatpush3.bf16.msra.mxu1 %v5778_v55  ;;  %5390 = vmatprep.mubr.bf16.mxu1 %v983_v61  ;;  %vm1481_vm6 = vcmp.eq.s32.totalorder %v1383_v53, %v6370_v0 }
 0x19a   :  { %5376 = vmatprep.subr.bf16.mxu1 %v5779_v60  ;;  %v1334_v41 = vand.u32 15, %v6509_v39  ;;  %vm5586_vm7 = vmpackc.low %vm1481_vm6, %vm1480_vm5 }
 0x19c   :  { %vm1474_vm9 = vcmp.eq.s32.totalorder %v1334_v41, %v6370_v0 }
 0x19d   :  { %5377 = vmatpush3.bf16.msra.mxu1 %v5779_v60  ;;  %vm5577_vm11 = vmpackc.low %vm1475_vm10, %vm1474_vm9  ;;  %vm1627_vm9 = vcmask 130048   ;;  %vm1629_vm10 = vcmask 261120  }
 0x19e   :  { %5378 = vmatprep.subr.bf16.mxu1 %v5780_v2  ;;  %5578 = vmatpush3.bf16.msk.msra.mxu0 %vm5577_vm11, %v6007_v18  ;;  %vm1631_vm11 = vcmask 392192  }
 0x19f   :  { %5579 = vmatprep.subr.bf16.mxu0 %v6006_v62 }
 0x1a1   :  { %5379 = vmatpush3.bf16.msra.mxu1 %v5780_v2 }
 0x1a2   :  { %5380 = vmatprep.subr.bf16.mxu1 %v5781_v4  ;;  %5581 = vmatpush3.bf16.msk.msra.mxu0 %vm5580_vm14, %v6007_v18  ;;  %vm1637_vm14 = vcmask 785408  }
 0x1a3   :  { %5582 = vmatprep.subr.bf16.mxu0 %v6006_v62 }
 0x1a5   :  { %5381 = vmatpush3.bf16.msra.mxu1 %v5781_v4 }
 0x1a6   :  { %5382 = vmatprep.subr.bf16.mxu1 %v5782_v7  ;;  %5584 = vmatpush3.bf16.msk.msra.mxu0 %vm5583_vm4, %v6007_v18 }
 0x1a7   :  { %5585 = vmatprep.subr.bf16.mxu0 %v6006_v62 }
 0x1a9   :  { %5383 = vmatpush3.bf16.msra.mxu1 %v5782_v7 }
 0x1aa   :  { %5384 = vmatprep.subr.bf16.mxu1 %v5783_v8  ;;  %5587 = vmatpush3.bf16.msk.msra.mxu0 %vm5586_vm7, %v6007_v18 }
 0x1ab   :  { %5588 = vmatprep.subr.bf16.mxu0 %v6006_v62 }
 0x1ad   :  { %5385 = vmatpush3.bf16.msra.mxu1 %v5783_v8 }
 0x1ae   :  { %5386 = vmatprep.subr.bf16.mxu1 %v5784_v9 }
 0x1b1   :  { %5387 = vmatpush3.bf16.msra.mxu1 %v5784_v9 }
 0x1b2   :  { %5388 = vmatprep.subr.bf16.mxu1 %v5785_v12 }
 0x1b5   :  { %5389 = vmatpush3.bf16.msra.mxu1 %v5785_v12 }
 0x1b6   :  { %5394 = vmatprep.subr.bf16.mxu1 %v5786_v16 }
 0x1b8   :  { %5391 = vmatmul.mubr.bf16.vlgmr.msra.gmra.mrb[0].mxu1 %v979_v58 }
 0x1b9   :  { %5395 = vmatpush3.bf16.msra.mxu1 %v5786_v16  ;;  %5410 = vmatprep.mubr.bf16.mxu1 %v1118_v23 }
 0x1ba   :  { %5396 = vmatprep.subr.bf16.mxu1 %v5787_v22 }
 0x1bd   :  { %5397 = vmatpush3.bf16.msra.mxu1 %v5787_v22 }
 0x1be   :  { %5398 = vmatprep.subr.bf16.mxu1 %v5788_v24 }
 0x1c1   :  { %5399 = vmatpush3.bf16.msra.mxu1 %v5788_v24 }
 0x1c2   :  { %5400 = vmatprep.subr.bf16.mxu1 %v5789_v25 }
 0x1c5   :  { %5401 = vmatpush3.bf16.msra.mxu1 %v5789_v25 }
 0x1c6   :  { %5402 = vmatprep.subr.bf16.mxu1 %v5790_v26 }
 0x1c9   :  { %5403 = vmatpush3.bf16.msra.mxu1 %v5790_v26 }
 0x1ca   :  { %5404 = vmatprep.subr.bf16.mxu1 %v5791_v27 }
 0x1cd   :  { %5405 = vmatpush3.bf16.msra.mxu1 %v5791_v27 }
 0x1ce   :  { %5406 = vmatprep.subr.bf16.mxu1 %v5792_v28 }
 0x1d1   :  { %5407 = vmatpush3.bf16.msra.mxu1 %v5792_v28 }
 0x1d2   :  { %5408 = vmatprep.subr.bf16.mxu1 %v5793_v29 }
 0x1d5   :  { %5409 = vmatpush3.bf16.msra.mxu1 %v5793_v29  ;;  %v6008_v29 = vmov 1966171168  }
 0x1d6   :  { %5449 = vmatprep.subr.bf16.mxu1 %v6004_v1  ;;  %v1582_v33 = vunpack.c.l.s4 %v6008_v29 }
 0x1d8   :  { %5411 = vmatmul.mubr.bf16.vlgmr.msra.gmra.mrb[0].mxu1 %v1114_v20  ;;  %v1583_v34 = vunpack.c.0.s8 %v1582_v33  ;;  %v2242_v33 = vand.u32 31, %v6487_v30 }
 0x1d9   :  { %5465 = vmatprep.mubr.msk.bf16.mxu1 %vm6005_vm0, %v6004_v1 }
 0x1da   :  { %v6577_v37 = vsub.s32 %v1583_v34, %v6368_v63  ;;  %v2249_v34 = vand.u32 31, %v6490_v32 }
 0x2ab   :  { %v6558_v54 = vpop.f32.mrb[0].mxu1 }
 0x2ac   :  { %v6560_v55 = vpop.f32.mrb[1].mxu1  ;;  %v1246_v61 = vmul.f32 %v6558_v54, %v6558_v54 }
 0x2ad   :  { %v5413_v56 = vpop.f32.mrb[2].mxu1  ;;  %v1244_v58 = vmul.f32 %v6560_v55, %v6560_v55 }
 0x2ae   :  { %v6562_v57 = vpop.f32.mrb[3].mxu1 }
 0x2af   :  { %v1236_v59 = vadd.f32 %v6562_v57, %v6560_v55  ;;  %v1245_v60 = vmul.f32 %v6562_v57, %v6562_v57 }
 0x2b1   :  { %v1237_v2 = vadd.f32 %v6558_v54, %v1236_v59  ;;  %v1247_v4 = vadd.f32 %v1245_v60, %v1244_v58  ;;  %v5794_v58 = vld [vmem:[%s7424_s3 + $0x40] sm:$0xff]  }
 0x2b2   :  { %5450 = vmatpush3.bf16.msra.mxu1 %v5794_v58 }
 0x2b3   :  { %v1238_v7 = vrot.slane %v1237_v2, 4  ;;  %v1248_v8 = vadd.f32 %v1247_v4, %v1246_v61  ;;  %5451 = vmatprep.subr.bf16.mxu1 %v6004_v1  ;;  %v5795_v61 = vld [vmem:[%s7424_s3 + $0x48] sm:$0xff]   ;;  %v5797_v4 = vld [vmem:[%s7424_s3 + $0x58] sm:$0xff]  }
 0x2b5   :  { %v1239_v9 = vadd.f32 %v1238_v7, %v1237_v2  ;;  %v1249_v10 = vrot.slane %v1248_v8, 4  ;;  %v5796_v2 = vld [vmem:[%s7424_s3 + $0x50] sm:$0xff]   ;;  %v5798_v7 = vld [vmem:[%s7424_s3 + $0x60] sm:$0xff]  }
 0x2b6   :  { %5452 = vmatpush3.bf16.msra.mxu1 %v5795_v61 }
 0x2b7   :  { %v1240_v11 = vrot.slane %v1239_v9, 2  ;;  %v1250_v12 = vadd.f32 %v1249_v10, %v1248_v8  ;;  %5453 = vmatprep.subr.bf16.mxu1 %v6004_v1  ;;  %v5799_v8 = vld [vmem:[%s7424_s3 + $0x68] sm:$0xff]   ;;  %v5801_v10 = vld [vmem:[%s7424_s3 + $0x78] sm:$0xff]  }
 0x2b9   :  { %v1241_v13 = vadd.f32 %v1240_v11, %v1239_v9  ;;  %v1251_v14 = vrot.slane %v1250_v12, 2  ;;  %v5800_v9 = vld [vmem:[%s7424_s3 + $0x70] sm:$0xff]  }
 0x2ba   :  { %5454 = vmatpush3.bf16.msra.mxu1 %v5796_v2 }
 0x2bb   :  { %v1242_v15 = vrot.slane %v1241_v13, 1  ;;  %v1252_v16 = vadd.f32 %v1251_v14, %v1250_v12  ;;  %5455 = vmatprep.subr.bf16.mxu1 %v6004_v1 }
 0x2bd   :  { %v1253_v17 = vrot.slane %v1252_v16, 1  ;;  %v1243_v19 = vadd.f32 %v1242_v15, %v1241_v13 }
 0x2be   :  { %5456 = vmatpush3.bf16.msra.mxu1 %v5797_v4 }
 0x2bf   :  { %v1254_v20 = vadd.f32 %v1253_v17, %v1252_v16  ;;  %5457 = vmatprep.subr.bf16.mxu1 %v6004_v1 }
 0x2c1   :  { %v1499_v21 = vsel %vm1498_vm8, %v1243_v19, %v1254_v20 }
 0x2c2   :  { %5447 = vmatmul.mubr.f32.vlgmr.msra.gmra.mrb[12].mxu0 %v1499_v21  ;;  %5458 = vmatpush3.bf16.msra.mxu1 %v5798_v7 }
 0x2c3   :  { %5561 = vmatprep.mubr.msk.f32.mxu0 %vm6005_vm0, %v6004_v1  ;;  %5459 = vmatprep.subr.bf16.mxu1 %v6004_v1 }
 0x2c6   :  { %5460 = vmatpush3.bf16.msra.mxu1 %v5799_v8 }
 0x2c7   :  { %5461 = vmatprep.subr.bf16.mxu1 %v6004_v1 }
 0x2ca   :  { %5462 = vmatpush3.bf16.msra.mxu1 %v5800_v9 }
 0x2cb   :  { %5463 = vmatprep.subr.bf16.mxu1 %v6004_v1 }
 0x2ce   :  { %5464 = vmatpush3.bf16.msra.mxu1 %v5801_v10 }
 0x2cf   :  { %5469 = vmatprep.subr.bf16.mxu1 %v6004_v1 }
 0x395   :  { %v1566_v22 = vpop.f32.mrb[12].mxu0 }
 0x396   :  { %v1571_v23 = vmul.f32 0.0052083335, %v1566_v22  ;;  %v5448_v24 = vpop.f32.mrb[13].mxu0 }
 0x398   :  { %v1572_v25 = vmul.f32 %v1571_v23, %v1571_v23 }
 0x39a   :  { %v1574_v26 = vrot.slane %v1572_v25, 7  ;;  %v2214_v25 = vand.u32 31, %v6368_v63 }
 0x39c   :  { %v1576_v27 = vsub.f32 %v1571_v23, %v1574_v26  ;;  %v2221_v26 = vand.u32 31, %v6373_v3  ;;  %vm2402_vm3 = vcmp.eq.s32.totalorder %v2214_v25, %v6370_v0 }
 0x39e   :  { %v1578_v28 = vadd.f32 1e-05, %v1576_v27  ;;  %v2228_v27 = vand.u32 31, %v6377_v5  ;;  %vm2403_vm4 = vcmp.eq.s32.totalorder %v2221_v26, %v6370_v0 }
 0x39f   :  { %vm5589_vm7 = vmpackc.low %vm2403_vm4, %vm2402_vm3  ;;  %vm6674_vm4 = vcmp.eq.s32.totalorder %v2249_v34, %v6370_v0 }
 0x3a0   :  { %5970 = vrsqrt.f32 %v1578_v28  ;;  %v2235_v28 = vand.u32 31, %v6380_v6  ;;  %vm6646_vm5 = vcmp.eq.s32.totalorder %v2228_v27, %v6370_v0  ;;  %5590 = vmatpush3.bf16.msk.msra.mxu0 %vm5589_vm7, %v6007_v18  ;;  %v5802_v27 = vld [vmem:[%s7424_s3] sm:$0xff]  }
 0x3a1   :  { %5591 = vmatprep.subr.bf16.mxu0 %v6006_v62 }
 0x3a2   :  { %vm6651_vm6 = vcmp.eq.s32.totalorder %v2235_v28, %v6370_v0 }
 0x3a3   :  { %vm5592_vm3 = vmpackc.low %vm6651_vm6, %vm6646_vm5 }
 0x3a4   :  { %5593 = vmatpush3.bf16.msk.msra.mxu0 %vm5592_vm3, %v6007_v18 }
 0x3a5   :  { %5594 = vmatprep.subr.bf16.mxu0 %v6006_v62 }
 0x3aa   :  { %v5971_v38 = vpop.eup %5970 }
 0x3ab   :  { %v1587_v41 = vrot.slane %v5971_v38, %v6577_v37 }
 0x3ad   :  { %v1588_v42 = vcombine.high %v1587_v41, %v1587_v41 }
 0x3af   :  { %v1595_v31 = vrot.slane %v1588_v42, %v6577_v37 }
 0x3b1   :  { %v1597_v49 = vmul.f32 %v1595_v31, %v1577_v45 }
 0x3b3   :  { %v1599_v53 = vmul.f32 %v1597_v49, %v1571_v23  ;;  %v1605_v56 = vrot.slane %v1597_v49, %v6585_v48 }
 0x3b5   :  { %v6594_v59 = vsub.f32 %v1598_v52, %v1599_v53  ;;  %1612 = vrot.lane.b32.xlu1 %v1605_v56, %s6009_s6  ;;  %1606 = vrot.lane.b32.xlu0 %v1605_v56, %s6010_s15 }
 0x3b7   :  { %v1652_v60 = vrot.slane %v6594_v59, %v6585_v48 }
 0x3b9   :  { %1609 = vrot.lane.b32.xlu0 %v1605_v56, %s6011_s17  ;;  %1653 = vrot.lane.b32.xlu1 %v1652_v60, %s6010_s15 }
 0x3bd   :  { %1615 = vrot.lane.b32.xlu0 %v1605_v56, %s6012_s19  ;;  %1656 = vrot.lane.b32.xlu1 %v1652_v60, %s6011_s17 }
 0x3c1   :  { %1618 = vrot.lane.b32.xlu0 %v1605_v56, %s6013_s20  ;;  %1659 = vrot.lane.b32.xlu1 %v1652_v60, %s6009_s6 }
 0x3c5   :  { %1621 = vrot.lane.b32.xlu0 %v1605_v56, %s6014_s23  ;;  %1662 = vrot.lane.b32.xlu1 %v1652_v60, %s6012_s19 }
 0x3c9   :  { %1624 = vrot.lane.b32.xlu0 %v1605_v56, %s6015_s25  ;;  %1665 = vrot.lane.b32.xlu1 %v1652_v60, %s6013_s20 }
 0x3cd   :  { %1668 = vrot.lane.b32.xlu0 %v1652_v60, %s6014_s23  ;;  %1671 = vrot.lane.b32.xlu1 %v1652_v60, %s6015_s25  ;;  %v5807_v60 = vld [vmem:[%s7424_s3 + $0x28] sm:$0xff]  }
 0x427   :  { %v1613_v11 = vpop.permute.xlu1 %1612  ;;  %v1607_v12 = vpop.permute.xlu0 %1606 }
 0x428   :  { %v1628_v17 = vsel %vm1627_vm9, %v1597_v49, %v1607_v12 }
 0x42b   :  { %v1610_v13 = vpop.permute.xlu0 %1609  ;;  %v1654_v14 = vpop.permute.xlu1 %1653 }
 0x42c   :  { %v1630_v19 = vsel %vm1629_vm10, %v1628_v17, %v1610_v13  ;;  %v1674_v45 = vsel %vm1627_vm9, %v6594_v59, %v1654_v14  ;;  %vm6669_vm9 = vcmp.eq.s32.totalorder %v2242_v33, %v6370_v0  ;;  %v5806_v59 = vld [vmem:[%s7424_s3 + $0x20] sm:$0xff]  }
 0x42d   :  { %v1632_v22 = vsel %vm1631_vm11, %v1630_v19, %v1613_v11 }
 0x42f   :  { %v1616_v15 = vpop.permute.xlu0 %1615  ;;  %v1657_v16 = vpop.permute.xlu1 %1656 }
 0x430   :  { %v1634_v29 = vsel %vm1633_vm12, %v1632_v22, %v1616_v15  ;;  %v1675_v53 = vsel %vm1629_vm10, %v1674_v45, %v1657_v16  ;;  %v5803_v45 = vld [vmem:[%s7424_s3 + $0x8] sm:$0xff]  }
 0x433   :  { %v1619_v20 = vpop.permute.xlu0 %1618  ;;  %v1660_v21 = vpop.permute.xlu1 %1659 }
 0x434   :  { %v1636_v42 = vsel %vm1635_vm13, %v1634_v29, %v1619_v20  ;;  %v1676_v58 = vsel %vm1631_vm11, %v1675_v53, %v1660_v21  ;;  %vm5595_vm11 = vmpackc.low %vm6674_vm4, %vm6669_vm9  ;;  %v5804_v53 = vld [vmem:[%s7424_s3 + $0x10] sm:$0xff]  }
 0x435   :  { %5596 = vmatpush3.bf16.msk.msra.mxu0 %vm5595_vm11, %v6007_v18 }
 0x436   :  { %5597 = vmatprep.subr.bf16.mxu0 %v6006_v62 }
 0x437   :  { %v1622_v23 = vpop.permute.xlu0 %1621  ;;  %v1663_v24 = vpop.permute.xlu1 %1662 }
 0x438   :  { %v1638_v31 = vsel %vm1637_vm14, %v1636_v42, %v1622_v23  ;;  %v1677_v61 = vsel %vm1633_vm12, %v1676_v58, %v1663_v24  ;;  %v5805_v58 = vld [vmem:[%s7424_s3 + $0x18] sm:$0xff]  }
 0x43b   :  { %v1625_v49 = vpop.permute.xlu0 %1624  ;;  %v1666_v52 = vpop.permute.xlu1 %1665 }
 0x43c   :  { %v1640_v56 = vsel %vm1639_vm15, %v1638_v31, %v1625_v49  ;;  %v1678_v4 = vsel %vm1635_vm13, %v1677_v61, %v1666_v52 }
 0x43d   :  { %v1644_v2 = vrot.slane %v1640_v56, %v6585_v48 }
 0x43f   :  { %v1669_v7 = vpop.permute.xlu0 %1668  ;;  %v1672_v8 = vpop.permute.xlu1 %1671  ;;  %v1645_v11 = vmul.f32 %v1644_v2, %v6560_v55  ;;  %v1646_v12 = vmul.f32 %v1644_v2, %v6562_v57  ;;  %v1647_v13 = vmul.f32 %v6558_v54, %v1644_v2  ;;  %v5808_v2 = vld [vmem:[%s7424_s3 + $0x30] sm:$0xff]  }
 0x440   :  { %v1679_v9 = vsel %vm1637_vm14, %v1678_v4, %v1669_v7  ;;  %v5809_v7 = vld [vmem:[%s7424_s3 + $0x38] sm:$0xff]  }
 0x441   :  { %v1680_v10 = vsel %vm1639_vm15, %v1679_v9, %v1672_v8  ;;  %vm1718_vm15 = vcmask 1042432  }
 0x442   :  { %v1684_v14 = vrot.slane %v1680_v10, %v6585_v48 }
 0x444   :  { %v1685_v15 = vadd.f32 %v1684_v14, %v1645_v11  ;;  %v1686_v16 = vadd.f32 %v1684_v14, %v1646_v12  ;;  %v1687_v17 = vadd.f32 %v1684_v14, %v1647_v13  ;;  %v5810_v11 = vld [vmem:[%s7424_s3 + $0x80] sm:$0xff]   ;;  %v5811_v13 = vld [vmem:[%s7424_s3 + $0x88] sm:$0xff]   ;;  %v5812_v14 = vld [vmem:[%s7424_s3 + $0x90] sm:$0xff]  }
 0x446   :  { %vm1688_vm13 = vcmp.gt.f32.partialorder %v1685_v15, 0.0  ;;  %vm1689_vm5 = vcmp.gt.f32.partialorder %v1686_v16, 0.0  ;;  %vm1690_vm6 = vcmp.gt.f32.partialorder %v1687_v17, 0.0  ;;  %v1691_v19 = vmul.f32 0.2, %v1685_v15 }
 0x447   :  { %v1692_v20 = vmul.f32 0.2, %v1686_v16  ;;  %v1693_v21 = vmul.f32 0.2, %v1687_v17 }
 0x448   :  { %v1694_v55 = vsel %vm1688_vm13, %v1685_v15, %v1691_v19  ;;  %v5813_v15 = vld [vmem:[%s7424_s3 + $0x98] sm:$0xff]  }
 0x449   :  { %v1695_v22 = vsel %vm1689_vm5, %v1686_v16, %v1692_v20  ;;  %v1696_v57 = vsel %vm1690_vm6, %v1687_v17, %v1693_v21  ;;  %1699 = vst [vmem:[#allocation3 + $0x1] sm:$0xff] %v1694_v55  ;;  %v5814_v16 = vld [vmem:[%s7424_s3 + $0xa0] sm:$0xff]   ;;  %v5815_v17 = vld [vmem:[%s7424_s3 + $0xa8] sm:$0xff]   ;;  %v5816_v55 = vld [vmem:[%s7424_s3 + $0xb0] sm:$0xff]  }
 0x44a   :  { %1700 = vst [vmem:[#allocation3 + $0x9] ss:$6 sps:$4 sm:$0xff] %v1695_v22   ;;  %1704 = vst [vmem:[#allocation3 + $0x13] sm:$0xff] %v1696_v57 }
 0x451   :  { %v1708_v54 = vld [vmem:[#allocation3 + $0x1] ss:$2 sm:$0x7f]  ;;  %v1714_v23 = vld [vmem:[#allocation3 + $0xf] ss:$2 sm:$0x7f] }
 0x452   :  { %v1709_v24 = vpack.c.bf16 %v1708_v54, %v1708_v54  ;;  %v1715_v25 = vpack.c.bf16 %v1714_v23, %v1714_v23  ;;  %v1711_v61 = vld [vmem:[#allocation3 + $0xe] ss:$2 sm:$0x7f]  ;;  %v1705_v8 = vld [vmem:[#allocation3] ss:$2 sm:$0x7f] }
 0x453   :  { %v1712_v4 = vpack.c.bf16 %v1711_v61, %v1711_v61  ;;  %v1706_v10 = vpack.c.bf16 %v1705_v8, %v1705_v8  ;;  %v5817_v23 = vld [vmem:[%s7424_s3 + $0xb8] sm:$0xff]   ;;  %v2319_v61 = vand.u32 31, %v6548_v51 }
 0x454   :  { %v1740_v26 = vrot.slane %v1715_v25, 5  ;;  %v2068_v28 = vshll.u32 %v1709_v24, 16  ;;  %v2073_v29 = vshrl.u32 %v1715_v25, 16  ;;  %v2066_v38 = vshrl.u32 %v1709_v24, 16 }
 0x455   :  { %v2076_v42 = vshll.u32 %v1715_v25, 16  ;;  %v1717_v9 = vrot.slane %v1712_v4, 5  ;;  %v1942_v19 = vshll.u32 %v1706_v10, 16  ;;  %v1947_v20 = vshrl.u32 %v1712_v4, 16 }
 0x456   :  { %v1743_v33 = vsel %vm1718_vm15, %v1709_v24, %v1740_v26  ;;  %v2070_v34 = vrot.slane %v2068_v28, 1  ;;  %v2075_v41 = vrot.slane %v2073_v29, 5  ;;  %v1950_v21 = vshll.u32 %v1712_v4, 16  ;;  %v5819_v29 = vld [vmem:[%s7424_s3 + $0xc8] sm:$0xff]  }
 0x457   :  { %5466 = vmatmul.mubr.bf16.vlgmr.msra.gmra.mrb[4].mxu1 %v1743_v33  ;;  %v2078_v49 = vrot.slane %v2076_v42, 6  ;;  %v1721_v12 = vsel %vm1718_vm15, %v1706_v10, %v1717_v9  ;;  %v1944_v22 = vrot.slane %v1942_v19, 1  ;;  %v1949_v57 = vrot.slane %v1947_v20, 5  ;;  %v5820_v33 = vld [vmem:[%s7424_s3 + $0xd0] sm:$0xff]  }
 0x458   :  { %5470 = vmatpush3.bf16.msra.mxu1 %v5802_v27  ;;  %5485 = vmatprep.mubr.msk.bf16.mxu1 %vm6005_vm0, %v6004_v1  ;;  %v2071_v31 = vor.u32 %v2070_v34, %v2066_v38  ;;  %v1952_v54 = vrot.slane %v1950_v21, 6  ;;  %v1940_v24 = vshrl.u32 %v1706_v10, 16  ;;  %v5818_v27 = vld [vmem:[%s7424_s3 + $0xc0] sm:$0xff]   ;;  %v5821_v34 = vld [vmem:[%s7424_s3 + $0xd8] sm:$0xff]   ;;  %v5824_v42 = vld [vmem:[%s7424_s3 + $0xf0] sm:$0xff]  }
 0x459   :  { %5471 = vmatprep.subr.bf16.mxu1 %v6004_v1  ;;  %v2079_v52 = vor.u32 %v2078_v49, %v2075_v41  ;;  %v5822_v38 = vld [vmem:[%s7424_s3 + $0xe0] sm:$0xff]   ;;  %v5823_v41 = vld [vmem:[%s7424_s3 + $0xe8] sm:$0xff]   ;;  %v2263_v49 = vand.u32 31, %v6500_v36 }
 0x45a   :  { %v1945_v25 = vor.u32 %v1944_v22, %v1940_v24  ;;  %v1953_v26 = vor.u32 %v1952_v54, %v1949_v57 }
 0x45b   :  { %v6710_v56 = vsel %vm1718_vm15, %v2071_v31, %v2079_v52  ;;  %v2256_v31 = vand.u32 31, %v6497_v35  ;;  %vm2409_vm7 = vcmp.eq.s32.totalorder %v2263_v49, %v6370_v0  ;;  %v2270_v52 = vand.u32 31, %v6509_v39  ;;  %v5831_v49 = vld [vmem:[%s7425_s4 + $0x94] ss:$8 sps:$4 sm:$0xff]  }
 0x45c   :  { %5472 = vmatpush3.bf16.msra.mxu1 %v5803_v45  ;;  %v1956_v28 = vsel %vm1718_vm15, %v1945_v25, %v1953_v26  ;;  %v5825_v45 = vld [vmem:[%s7424_s3 + $0xf8] sm:$0xff]  }
 0x45d   :  { %5473 = vmatprep.subr.bf16.mxu1 %v6004_v1  ;;  %vm2410_vm9 = vcmp.eq.s32.totalorder %v2270_v52, %v6370_v0  ;;  %v2512_v52 = vld [vmem:[%s7429_s8] sm:$0x1] }
 0x460   :  { %5474 = vmatpush3.bf16.msra.mxu1 %v5804_v53  ;;  %v2277_v53 = vand.u32 31, %v6512_v40 }
 0x461   :  { %5475 = vmatprep.subr.bf16.mxu1 %v6004_v1 }
 0x462   :  { %vm2411_vm4 = vcmp.eq.s32.totalorder %v2277_v53, %v6370_v0  ;;  %v5829_v53 = vld [vmem:[%s7425_s4 + $0x90] ss:$8 sps:$4 sm:$0xff]  }
 0x463   :  { %vm5601_vm11 = vmpackc.low %vm2411_vm4, %vm2410_vm9 }
 0x464   :  { %5476 = vmatpush3.bf16.msra.mxu1 %v5805_v58  ;;  %v2298_v58 = vand.u32 31, %v6533_v46 }
 0x465   :  { %5477 = vmatprep.subr.bf16.mxu1 %v6004_v1 }
 0x466   :  { %vm2414_vm15 = vcmp.eq.s32.totalorder %v2298_v58, %v6370_v0  ;;  %v5834_v58 = vld [vmem:[%s7425_s4 + $0xa4] ss:$8 sps:$4 sm:$0xff]  }
 0x468   :  { %5478 = vmatpush3.bf16.msra.mxu1 %v5806_v59  ;;  %v2305_v59 = vand.u32 31, %v6536_v47 }
 0x469   :  { %5479 = vmatprep.subr.bf16.mxu1 %v6004_v1 }
 0x46c   :  { %5480 = vmatpush3.bf16.msra.mxu1 %v5807_v60  ;;  %v2312_v60 = vand.u32 31, %v6545_v50 }
 0x46d   :  { %5481 = vmatprep.subr.bf16.mxu1 %v6004_v1 }
 0x470   :  { %5482 = vmatpush3.bf16.msra.mxu1 %v5808_v2 }
 0x471   :  { %5483 = vmatprep.subr.bf16.mxu1 %v6004_v1 }
 0x474   :  { %5484 = vmatpush3.bf16.msra.mxu1 %v5809_v7 }
 0x475   :  { %5489 = vmatprep.subr.bf16.mxu1 %v6004_v1 }
 0x477   :  { %5486 = vmatmul.mubr.bf16.vlgmr.msra.gmra.mrb[4].mxu1 %v1721_v12 }
 0x478   :  { %5490 = vmatpush3.bf16.msra.mxu1 %v5810_v11  ;;  %5505 = vmatprep.mubr.msk.bf16.mxu1 %vm6005_vm0, %v6004_v1 }
 0x479   :  { %5491 = vmatprep.subr.bf16.mxu1 %v6004_v1 }
 0x47c   :  { %5492 = vmatpush3.bf16.msra.mxu1 %v5811_v13 }
 0x47d   :  { %5493 = vmatprep.subr.bf16.mxu1 %v6004_v1 }
 0x480   :  { %5494 = vmatpush3.bf16.msra.mxu1 %v5812_v14 }
 0x481   :  { %5495 = vmatprep.subr.bf16.mxu1 %v6004_v1 }
 0x484   :  { %5496 = vmatpush3.bf16.msra.mxu1 %v5813_v15 }
 0x485   :  { %5497 = vmatprep.subr.bf16.mxu1 %v6004_v1 }
 0x488   :  { %5498 = vmatpush3.bf16.msra.mxu1 %v5814_v16 }
 0x489   :  { %5499 = vmatprep.subr.bf16.mxu1 %v6004_v1 }
 0x48c   :  { %5500 = vmatpush3.bf16.msra.mxu1 %v5815_v17 }
 0x48d   :  { %5501 = vmatprep.subr.bf16.mxu1 %v6004_v1 }
 0x490   :  { %5502 = vmatpush3.bf16.msra.mxu1 %v5816_v55 }
 0x491   :  { %5503 = vmatprep.subr.bf16.mxu1 %v6004_v1 }
 0x494   :  { %5504 = vmatpush3.bf16.msra.mxu1 %v5817_v23 }
 0x495   :  { %5509 = vmatprep.subr.bf16.mxu1 %v6004_v1 }
 0x497   :  { %5506 = vmatmul.mubr.bf16.vlgmr.msra.gmra.mrb[4].mxu1 %v1956_v28 }
 0x498   :  { %5510 = vmatpush3.bf16.msra.mxu1 %v5818_v27  ;;  %5525 = vmatprep.mubr.msk.bf16.mxu1 %vm6005_vm0, %v6004_v1  ;;  %vm2408_vm0 = vcmp.eq.s32.totalorder %v2256_v31, %v6370_v0 }
 0x499   :  { %5511 = vmatprep.subr.bf16.mxu1 %v6004_v1  ;;  %vm5598_vm3 = vmpackc.low %vm2409_vm7, %vm2408_vm0  ;;  %vm2415_vm0 = vcmp.eq.s32.totalorder %v2305_v59, %v6370_v0  ;;  %vm2416_vm7 = vcmp.eq.s32.totalorder %v2312_v60, %v6370_v0  ;;  %v2533_v59 = vld [vmem:[%s7430_s9] sm:$0x1] }
 0x49a   :  { %5599 = vmatpush3.bf16.msk.msra.mxu0 %vm5598_vm3, %v6007_v18  ;;  %vm2417_vm3 = vcmp.eq.s32.totalorder %v2319_v61, %v6370_v0  ;;  %vm5607_vm9 = vmpackc.low %vm2415_vm0, %vm2414_vm15  ;;  %v5832_v60 = vld [vmem:[%s7425_s4 + $0xa0] ss:$8 sps:$4 sm:$0xff]  }
 0x49b   :  { %5600 = vmatprep.subr.bf16.mxu0 %v6006_v62  ;;  %vm5610_vm4 = vmpackc.low %vm2417_vm3, %vm2416_vm7 }
 0x49c   :  { %5512 = vmatpush3.bf16.msra.mxu1 %v5819_v29 }
 0x49d   :  { %5513 = vmatprep.subr.bf16.mxu1 %v6004_v1 }
 0x49e   :  { %5602 = vmatpush3.bf16.msk.msra.mxu0 %vm5601_vm11, %v6007_v18 }
 0x49f   :  { %5603 = vmatprep.subr.bf16.mxu0 %v6006_v62 }
 0x4a0   :  { %5514 = vmatpush3.bf16.msra.mxu1 %v5820_v33 }
 0x4a1   :  { %5515 = vmatprep.subr.bf16.mxu1 %v6004_v1 }
 0x4a4   :  { %5516 = vmatpush3.bf16.msra.mxu1 %v5821_v34 }
 0x4a5   :  { %5517 = vmatprep.subr.bf16.mxu1 %v6004_v1 }
 0x4a8   :  { %5518 = vmatpush3.bf16.msra.mxu1 %v5822_v38  ;;  %v5826_v38 = vld [vmem:[%s7425_s4 + $0x80] ss:$8 sps:$4 sm:$0xff]  }
 0x4a9   :  { %5519 = vmatprep.subr.bf16.mxu1 %v6004_v1 }
 0x4ac   :  { %5520 = vmatpush3.bf16.msra.mxu1 %v5823_v41  ;;  %v5828_v41 = vld [vmem:[%s7425_s4 + $0x84] ss:$8 sps:$4 sm:$0xff]  }
 0x4ad   :  { %5521 = vmatprep.subr.bf16.mxu1 %v6004_v1 }
 0x4b0   :  { %5522 = vmatpush3.bf16.msra.mxu1 %v5824_v42 }
 0x4b1   :  { %5523 = vmatprep.subr.bf16.mxu1 %v6004_v1  ;;  %v2284_v1 = vand.u32 31, %v6521_v43 }
 0x4b3   :  { %vm2412_vm13 = vcmp.eq.s32.totalorder %v2284_v1, %v6370_v0 }
 0x4b4   :  { %5524 = vmatpush3.bf16.msra.mxu1 %v5825_v45 }
 0x4b7   :  { %5526 = vmatmul.mubr.bf16.vlgmr.msra.gmra.mrb[4].mxu1 %v6710_v56  ;;  %v2291_v56 = vand.u32 31, %v6524_v44 }
 0x4b9   :  { %vm2413_vm5 = vcmp.eq.s32.totalorder %v2291_v56, %v6370_v0 }
 0x4ba   :  { %vm5604_vm6 = vmpackc.low %vm2413_vm5, %vm2412_vm13 }
 0x4bb   :  { %5605 = vmatpush3.bf16.msk.msra.mxu0 %vm5604_vm6, %v6007_v18 }
 0x4bc   :  { %5606 = vmatprep.subr.bf16.mxu0 %v6006_v62 }
 0x4bf   :  { %5608 = vmatpush3.bf16.msk.msra.mxu0 %vm5607_vm9, %v6007_v18 }
 0x4c0   :  { %5609 = vmatprep.subr.bf16.mxu0 %v6006_v62 }
 0x4c3   :  { %5611 = vmatpush3.bf16.msk.msra.mxu0 %vm5610_vm4, %v6007_v18 }
 0x4c4   :  { %2742 = vmatprep.subr.bf16.mxu0 %v5828_v41 }
 0x58a   :  { %v6832_v2 = vpop.f32.mrb[4].mxu1 }
 0x58b   :  { %v5527_v4 = vpop.f32.mrb[5].mxu1  ;;  %v2200_v11 = vmul.f32 %v6832_v2, %v6832_v2 }
 0x58c   :  { %v6834_v7 = vpop.f32.mrb[6].mxu1 }
 0x58d   :  { %v2192_v8 = vsel %vm84_vm2, %v6834_v7, 0.0  ;;  %v2201_v9 = vmul.f32 %v6834_v7, %v6834_v7  ;;  %v5528_v10 = vpop.f32.mrb[7].mxu1 }
 0x58e   :  { %v2193_v62 = vadd.f32 %v2192_v8, %v6832_v2  ;;  %v5835_v10 = vld [vmem:[%s7425_s4 + $0xb0] ss:$8 sps:$4 sm:$0xff]  }
 0x58f   :  { %v2202_v12 = vsel %vm84_vm2, %v2201_v9, 0.0  ;;  %v5837_v9 = vld [vmem:[%s7425_s4 + $0xb4] ss:$8 sps:$4 sm:$0xff]  }
 0x590   :  { %v2194_v13 = vrot.slane %v2193_v62, 4  ;;  %v2203_v14 = vadd.f32 %v2202_v12, %v2200_v11  ;;  %v5840_v12 = vld [vmem:[%s7425_s4 + $0xc4] ss:$8 sps:$4 sm:$0xff]  }
 0x592   :  { %v2195_v15 = vadd.f32 %v2194_v13, %v2193_v62  ;;  %v2204_v16 = vrot.slane %v2203_v14, 4  ;;  %v5838_v62 = vld [vmem:[%s7425_s4 + $0xc0] ss:$8 sps:$4 sm:$0xff]   ;;  %v5843_v13 = vld [vmem:[%s7425_s4 + $0xd4] ss:$8 sps:$4 sm:$0xff]  }
 0x594   :  { %v2196_v17 = vrot.slane %v2195_v15, 2  ;;  %v2205_v19 = vadd.f32 %v2204_v16, %v2203_v14  ;;  %v6016_v14 = vmov 0   ;;  %v5846_v16 = vld [vmem:[%s7425_s4 + $0xe4] ss:$8 sps:$4 sm:$0xff]  }
 0x596   :  { %v2197_v20 = vadd.f32 %v2196_v17, %v2195_v15  ;;  %v2206_v21 = vrot.slane %v2205_v19, 2  ;;  %v5841_v15 = vld [vmem:[%s7425_s4 + $0xd0] ss:$8 sps:$4 sm:$0xff]   ;;  %v5844_v17 = vld [vmem:[%s7425_s4 + $0xe0] ss:$8 sps:$4 sm:$0xff]  }
 0x598   :  { %v2198_v55 = vrot.slane %v2197_v20, 1  ;;  %v2207_v22 = vadd.f32 %v2206_v21, %v2205_v19  ;;  %v5849_v19 = vld [vmem:[%s7425_s4 + $0xf4] ss:$8 sps:$4 sm:$0xff]   ;;  %v5852_v21 = vld [vmem:[%s7425_s4 + $0x4] ss:$8 sps:$4 sm:$0xff]  }
 0x59a   :  { %v2208_v57 = vrot.slane %v2207_v22, 1  ;;  %v2199_v54 = vadd.f32 %v2198_v55, %v2197_v20  ;;  %v5847_v20 = vld [vmem:[%s7425_s4 + $0xf0] ss:$8 sps:$4 sm:$0xff]  }
 0x59c   :  { %v2209_v23 = vadd.f32 %v2208_v57, %v2207_v22 }
 0x59e   :  { %v2434_v24 = vsel %vm1498_vm8, %v2199_v54, %v2209_v23  ;;  %v3238_v23 = vadd.s32 128, %v6368_v63 }
 0x59f   :  { %5562 = vmatmul.mubr.f32.vlgmr.msra.gmra.mrb[14].mxu0 %v2434_v24  ;;  %v3239_v24 = vadd.s32 136, %v6368_v63 }
 0x5a0   :  { %2743 = vmatpush1.bf16.msra.mxu0 %v5826_v38  ;;  %2774 = vmatprep.mubr.bf16.mxu0 %v6016_v14  ;;  %v3279_v38 = vand.u32 63, %v6380_v6 }
 0x5a1   :  { %2744 = vmatprep.subr.bf16.mxu0 %v5831_v49 }
 0x5a2   :  { %vm6951_vm7 = vcmp.eq.s32.totalorder %v3279_v38, %v6370_v0 }
 0x5a4   :  { %2745 = vmatpush1.bf16.msra.mxu0 %v5829_v53  ;;  %v5858_v53 = vld [vmem:[%s7425_s4 + $0x24] ss:$8 sps:$4 sm:$0xff]  }
 0x5a5   :  { %2746 = vmatprep.subr.bf16.mxu0 %v5834_v58 }
 0x5a8   :  { %2747 = vmatpush1.bf16.msra.mxu0 %v5832_v60 }
 0x5a9   :  { %2748 = vmatprep.subr.bf16.mxu0 %v5837_v9  ;;  %v3293_v9 = vand.u32 63, %v6490_v32 }
 0x5ac   :  { %2749 = vmatpush1.bf16.msra.mxu0 %v5835_v10  ;;  %v3244_v10 = vadd.s32 176, %v6368_v63 }
 0x5ad   :  { %2750 = vmatprep.subr.bf16.mxu0 %v5840_v12 }
 0x5b0   :  { %2751 = vmatpush1.bf16.msra.mxu0 %v5838_v62 }
 0x5b1   :  { %2752 = vmatprep.subr.bf16.mxu0 %v5843_v13  ;;  %v3245_v13 = vadd.s32 184, %v6368_v63 }
 0x5b4   :  { %2753 = vmatpush1.bf16.msra.mxu0 %v5841_v15  ;;  %v3412_v15 = vand.u32 63, %v3244_v10 }
 0x5b5   :  { %2754 = vmatprep.subr.bf16.mxu0 %v5846_v16 }
 0x5b8   :  { %2755 = vmatpush1.bf16.msra.mxu0 %v5844_v17 }
 0x5b9   :  { %2756 = vmatprep.subr.bf16.mxu0 %v5849_v19  ;;  %v3419_v19 = vand.u32 63, %v3245_v13 }
 0x5bc   :  { %2757 = vmatpush1.bf16.msra.mxu0 %v5847_v20  ;;  %v5879_v20 = vld [vmem:[%s7425_s4 + $0x114] ss:$8 sps:$4 sm:$0xff]  }
 0x5bd   :  { %2863 = vmatprep.subr.bf16.mxu0 %v5852_v21 }
 0x672   :  { %v2501_v25 = vpop.f32.mrb[14].mxu0 }
 0x673   :  { %v2506_v26 = vmul.f32 0.020833334, %v2501_v25  ;;  %v5563_v27 = vpop.f32.mrb[15].mxu0  ;;  %v3258_v25 = vand.u32 63, %v6368_v63 }
 0x675   :  { %v2507_v28 = vmul.f32 %v2506_v26, %v2506_v26  ;;  %vm6927_vm2 = vcmp.eq.s32.totalorder %v3258_v25, %v6370_v0 }
 0x677   :  { %v2509_v29 = vrot.slane %v2507_v28, 7 }
 0x679   :  { %v2511_v33 = vsub.f32 %v2506_v26, %v2509_v29  ;;  %v3240_v29 = vadd.s32 144, %v6368_v63 }
 0x67b   :  { %v2513_v34 = vadd.f32 1e-05, %v2511_v33  ;;  %v3241_v33 = vadd.s32 152, %v6368_v63 }
 0x67d   :  { %5972 = vrsqrt.f32 %v2513_v34  ;;  %v3272_v34 = vand.u32 63, %v6377_v5  ;;  %v3384_v5 = vand.u32 63, %v3240_v29  ;;  %v3391_v6 = vand.u32 63, %v3241_v33 }
 0x67f   :  { %vm6943_vm6 = vcmp.eq.s32.totalorder %v3272_v34, %v6370_v0  ;;  %vm3656_vm0 = vcmp.eq.s32.totalorder %v3384_v5, %v6370_v0  ;;  %vm3657_vm3 = vcmp.eq.s32.totalorder %v3391_v6, %v6370_v0  ;;  %v5853_v6 = vld [vmem:[%s7425_s4 + $0x10] ss:$8 sps:$4 sm:$0xff]  }
 0x680   :  { %vm5616_vm9 = vmpackc.low %vm3657_vm3, %vm3656_vm0 }
 0x687   :  { %v5973_v42 = vpop.eup %5972 }
 0x688   :  { %v2522_v45 = vrot.slane %v5973_v42, %v6577_v37 }
 0x68a   :  { %v2523_v31 = vcombine.high %v2522_v45, %v2522_v45  ;;  %v3370_v45 = vand.u32 63, %v3238_v23 }
 0x68c   :  { %v2530_v1 = vrot.slane %v2523_v31, %v6577_v37  ;;  %v3377_v31 = vand.u32 63, %v3239_v24  ;;  %vm3654_vm13 = vcmp.eq.s32.totalorder %v3370_v45, %v6370_v0 }
 0x68e   :  { %v2532_v56 = vmul.f32 %v2530_v1, %v2512_v52  ;;  %vm3655_vm5 = vcmp.eq.s32.totalorder %v3377_v31, %v6370_v0 }
 0x68f   :  { %vm5612_vm15 = vmpackc.low %vm3655_vm5, %vm3654_vm13 }
 0x690   :  { %v2534_v61 = vmul.f32 %v2532_v56, %v2506_v26  ;;  %v2540_v4 = vrot.slane %v2532_v56, %v6585_v48  ;;  %v3265_v26 = vand.u32 63, %v6373_v3  ;;  %5613 = vmatprep.subr.msk.bf16.mxu1 %vm5612_vm15, %v6007_v18  ;;  %v5855_v3 = vld [vmem:[%s7425_s4 + $0x14] ss:$8 sps:$4 sm:$0xff]  }
 0x692   :  { %2544 = vrot.lane.b32.xlu1 %v2540_v4, %s6012_s19  ;;  %2541 = vrot.lane.b32.xlu0 %v2540_v4, %s6011_s17  ;;  %v2535_v8 = vsub.f32 %v2533_v59, %v2534_v61  ;;  %vm6932_vm11 = vcmp.eq.s32.totalorder %v3265_v26, %v6370_v0 }
 0x694   :  { %v2563_v11 = vrot.slane %v2535_v8, %v6585_v48 }
 0x696   :  { %2547 = vrot.lane.b32.xlu0 %v2540_v4, %s6014_s23  ;;  %2564 = vrot.lane.b32.xlu1 %v2563_v11, %s6011_s17 }
 0x69a   :  { %2567 = vrot.lane.b32.xlu0 %v2563_v11, %s6012_s19  ;;  %2570 = vrot.lane.b32.xlu1 %v2563_v11, %s6014_s23 }
 0x704   :  { %v2545_v55 = vpop.permute.xlu1 %2544  ;;  %v2542_v22 = vpop.permute.xlu0 %2541 }
 0x705   :  { %v2550_v57 = vsel %vm1629_vm10, %v2532_v56, %v2542_v22 }
 0x706   :  { %v2551_v54 = vsel %vm1633_vm12, %v2550_v57, %v2545_v55 }
 0x708   :  { %v2548_v27 = vpop.permute.xlu0 %2547  ;;  %v2565_v28 = vpop.permute.xlu1 %2564 }
 0x709   :  { %v2552_v41 = vsel %vm1637_vm14, %v2551_v54, %v2548_v27  ;;  %v2573_v42 = vsel %vm1629_vm10, %v2535_v8, %v2565_v28  ;;  %vm5614_vm10 = vmpackc.low %vm6932_vm11, %vm6927_vm2  ;;  %v3286_v8 = vand.u32 63, %v6487_v30  ;;  %vm6983_vm2 = vcmp.eq.s32.totalorder %v3293_v9, %v6370_v0  ;;  %v5871_v30 = vld [vmem:[%s7425_s4 + $0x70] ss:$8 sps:$4 sm:$0xff]  }
 0x70a   :  { %v2556_v49 = vrot.slane %v2552_v41, %v6585_v48  ;;  %5615 = vmatpush3.bf16.msk.msra.mxu1 %vm5614_vm10, %v6007_v18  ;;  %vm6991_vm10 = vcmp.eq.s32.totalorder %v3412_v15, %v6370_v0  ;;  %v5876_v15 = vld [vmem:[%s7425_s4 + $0x104] ss:$8 sps:$4 sm:$0xff]   ;;  %v5909_v41 = vld [vmem:[%s7425_s4 + $0x1b4] ss:$8 sps:$4 sm:$0xff]  }
 0x70b   :  { %5617 = vmatprep.subr.msk.bf16.mxu1 %vm5616_vm9, %v6007_v18  ;;  %vm6978_vm4 = vcmp.eq.s32.totalorder %v3286_v8, %v6370_v0  ;;  %vm2615_vm9 = vcmask 1041408   ;;  %v5870_v8 = vld [vmem:[%s7425_s4 + $0x64] ss:$8 sps:$4 sm:$0xff]  }
 0x70c   :  { %v2557_v1 = vmul.f32 %v2556_v49, %v6832_v2  ;;  %v2558_v56 = vmul.f32 %v2556_v49, %v6834_v7  ;;  %v2568_v58 = vpop.permute.xlu0 %2567  ;;  %v2571_v59 = vpop.permute.xlu1 %2570  ;;  %v3242_v2 = vadd.s32 160, %v6368_v63  ;;  %v3243_v7 = vadd.s32 168, %v6368_v63  ;;  %vm5622_vm0 = vmpackc.low %vm6983_vm2, %vm6978_vm4 }
 0x70d   :  { %v2574_v61 = vsel %vm1633_vm12, %v2573_v42, %v2568_v58  ;;  %v5850_v42 = vld [vmem:[%s7425_s4] ss:$8 sps:$4 sm:$0xff]   ;;  %v5859_v58 = vld [vmem:[%s7425_s4 + $0x30] ss:$8 sps:$4 sm:$0xff]  }
 0x70e   :  { %v2575_v4 = vsel %vm1637_vm14, %v2574_v61, %v2571_v59  ;;  %vm5618_vm14 = vmpackc.low %vm6951_vm7, %vm6943_vm6  ;;  %v3398_v62 = vand.u32 63, %v3242_v2  ;;  %v3405_v12 = vand.u32 63, %v3243_v7  ;;  %vm3661_vm7 = vcmp.eq.s32.totalorder %v3419_v19, %v6370_v0  ;;  %v5864_v59 = vld [vmem:[%s7425_s4 + $0x44] ss:$8 sps:$4 sm:$0xff]   ;;  %v5862_v61 = vld [vmem:[%s7425_s4 + $0x40] ss:$8 sps:$4 sm:$0xff]  }
 0x70f   :  { %v2579_v11 = vrot.slane %v2575_v4, %v6585_v48  ;;  %5619 = vmatpush3.bf16.msk.msra.mxu1 %vm5618_vm14, %v6007_v18  ;;  %vm5624_vm3 = vmpackc.low %vm3661_vm7, %vm6991_vm10  ;;  %vm2616_vm14 = vsmask.f32 1280  ;;  %v5867_v2 = vld [vmem:[%s7425_s4 + $0x54] ss:$8 sps:$4 sm:$0xff]   ;;  %v5865_v4 = vld [vmem:[%s7425_s4 + $0x50] ss:$8 sps:$4 sm:$0xff]  }
 0x710   :  { %vm3658_vm11 = vcmp.eq.s32.totalorder %v3398_v62, %v6370_v0  ;;  %vm3659_vm13 = vcmp.eq.s32.totalorder %v3405_v12, %v6370_v0  ;;  %vm7005_vm4 = vmand %vm2615_vm9, %vm2616_vm14  ;;  %v5873_v62 = vld [vmem:[%s7425_s4 + $0x74] ss:$8 sps:$4 sm:$0xff]   ;;  %v5874_v19 = vld [vmem:[%s7425_s4 + $0x100] ss:$8 sps:$4 sm:$0xff]  }
 0x711   :  { %v2580_v16 = vadd.f32 %v2579_v11, %v2557_v1  ;;  %v2581_v17 = vadd.f32 %v2579_v11, %v2558_v56  ;;  %vm5620_vm5 = vmpackc.low %vm3659_vm13, %vm3658_vm11  ;;  %v5856_v1 = vld [vmem:[%s7425_s4 + $0x20] ss:$8 sps:$4 sm:$0xff]   ;;  %v5861_v56 = vld [vmem:[%s7425_s4 + $0x34] ss:$8 sps:$4 sm:$0xff]  }
 0x712   :  { %5621 = vmatprep.subr.msk.bf16.mxu1 %vm5620_vm5, %v6007_v18  ;;  %v5868_v11 = vld [vmem:[%s7425_s4 + $0x60] ss:$8 sps:$4 sm:$0xff]  }
 0x713   :  { %vm2582_vm6 = vcmp.gt.f32.partialorder %v2580_v16, 0.0  ;;  %vm2583_vm15 = vcmp.gt.f32.partialorder %v2581_v17, 0.0  ;;  %v2584_v21 = vmul.f32 0.2, %v2580_v16  ;;  %v2585_v55 = vmul.f32 0.2, %v2581_v17  ;;  %5623 = vmatpush3.bf16.msk.msra.mxu1 %vm5622_vm0, %v6007_v18 }
 0x714   :  { %5625 = vmatprep.subr.msk.bf16.mxu1 %vm5624_vm3, %v6007_v18 }
 0x715   :  { %v2586_v22 = vsel %vm2582_vm6, %v2580_v16, %v2584_v21  ;;  %v2587_v57 = vsel %vm2583_vm15, %v2581_v17, %v2585_v55  ;;  %v5877_v55 = vld [vmem:[%s7425_s4 + $0x110] ss:$8 sps:$4 sm:$0xff]  }
 0x716   :  { %2590 = vst [vmem:[#allocation4 + $0x1] sm:$0x3f] %v2586_v22  ;;  %2593 = vst [vmem:[#allocation4 + $0x3] sm:$0xc0] %v2586_v22  ;;  %v5882_v22 = vld [vmem:[%s7425_s4 + $0x124] ss:$8 sps:$4 sm:$0xff]  }
 0x717   :  { %2594 = vst [vmem:[#allocation4 + $0xb] sm:$0xf] %v2587_v57  ;;  %v5880_v57 = vld [vmem:[%s7425_s4 + $0x120] ss:$8 sps:$4 sm:$0xff]  }
 0x71d   :  { %v2598_v54 = vld [vmem:[#allocation4 + $0x1] ss:$2 sm:$0xf]  ;;  %v2595_v32 = vld [vmem:[#allocation4] ss:$2 sm:$0xf] }
 0x71e   :  { %v2604_v23 = vld [vmem:[#allocation4 + $0x9] ss:$2 sm:$0xf]  ;;  %v2599_v24 = vpack.c.bf16 %v2598_v54, %v2598_v54  ;;  %v2601_v60 = vld [vmem:[#allocation4 + $0x8] ss:$2 sm:$0xf]  ;;  %v2596_v17 = vpack.c.bf16 %v2595_v32, %v2595_v32 }
 0x71f   :  { %v2605_v25 = vpack.c.bf16 %v2604_v23, %v2604_v23  ;;  %v7046_v7 = vpack.c.bf16 %v2601_v60, %v2601_v60  ;;  %v5885_v54 = vld [vmem:[%s7425_s4 + $0x134] ss:$8 sps:$4 sm:$0xff]   ;;  %v5883_v23 = vld [vmem:[%s7425_s4 + $0x130] ss:$8 sps:$4 sm:$0xff]   ;;  %v5910_v60 = vld [vmem:[%s7425_s4 + $0x1c0] ss:$8 sps:$4 sm:$0xff]  }
 0x720   :  { %v3059_v28 = vshll.u32 %v2599_v24, 16  ;;  %v3057_v34 = vshrl.u32 %v2599_v24, 16  ;;  %v3314_v32 = vand.u32 63, %v6509_v39 }
 0x721   :  { %v2636_v26 = vshrl.u32 %v2605_v25, 16  ;;  %v2639_v27 = vshll.u32 %v2605_v25, 16  ;;  %v3065_v49 = vrot.slane %v2605_v25, 7  ;;  %v2607_v9 = vshrl.u32 %v7046_v7, 16  ;;  %v5886_v25 = vld [vmem:[%s7425_s4 + $0x140] ss:$8 sps:$4 sm:$0xff]  }
 0x722   :  { %v3061_v38 = vrot.slane %v3059_v28, 1  ;;  %v2610_v10 = vshll.u32 %v7046_v7, 16  ;;  %v5894_v28 = vld [vmem:[%s7425_s4 + $0x164] ss:$8 sps:$4 sm:$0xff]   ;;  %vm3646_vm15 = vcmp.eq.s32.totalorder %v3314_v32, %v6370_v0 }
 0x723   :  { %v2638_v29 = vrot.slane %v2636_v26, 6  ;;  %v2641_v33 = vrot.slane %v2639_v27, 7  ;;  %v2609_v12 = vrot.slane %v2607_v9, 6  ;;  %v5891_v26 = vld [vmem:[%s7425_s4 + $0x154] ss:$8 sps:$4 sm:$0xff]   ;;  %v5928_v32 = vld [vmem:[%s7426_s5 + $0x8] sm:$0xff]  }
 0x724   :  { %v3062_v31 = vor.u32 %v3061_v38, %v3057_v34  ;;  %v2612_v13 = vrot.slane %v2610_v10, 7  ;;  %v5889_v27 = vld [vmem:[%s7425_s4 + $0x150] ss:$8 sps:$4 sm:$0xff]   ;;  %v5897_v34 = vld [vmem:[%s7425_s4 + $0x174] ss:$8 sps:$4 sm:$0xff]   ;;  %v3300_v10 = vand.u32 63, %v6497_v35 }
 0x725   :  { %v2642_v45 = vor.u32 %v2641_v33, %v2638_v29  ;;  %v2907_v29 = vshll.u32 %v2596_v17, 16  ;;  %v5892_v33 = vld [vmem:[%s7425_s4 + $0x160] ss:$8 sps:$4 sm:$0xff]   ;;  %v5919_v9 = vld [vmem:[%s7425_s4 + $0x1f0] ss:$8 sps:$4 sm:$0xff]   ;;  %v3248_v35 = vadd.s32 208, %v6368_v63 }
 0x726   :  { %v7019_v5 = vsel %vm7005_vm4, %v3062_v31, %v3065_v49  ;;  %v2613_v16 = vor.u32 %v2612_v13, %v2609_v12  ;;  %v5900_v31 = vld [vmem:[%s7425_s4 + $0x184] ss:$8 sps:$4 sm:$0xff]   ;;  %v3247_v12 = vadd.s32 200, %v6368_v63  ;;  %vm3644_vm2 = vcmp.eq.s32.totalorder %v3300_v10, %v6370_v0 }
 0x727   :  { %v2644_v52 = vsel %vm7005_vm4, %v2599_v24, %v2642_v45  ;;  %v5888_v24 = vld [vmem:[%s7425_s4 + $0x144] ss:$8 sps:$4 sm:$0xff]   ;;  %v2909_v38 = vrot.slane %v2907_v29, 1  ;;  %v2905_v45 = vshrl.u32 %v2596_v17, 16 }
 0x728   :  { %2775 = vmatmul.mubr.bf16.vlgmr.msra.gmra.mrb[16].mxu0 %v2644_v52  ;;  %v2618_v21 = vsel %vm7005_vm4, %v2596_v17, %v2613_v16  ;;  %v5898_v52 = vld [vmem:[%s7425_s4 + $0x180] ss:$8 sps:$4 sm:$0xff]   ;;  %v3335_v16 = vand.u32 63, %v6524_v44  ;;  %v3250_v17 = vadd.s32 224, %v6368_v63  ;;  %v3342_v44 = vand.u32 63, %v6533_v46 }
 0x729   :  { %2864 = vmatpush1.bf16.msra.mxu0 %v5850_v42  ;;  %2895 = vmatprep.mubr.bf16.mxu0 %v6016_v14  ;;  %v5895_v42 = vld [vmem:[%s7425_s4 + $0x170] ss:$8 sps:$4 sm:$0xff]   ;;  %v2910_v49 = vor.u32 %v2909_v38, %v2905_v45  ;;  %v5922_v10 = vld [vmem:[%s7426_s5 + $0x40] sm:$0xff]  }
 0x72a   :  { %2865 = vmatprep.subr.bf16.mxu0 %v5855_v3  ;;  %v2913_v3 = vrot.slane %v7046_v7, 7  ;;  %v5918_v7 = vld [vmem:[%s7425_s4 + $0x1e4] ss:$8 sps:$4 sm:$0xff]  }
 0x72d   :  { %2866 = vmatpush1.bf16.msra.mxu0 %v5853_v6  ;;  %v5903_v6 = vld [vmem:[%s7425_s4 + $0x194] ss:$8 sps:$4 sm:$0xff]  }
 0x72e   :  { %2867 = vmatprep.subr.bf16.mxu0 %v5858_v53  ;;  %v2915_v53 = vsel %vm7005_vm4, %v2910_v49, %v2913_v3 }
 0x731   :  { %2868 = vmatpush1.bf16.msra.mxu0 %v5856_v1  ;;  %v5901_v1 = vld [vmem:[%s7425_s4 + $0x190] ss:$8 sps:$4 sm:$0xff]  }
 0x732   :  { %2869 = vmatprep.subr.bf16.mxu0 %v5861_v56  ;;  %v5906_v56 = vld [vmem:[%s7425_s4 + $0x1a4] ss:$8 sps:$4 sm:$0xff]  }
 0x735   :  { %2870 = vmatpush1.bf16.msra.mxu0 %v5859_v58  ;;  %v5904_v58 = vld [vmem:[%s7425_s4 + $0x1a0] ss:$8 sps:$4 sm:$0xff]  }
 0x736   :  { %2871 = vmatprep.subr.bf16.mxu0 %v5864_v59  ;;  %v5912_v59 = vld [vmem:[%s7425_s4 + $0x1c4] ss:$8 sps:$4 sm:$0xff]  }
 0x739   :  { %2872 = vmatpush1.bf16.msra.mxu0 %v5862_v61  ;;  %v5915_v61 = vld [vmem:[%s7425_s4 + $0x1d4] ss:$8 sps:$4 sm:$0xff]  }
 0x73a   :  { %2873 = vmatprep.subr.bf16.mxu0 %v5867_v2  ;;  %v5913_v2 = vld [vmem:[%s7425_s4 + $0x1d0] ss:$8 sps:$4 sm:$0xff]  }
 0x73d   :  { %2874 = vmatpush1.bf16.msra.mxu0 %v5865_v4  ;;  %v5916_v4 = vld [vmem:[%s7425_s4 + $0x1e0] ss:$8 sps:$4 sm:$0xff]  }
 0x73e   :  { %2875 = vmatprep.subr.bf16.mxu0 %v5870_v8  ;;  %v5921_v8 = vld [vmem:[%s7425_s4 + $0x1f4] ss:$8 sps:$4 sm:$0xff]  }
 0x741   :  { %2876 = vmatpush1.bf16.msra.mxu0 %v5868_v11  ;;  %v3307_v11 = vand.u32 63, %v6500_v36  ;;  %v3249_v36 = vadd.s32 216, %v6368_v63 }
 0x742   :  { %2877 = vmatprep.subr.bf16.mxu0 %v5873_v62  ;;  %v3246_v62 = vadd.s32 192, %v6368_v63 }
 0x743   :  { %vm3645_vm11 = vcmp.eq.s32.totalorder %v3307_v11, %v6370_v0  ;;  %v3447_v39 = vand.u32 63, %v3249_v36  ;;  %v5923_v11 = vld [vmem:[%s7426_s5 + $0xc0] sm:$0xff]  }
 0x744   :  { %vm5626_vm13 = vmpackc.low %vm3645_vm11, %vm3644_vm2  ;;  %v3426_v13 = vand.u32 63, %v3246_v62  ;;  %vm3649_vm2 = vcmp.eq.s32.totalorder %v3335_v16, %v6370_v0  ;;  %v5924_v62 = vld [vmem:[%s7426_s5] sm:$0xff]  }
 0x745   :  { %2878 = vmatpush1.bf16.msra.mxu0 %v5871_v30  ;;  %v3433_v30 = vand.u32 63, %v3247_v12  ;;  %5627 = vmatpush3.bf16.msk.msra.mxu1 %vm5626_vm13, %v6007_v18  ;;  %vm3665_vm9 = vcmp.eq.s32.totalorder %v3447_v39, %v6370_v0  ;;  %v5925_v12 = vld [vmem:[%s7426_s5 + $0x80] sm:$0xff]  }
 0x746   :  { %3013 = vmatprep.subr.bf16.mxu0 %v5876_v15  ;;  %vm3662_vm5 = vcmp.eq.s32.totalorder %v3426_v13, %v6370_v0  ;;  %v3440_v15 = vand.u32 63, %v3248_v35  ;;  %v5926_v13 = vld [vmem:[%s7426_s5 + $0x48] sm:$0xff]  }
 0x747   :  { %vm3663_vm10 = vcmp.eq.s32.totalorder %v3433_v30, %v6370_v0  ;;  %v5927_v30 = vld [vmem:[%s7426_s5 + $0xc8] sm:$0xff]  }
 0x748   :  { %2896 = vmatmul.mubr.bf16.vlgmr.msra.gmra.mrb[16].mxu0 %v2618_v21  ;;  %vm5628_vm6 = vmpackc.low %vm3663_vm10, %vm3662_vm5  ;;  %vm3664_vm3 = vcmp.eq.s32.totalorder %v3440_v15, %v6370_v0  ;;  %v3349_v21 = vand.u32 63, %v6536_v47 }
 0x749   :  { %3014 = vmatpush1.bf16.msra.mxu0 %v5874_v19  ;;  %3045 = vmatprep.mubr.bf16.mxu0 %v6016_v14  ;;  %v3251_v19 = vadd.s32 232, %v6368_v63  ;;  %vm5632_vm14 = vmpackc.low %vm3665_vm9, %vm3664_vm3 }
 0x74a   :  { %3015 = vmatprep.subr.bf16.mxu0 %v5879_v20  ;;  %5629 = vmatprep.subr.msk.bf16.mxu1 %vm5628_vm6, %v6007_v18  ;;  %v3454_v20 = vand.u32 63, %v3250_v17  ;;  %vm3650_vm6 = vcmp.eq.s32.totalorder %v3342_v44, %v6370_v0 }
 0x74c   :  { %vm3666_vm13 = vcmp.eq.s32.totalorder %v3454_v20, %v6370_v0 }
 0x74d   :  { %3016 = vmatpush1.bf16.msra.mxu0 %v5877_v55  ;;  %v3252_v55 = vadd.s32 240, %v6368_v63 }
 0x74e   :  { %3017 = vmatprep.subr.bf16.mxu0 %v5882_v22  ;;  %v3253_v22 = vadd.s32 248, %v6368_v63 }
 0x74f   :  { %v3468_v46 = vand.u32 63, %v3252_v55  ;;  %v5932_v55 = vld [vmem:[%s7426_s5 + $0x10] sm:$0xff]  }
 0x751   :  { %3018 = vmatpush1.bf16.msra.mxu0 %v5880_v57  ;;  %v3356_v57 = vand.u32 63, %v6545_v50  ;;  %vm3668_vm9 = vcmp.eq.s32.totalorder %v3468_v46, %v6370_v0  ;;  %v5934_v46 = vld [vmem:[%s7426_s5 + $0x58] sm:$0xff]  }
 0x752   :  { %3019 = vmatprep.subr.bf16.mxu0 %v5885_v54  ;;  %v3363_v54 = vand.u32 63, %v6548_v51 }
 0x754   :  { %vm3653_vm3 = vcmp.eq.s32.totalorder %v3363_v54, %v6370_v0  ;;  %v3781_v54 = vld [vmem:[%s7431_s10] sm:$0x1] }
 0x755   :  { %3020 = vmatpush1.bf16.msra.mxu0 %v5883_v23  ;;  %v3475_v23 = vand.u32 63, %v3253_v22  ;;  %v5933_v22 = vld [vmem:[%s7426_s5 + $0x90] sm:$0xff]  }
 0x756   :  { %3021 = vmatprep.subr.bf16.mxu0 %v5888_v24 }
 0x759   :  { %3022 = vmatpush1.bf16.msra.mxu0 %v5886_v25 }
 0x75a   :  { %3023 = vmatprep.subr.bf16.mxu0 %v5891_v26 }
 0x75d   :  { %3024 = vmatpush1.bf16.msra.mxu0 %v5889_v27 }
 0x75e   :  { %3025 = vmatprep.subr.bf16.mxu0 %v5894_v28 }
 0x761   :  { %3026 = vmatpush1.bf16.msra.mxu0 %v5892_v33 }
 0x762   :  { %3027 = vmatprep.subr.bf16.mxu0 %v5897_v34 }
 0x765   :  { %3028 = vmatpush1.bf16.msra.mxu0 %v5895_v42 }
 0x766   :  { %3165 = vmatprep.subr.bf16.mxu0 %v5900_v31 }
 0x768   :  { %3046 = vmatmul.mubr.bf16.vlgmr.msra.gmra.mrb[16].mxu0 %v2915_v53 }
 0x769   :  { %3166 = vmatpush1.bf16.msra.mxu0 %v5898_v52  ;;  %3197 = vmatprep.mubr.bf16.mxu0 %v6016_v14  ;;  %v5907_v14 = vld [vmem:[%s7425_s4 + $0x1b0] ss:$8 sps:$4 sm:$0xff]  }
 0x76a   :  { %3167 = vmatprep.subr.bf16.mxu0 %v5903_v6 }
 0x76d   :  { %3168 = vmatpush1.bf16.msra.mxu0 %v5901_v1 }
 0x76e   :  { %3169 = vmatprep.subr.bf16.mxu0 %v5906_v56 }
 0x771   :  { %3170 = vmatpush1.bf16.msra.mxu0 %v5904_v58 }
 0x772   :  { %3171 = vmatprep.subr.bf16.mxu0 %v5909_v41 }
 0x775   :  { %3172 = vmatpush1.bf16.msra.mxu0 %v5907_v14 }
 0x776   :  { %3173 = vmatprep.subr.bf16.mxu0 %v5912_v59 }
 0x779   :  { %3174 = vmatpush1.bf16.msra.mxu0 %v5910_v60 }
 0x77a   :  { %3175 = vmatprep.subr.bf16.mxu0 %v5915_v61 }
 0x77d   :  { %3176 = vmatpush1.bf16.msra.mxu0 %v5913_v2 }
 0x77e   :  { %3177 = vmatprep.subr.bf16.mxu0 %v5918_v7 }
 0x781   :  { %3178 = vmatpush1.bf16.msra.mxu0 %v5916_v4 }
 0x782   :  { %3179 = vmatprep.subr.bf16.mxu0 %v5921_v8 }
 0x785   :  { %3180 = vmatpush1.bf16.msra.mxu0 %v5919_v9 }
 0x786   :  { %5178 = vmatprep.subr.bf16.mxu0 %v5922_v10 }
 0x788   :  { %3198 = vmatmul.mubr.bf16.vlgmr.msra.gmra.mrb[16].mxu0 %v7019_v5  ;;  %v3321_v5 = vand.u32 63, %v6512_v40  ;;  %v3328_v40 = vand.u32 63, %v6521_v43  ;;  %v3461_v43 = vand.u32 63, %v3251_v19  ;;  %v5929_v19 = vld [vmem:[%s7426_s5 + $0x88] sm:$0xff]  }
 0x789   :  { %5179 = vmatpush3.bf16.msra.mxu0 %v5924_v62 }
 0x78a   :  { %vm3647_vm0 = vcmp.eq.s32.totalorder %v3321_v5, %v6370_v0  ;;  %vm3648_vm4 = vcmp.eq.s32.totalorder %v3328_v40, %v6370_v0  ;;  %vm3667_vm5 = vcmp.eq.s32.totalorder %v3461_v43, %v6370_v0  ;;  %5180 = vmatprep.subr.bf16.mxu0 %v5926_v13  ;;  %v5930_v43 = vld [vmem:[%s7426_s5 + $0x50] sm:$0xff]  }
 0x78b   :  { %vm5630_vm7 = vmpackc.low %vm3647_vm0, %vm3646_vm15  ;;  %vm3651_vm15 = vcmp.eq.s32.totalorder %v3349_v21, %v6370_v0  ;;  %v5931_v21 = vld [vmem:[%s7426_s5 + $0xd0] sm:$0xff]  }
 0x78c   :  { %5631 = vmatpush3.bf16.msk.msra.mxu1 %vm5630_vm7, %v6007_v18  ;;  %vm5634_vm11 = vmpackc.low %vm3649_vm2, %vm3648_vm4  ;;  %vm3652_vm7 = vcmp.eq.s32.totalorder %v3356_v57, %v6370_v0 }
 0x78d   :  { %5633 = vmatprep.subr.msk.bf16.mxu1 %vm5632_vm14, %v6007_v18  ;;  %vm5636_vm10 = vmpackc.low %vm3667_vm5, %vm3666_vm13  ;;  %vm3669_vm14 = vcmp.eq.s32.totalorder %v3475_v23, %v6370_v0  ;;  %5181 = vmatpush3.bf16.msra.mxu0 %v5928_v32  ;;  %vm3860_vm13 = vsmask.f32 256 }
 0x78e   :  { %vm5638_vm0 = vmpackc.low %vm3651_vm15, %vm3650_vm6  ;;  %5182 = vmatprep.subr.bf16.mxu0 %v5930_v43 }
 0x78f   :  { %vm5642_vm4 = vmpackc.low %vm3653_vm3, %vm3652_vm7 }
 0x790   :  { %5635 = vmatpush3.bf16.msk.msra.mxu1 %vm5634_vm11, %v6007_v18  ;;  %vm5640_vm2 = vmpackc.low %vm3669_vm14, %vm3668_vm9 }
 0x791   :  { %5637 = vmatprep.subr.msk.bf16.mxu1 %vm5636_vm10, %v6007_v18  ;;  %5183 = vmatpush3.bf16.msra.mxu0 %v5932_v55 }
 0x792   :  { %5184 = vmatprep.subr.bf16.mxu0 %v5934_v46 }
 0x794   :  { %5639 = vmatpush3.bf16.msk.msra.mxu1 %vm5638_vm0, %v6007_v18 }
 0x795   :  { %5641 = vmatprep.subr.msk.bf16.mxu1 %vm5640_vm2, %v6007_v18 }
 0x798   :  { %5643 = vmatpush3.bf16.msk.msra.mxu1 %vm5642_vm4, %v6007_v18 }
 0x799   :  { %5156 = vmatprep.subr.bf16.mxu1 %v5923_v11 }
 0x85b   :  { %v7214_v63 = vpop.f32.mrb[16].mxu0 }
 0x85c   :  { %v3208_v47 = vsel %vm729_vm1, %v7214_v63, 0.0  ;;  %v3222_v50 = vmul.f32 %v7214_v63, %v7214_v63  ;;  %v7220_v51 = vpop.f32.mrb[17].mxu0 }
 0x85d   :  { %v3209_v24 = vrot.slane %v3208_v47, 4  ;;  %v3215_v0 = vsel %vm729_vm1, %v7220_v51, 0.0  ;;  %v3223_v25 = vmul.f32 %v7220_v51, %v7220_v51  ;;  %v3203_v26 = vpop.f32.mrb[18].mxu0 }
 0x85e   :  { %v3224_v18 = vsel %vm729_vm1, %v3222_v50, 0.0  ;;  %v3216_v27 = vrot.slane %v3215_v0, 4  ;;  %v3204_v28 = vpop.f32.mrb[19].mxu0  ;;  %v5936_v50 = vld [vmem:[%s7426_s5 + $0x18] sm:$0xff]  }
 0x85f   :  { %v3210_v29 = vadd.f32 %v3209_v24, %v3208_v47  ;;  %v3225_v33 = vrot.slane %v3224_v18, 4  ;;  %v3231_v34 = vsel %vm729_vm1, %v3223_v25, 0.0  ;;  %v5935_v47 = vld [vmem:[%s7426_s5 + $0xd8] sm:$0xff]   ;;  %5185 = vmatpush3.bf16.msra.mxu0 %v5936_v50  ;;  %v5938_v25 = vld [vmem:[%s7426_s5 + $0x60] sm:$0xff]  }
 0x860   :  { %v3217_v38 = vadd.f32 %v3216_v27, %v3215_v0  ;;  %v3232_v42 = vrot.slane %v3231_v34, 4  ;;  %v5937_v24 = vld [vmem:[%s7426_s5 + $0x98] sm:$0xff]   ;;  %v5939_v27 = vld [vmem:[%s7426_s5 + $0xe0] sm:$0xff]   ;;  %5186 = vmatprep.subr.bf16.mxu0 %v5938_v25 }
 0x861   :  { %v3211_v45 = vrot.slane %v3210_v29, 2  ;;  %v3226_v31 = vadd.f32 %v3225_v33, %v3224_v18  ;;  %v5940_v28 = vld [vmem:[%s7426_s5 + $0x20] sm:$0xff]   ;;  %v5942_v33 = vld [vmem:[%s7426_s5 + $0x68] sm:$0xff]   ;;  %v5960_v25 = vld [vmem:[%s7426_s5 + $0x158] sm:$0xff]  }
 0x862   :  { %v3218_v49 = vrot.slane %v3217_v38, 2  ;;  %v3233_v3 = vadd.f32 %v3232_v42, %v3231_v34  ;;  %v5943_v34 = vld [vmem:[%s7426_s5 + $0xe8] sm:$0xff]  }
 0x863   :  { %v3212_v52 = vadd.f32 %v3211_v45, %v3210_v29  ;;  %v3227_v6 = vrot.slane %v3226_v31, 2  ;;  %v5941_v29 = vld [vmem:[%s7426_s5 + $0xa0] sm:$0xff]   ;;  %5187 = vmatpush3.bf16.msra.mxu0 %v5940_v28  ;;  %v5944_v42 = vld [vmem:[%s7426_s5 + $0x28] sm:$0xff]  }
 0x864   :  { %v3219_v53 = vadd.f32 %v3218_v49, %v3217_v38  ;;  %v3234_v1 = vrot.slane %v3233_v3, 2  ;;  %v5945_v45 = vld [vmem:[%s7426_s5 + $0xa8] sm:$0xff]   ;;  %5188 = vmatprep.subr.bf16.mxu0 %v5942_v33  ;;  %v5946_v49 = vld [vmem:[%s7426_s5 + $0x70] sm:$0xff]  }
 0x865   :  { %v3228_v56 = vadd.f32 %v3227_v6, %v3226_v31  ;;  %v3213_v14 = vrot.slane %v3212_v52, 1  ;;  %v5949_v6 = vld [vmem:[%s7426_s5 + $0xb0] sm:$0xff]   ;;  %v5964_v28 = vld [vmem:[%s7426_s5 + $0x168] sm:$0xff]  }
 0x866   :  { %v3220_v58 = vrot.slane %v3219_v53, 1  ;;  %v3235_v41 = vadd.f32 %v3234_v1, %v3233_v3  ;;  %v5947_v3 = vld [vmem:[%s7426_s5 + $0xf0] sm:$0xff]   ;;  %v5951_v1 = vld [vmem:[%s7426_s5 + $0xf8] sm:$0xff]  }
 0x867   :  { %v3229_v59 = vrot.slane %v3228_v56, 1  ;;  %v3214_v4 = vadd.f32 %v3213_v14, %v3212_v52  ;;  %5189 = vmatpush3.bf16.msra.mxu0 %v5944_v42  ;;  %v5948_v52 = vld [vmem:[%s7426_s5 + $0x30] sm:$0xff]   ;;  %v5969_v42 = vld [vmem:[%s7426_s5 + $0x138] sm:$0xff]  }
 0x868   :  { %v3236_v60 = vrot.slane %v3235_v41, 1  ;;  %v3221_v2 = vadd.f32 %v3220_v58, %v3219_v53  ;;  %5190 = vmatprep.subr.bf16.mxu0 %v5946_v49  ;;  %v5950_v53 = vld [vmem:[%s7426_s5 + $0x78] sm:$0xff]   ;;  %v5966_v33 = vld [vmem:[%s7426_s5 + $0x170] sm:$0xff]  }
 0x869   :  { %v3230_v61 = vadd.f32 %v3229_v59, %v3228_v56  ;;  %v5952_v56 = vld [vmem:[%s7426_s5 + $0x38] sm:$0xff]  }
 0x86a   :  { %v3237_v7 = vadd.f32 %v3236_v60, %v3235_v41  ;;  %v5953_v58 = vld [vmem:[%s7426_s5 + $0xb8] sm:$0xff]   ;;  %v5954_v41 = vld [vmem:[%s7426_s5 + $0x140] sm:$0xff]  }
 0x86b   :  { %v3702_v9 = vsel %vm1498_vm8, %v3214_v4, %v3230_v61  ;;  %5191 = vmatpush3.bf16.msra.mxu0 %v5948_v52 }
 0x86c   :  { %v3703_v8 = vsel %vm1498_vm8, %v3221_v2, %v3237_v7  ;;  %5192 = vmatprep.subr.bf16.mxu0 %v5950_v53 }
 0x86d   :  { %3768 = vmatprep.mubr.f32.mxu1 %v3703_v8 }
 0x86e   :  { %3769 = vmatmul.mubr.f32.vlgmr.msra.gmra.mrb[8].mxu1 %v3702_v9 }
 0x86f   :  { %5157 = vmatpush3.bf16.msra.mxu1 %v5925_v12  ;;  %5193 = vmatpush3.bf16.msra.mxu0 %v5952_v56 }
 0x870   :  { %5158 = vmatprep.subr.bf16.mxu1 %v5927_v30 }
 0x873   :  { %5159 = vmatpush3.bf16.msra.mxu1 %v5929_v19 }
 0x874   :  { %5160 = vmatprep.subr.bf16.mxu1 %v5931_v21 }
 0x877   :  { %5161 = vmatpush3.bf16.msra.mxu1 %v5933_v22 }
 0x878   :  { %5162 = vmatprep.subr.bf16.mxu1 %v5935_v47 }
 0x87b   :  { %5163 = vmatpush3.bf16.msra.mxu1 %v5937_v24  ;;  %v5957_v24 = vld [vmem:[%s7426_s5 + $0x108] sm:$0xff]  }
 0x87c   :  { %5164 = vmatprep.subr.bf16.mxu1 %v5939_v27  ;;  %v5963_v27 = vld [vmem:[%s7426_s5 + $0x120] sm:$0xff]  }
 0x87f   :  { %5165 = vmatpush3.bf16.msra.mxu1 %v5941_v29  ;;  %v5965_v29 = vld [vmem:[%s7426_s5 + $0x128] sm:$0xff]  }
 0x880   :  { %5166 = vmatprep.subr.bf16.mxu1 %v5943_v34  ;;  %v5967_v34 = vld [vmem:[%s7426_s5 + $0x130] sm:$0xff]  }
 0x883   :  { %5167 = vmatpush3.bf16.msra.mxu1 %v5945_v45 }
 0x884   :  { %5168 = vmatprep.subr.bf16.mxu1 %v5947_v3 }
 0x887   :  { %5169 = vmatpush3.bf16.msra.mxu1 %v5949_v6 }
 0x888   :  { %5170 = vmatprep.subr.bf16.mxu1 %v5951_v1 }
 0x88b   :  { %5171 = vmatpush3.bf16.msra.mxu1 %v5953_v58 }
 0x88c   :  { %5200 = vmatprep.subr.bf16.mxu1 %v5954_v41 }
 0x941   :  { %v5153_v5 = vpop.f32.mrb[8].mxu1 }
 0x942   :  { %v5154_v35 = vpop.f32.mrb[9].mxu1 }
 0x943   :  { %v5155_v36 = vadd.f32 %v5154_v35, %v5153_v5 }
 0x945   :  { %v3775_v15 = vmul.f32 0.041666668, %v5155_v36 }
 0x947   :  { %v3776_v39 = vmul.f32 %v3775_v15, %v3775_v15 }
 0x949   :  { %v3778_v40 = vrot.slane %v3776_v39, 7 }
 0x94b   :  { %v3780_v16 = vsub.f32 %v3775_v15, %v3778_v40 }
 0x94d   :  { %v3782_v17 = vadd.f32 1e-05, %v3780_v16 }
 0x94f   :  { %5974 = vrsqrt.f32 %v3782_v17 }
 0x959   :  { %v5975_v20 = vpop.eup %5974 }
 0x95a   :  { %v3791_v44 = vrot.slane %v5975_v20, %v6577_v37 }
 0x95c   :  { %v3792_v57 = vcombine.high %v3791_v44, %v3791_v44 }
 0x95e   :  { %v3799_v23 = vrot.slane %v3792_v57, %v6577_v37  ;;  %v3802_v37 = vld [vmem:[%s7432_s11] sm:$0x1] }
 0x960   :  { %v3801_v0 = vmul.f32 %v3799_v23, %v3781_v54  ;;  %v5955_v54 = vld [vmem:[%s7426_s5 + $0x100] sm:$0xff]   ;;  %v5956_v23 = vld [vmem:[%s7426_s5 + $0x148] sm:$0xff]  }
 0x962   :  { %v3803_v26 = vmul.f32 %v3801_v0, %v3775_v15  ;;  %v3809_v18 = vrot.slane %v3801_v0, %v6585_v48 }
 0x964   :  { %3810 = vrot.lane.b32.xlu0 %v3809_v18, %s6012_s19  ;;  %v3804_v38 = vsub.f32 %v3802_v37, %v3803_v26  ;;  %v5959_v37 = vld [vmem:[%s7426_s5 + $0x110] sm:$0xff]   ;;  %v5961_v26 = vld [vmem:[%s7426_s5 + $0x118] sm:$0xff]   ;;  %v5962_v18 = vld [vmem:[%s7426_s5 + $0x160] sm:$0xff]  }
 0x966   :  { %v3824_v31 = vrot.slane %v3804_v38, %v6585_v48 }
 0x968   :  { %3825 = vrot.lane.b32.xlu1 %v3824_v31, %s6012_s19 }
 0x9d6   :  { %v3811_v14 = vpop.permute.xlu0 %3810 }
 0x9d7   :  { %v3813_v59 = vsel %vm1633_vm12, %v3801_v0, %v3811_v14  ;;  %v5958_v0 = vld [vmem:[%s7426_s5 + $0x150] sm:$0xff]  }
 0x9d8   :  { %v3817_v60 = vrot.slane %v3813_v59, %v6585_v48 }
 0x9da   :  { %v3826_v61 = vpop.permute.xlu1 %3825  ;;  %v3818_v7 = vmul.f32 %v3817_v60, %v7214_v63  ;;  %v3819_v4 = vmul.f32 %v3817_v60, %v7220_v51 }
 0x9db   :  { %v3828_v2 = vsel %vm1633_vm12, %v3804_v38, %v3826_v61  ;;  %vm7348_vm12 = vmand %vm1498_vm8, %vm3860_vm13  ;;  %v5968_v38 = vld [vmem:[%s7426_s5 + $0x178] sm:$0xff]   ;;  %s6017_s5 = smov [#allocation6]   ;;  %vm4408_vm8 = vcmask 25600  }
 0x9dc   :  { %v3832_v8 = vrot.slane %v3828_v2, %v6585_v48  ;;  %s4416_s18 = sshll.u32 %s6017_s5, 4  ;;  %s4417_s18 = int_to_ptr.vmem [resolvable:$true] %s4416_s18 }
 0x9dd   :  { %s5980_s0 = scalar_lea.vmem %s4417_s18, 32  ;;  %p5985_p1 = scmp.lt.s32.totalorder %s4417_s18, %s4417_s18 }
 0x9de   :  { %v3833_v9 = vadd.f32 %v3832_v8, %v3818_v7  ;;  %v3834_v10 = vadd.f32 %v3832_v8, %v3819_v4  ;;  %p5981_p0 = scmp.ne.s32.totalorder %s4417_s18, %s5980_s0  ;;  %p5986_p2 = scmp.lt.s32.totalorder %s5980_s0, %s5980_s0 }
 0x9e0   :  { %vm3835_vm1 = vcmp.gt.f32.partialorder %v3833_v9, 0.0  ;;  %vm3836_vm11 = vcmp.gt.f32.partialorder %v3834_v10, 0.0  ;;  %v3837_v11 = vmul.f32 0.2, %v3833_v9  ;;  %v3838_v62 = vmul.f32 0.2, %v3834_v10  ;;  %p5987_p3 = por %p5986_p2, %p5985_p1 }
 0x9e2   :  { %v3839_v12 = vsel %vm3835_vm1, %v3833_v9, %v3837_v11  ;;  %v3840_v13 = vsel %vm3836_vm11, %v3834_v10, %v3838_v62  ;;  %p5988_p4 = pnand %p5987_p3, %p5981_p0 }
 0x9e3   :  { %3841 = vst [vmem:[#allocation5] sm:$0x3f] %v3839_v12   ;;  %3842 = vst [vmem:[#allocation5 + $0x8] sm:$0x3f] %v3840_v13  }
 0x9ea   :  { %v3846_v30 = vld [vmem:[#allocation5 + $0x8] sm:$0x7]  ;;  %v3850_v32 = vld [vmem:[#allocation5 + $0x8] sm:$0x38]  ;;  %v3845_v5 = vld [vmem:[#allocation5] sm:$0x7] }
 0x9eb   :  { %v3848_v35 = vpack.c.bf16 %v3846_v30, %v3846_v30  ;;  %v3852_v63 = vpack.c.bf16 %v3850_v32, %v3850_v32  ;;  %v3849_v36 = vld [vmem:[#allocation5] sm:$0x38]  ;;  %v3847_v51 = vpack.c.bf16 %v3845_v5, %v3845_v5 }
 0x9ec   :  { %v3851_v15 = vpack.c.bf16 %v3849_v36, %v3849_v36 }
 0x9ed   :  { %v3856_v39 = vrot.slane %v3852_v63, 1  ;;  %v3909_v40 = vshll.u32 %v3852_v63, 16  ;;  %v3900_v17 = vshrl.u32 %v3848_v35, 16  ;;  %v4224_v44 = vrot.slane %v3848_v35, 1 }
 0x9ee   :  { %v3855_v16 = vrot.slane %v3851_v15, 1  ;;  %v3905_v19 = vshll.u32 %v3851_v15, 16  ;;  %v4228_v21 = vrot.slane %v3852_v63, 2  ;;  %v3897_v22 = vshrl.u32 %v3847_v51, 16 }
 0x9ef   :  { %v3863_v20 = vsel %vm7348_vm12, %v3848_v35, %v3856_v39  ;;  %v3911_v43 = vrot.slane %v3909_v40, 2  ;;  %v4223_v45 = vrot.slane %v3847_v51, 1  ;;  %v4227_v31 = vrot.slane %v3851_v15, 2 }
 0x9f0   :  { %4213 = vmatprep.mubr.bf16.mxu0 %v3863_v20  ;;  %v3862_v55 = vsel %vm7348_vm12, %v3847_v51, %v3855_v16  ;;  %v3907_v57 = vrot.slane %v3905_v19, 2  ;;  %v4232_v50 = vsel %vm7348_vm12, %v4224_v44, %v4228_v21 }
 0x9f1   :  { %4214 = vmatmul.mubr.bf16.vlgmr.msra.gmra.mrb[20].mxu0 %v3862_v55  ;;  %v3915_v46 = vsel %vm7348_vm12, %v3900_v17, %v3911_v43  ;;  %v4231_v49 = vsel %vm7348_vm12, %v4223_v45, %v4227_v31 }
 0x9f2   :  { %4077 = vmatprep.mubr.bf16.mxu1 %v3915_v46  ;;  %v3914_v47 = vsel %vm7348_vm12, %v3897_v22, %v3907_v57 }
 0x9f3   :  { %4078 = vmatmul.mubr.bf16.vlgmr.msra.gmra.mrb[12].mxu1 %v3914_v47 }
 0x9f4   :  { %5201 = vmatpush3.bf16.msra.mxu1 %v5955_v54  ;;  %4394 = vmatprep.mubr.bf16.mxu1 %v4232_v50 }
 0x9f5   :  { %5202 = vmatprep.subr.bf16.mxu1 %v5956_v23 }
 0x9f8   :  { %5203 = vmatpush3.bf16.msra.mxu1 %v5957_v24 }
 0x9f9   :  { %5204 = vmatprep.subr.bf16.mxu1 %v5958_v0 }
 0x9fc   :  { %5205 = vmatpush3.bf16.msra.mxu1 %v5959_v37 }
 0x9fd   :  { %5206 = vmatprep.subr.bf16.mxu1 %v5960_v25 }
 0xa00   :  { %5207 = vmatpush3.bf16.msra.mxu1 %v5961_v26 }
 0xa01   :  { %5208 = vmatprep.subr.bf16.mxu1 %v5962_v18 }
 0xa04   :  { %5209 = vmatpush3.bf16.msra.mxu1 %v5963_v27 }
 0xa05   :  { %5210 = vmatprep.subr.bf16.mxu1 %v5964_v28 }
 0xa08   :  { %5211 = vmatpush3.bf16.msra.mxu1 %v5965_v29 }
 0xa09   :  { %5212 = vmatprep.subr.bf16.mxu1 %v5966_v33 }
 0xa0c   :  { %5213 = vmatpush3.bf16.msra.mxu1 %v5967_v34 }
 0xa0d   :  { %5214 = vmatprep.subr.bf16.mxu1 %v5968_v38 }
 0xa10   :  { %5215 = vmatpush3.bf16.msra.mxu1 %v5969_v42 }
 0xa13   :  { %4395 = vmatmul.mubr.bf16.vlgmr.msra.gmra.mrb[16].mxu1 %v4231_v49 }
 0xac4   :  { %v5194_v3 = vpop.f32.mrb[20].mxu0 }
 0xac5   :  { %v5195_v52 = vpop.f32.mrb[21].mxu0 }
 0xac6   :  { %v5196_v6 = vadd.f32 %v5195_v52, %v5194_v3  ;;  %v5172_v53 = vpop.f32.mrb[12].mxu1  ;;  %v5197_v1 = vpop.f32.mrb[22].mxu0 }
 0xac7   :  { %v5173_v56 = vpop.f32.mrb[13].mxu1  ;;  %v5198_v58 = vpop.f32.mrb[23].mxu0 }
 0xac8   :  { %v5174_v41 = vadd.f32 %v5173_v56, %v5172_v53  ;;  %v5175_v14 = vpop.f32.mrb[14].mxu1 }
 0xac9   :  { %v5176_v59 = vpop.f32.mrb[15].mxu1 }
 0xaca   :  { %v4216_v60 = vadd.f32 %v5196_v6, %v5174_v41 }
 0xae6   :  { %v5216_v61 = vpop.f32.mrb[16].mxu1 }
 0xae7   :  { %v5217_v2 = vpop.f32.mrb[17].mxu1 }
 0xae8   :  { %v5218_v7 = vadd.f32 %v5217_v2, %v5216_v61  ;;  %v5219_v4 = vpop.f32.mrb[18].mxu1 }
 0xae9   :  { %v5220_v8 = vpop.f32.mrb[19].mxu1 }
 0xaea   :  { %v4402_v9 = vadd.f32 %v5218_v7, %v4216_v60 }
 0xaec   :  { %v4403_v10 = vsub.f32 0.0, %v4402_v9 }
 0xaee   :  { %v4404_v11 = vmul.f32 1.442695, %v4403_v10 }
 0xaf0   :  { %5976 = vpow2.f32 %v4404_v11 }
 0xafa   :  { %v5977_v62 = vpop.eup %5976 }
 0xafb   :  { %v4406_v12 = vadd.f32 1.0, %v5977_v62 }
 0xafd   :  { %5978 = vrcp.f32 %v4406_v12 }
 0xb07   :  { %v5979_v13 = vpop.eup %5978 }
 0xb08   :  { %4409 = vst.msk [vmem:[#allocation6] sm:$0x3] %vm4408_vm8, %v5979_v13 }
 0xb09   :  { %5991 = shalt.err (!%p5988_p4)
}
 0xb0a   :  { %s5992_s20 = scalar_lea.hbm %s7433_s12, 32 }
 0xb0b   :  { %p5993_p5 = scmp.ne.s32.totalorder %s7433_s12, %s5992_s20  ;;  %p5996_p6 = scmp.lt.u32.totalorder %s5992_s20, %s7433_s12 }
 0xb0d   :  { %p5998_p7 = pnand %p5996_p6, %p5993_p5 }
 0xb0f   :  { %6001 = shalt.err (!%p5998_p7)
}
 0xb10   :  { %4419 = dma.vmem_to_hbm [thread:$0]  %s4417_s18, 32, %s7433_s12, [#allocation7]  }
 0xb11   :  { %6002 = dma.done.wait [#allocation7], 32  }
 0xb12   :  { %6003 = vsyncadd [#allocation7], 4294967264 }
 0xb13   :  { %4423 = vsyncpa [#allocation7], 1 }

</bundles_post_ra>
